<compile_context>
chip_gen: v7x
topology: tpu7x:2x2x1
jax: 0.10.0
libtpu: 0.0.40
codegen_flags: <defaults>
</compile_context>

<pallas_src>
import math

import jax
import jax.numpy as jnp
import numpy as np
from jax.experimental import pallas as pl
from jax.experimental.pallas import tpu as pltpu

_LOG_LO = math.log(1e-4)
_LOG_HI = math.log(1.0 - 1e-4)


# ----------------------------------------------------------------------------
# in-kernel helpers
# ----------------------------------------------------------------------------
def _smooth_l1(d):
    ad = jnp.abs(d)
    return jnp.where(ad < 1.0, 0.5 * d * d, ad - 0.5)


def _softplus(x):
    # numerically stable softplus: max(x,0) + log(1 + exp(-|x|))
    return jnp.maximum(x, 0.0) + jnp.log(1.0 + jnp.exp(-jnp.abs(x)))


def _focal_loss(x, gt, mask=None):
    """CenterNet focal loss on sigmoid(x) with net_utils.sigmoid clamping.

    `mask` (optional, [K, 1]) restricts pos/neg samples to active rows; the
    masked sums are identical to the PyTorch boolean-index selection.
    """
    sp = _softplus(x)
    log_sig = x - sp                                   # log(sigmoid(x))
    log_1msig = -sp                                    # log(1 - sigmoid(x))
    pred = jnp.clip(jnp.exp(log_sig), 1e-4, 1.0 - 1e-4)
    log_pred = jnp.clip(log_sig, _LOG_LO, _LOG_HI)     # = log(clip(sigmoid(x)))
    log_1mpred = jnp.clip(log_1msig, _LOG_LO, _LOG_HI)

    pos_inds = (gt == 1.0).astype(jnp.float32)
    neg_inds = (gt < 1.0).astype(jnp.float32)
    if mask is not None:
        pos_inds = pos_inds * mask                     # broadcast [K,1] -> [K,HW]
        neg_inds = neg_inds * mask
    neg_weights = jnp.square(jnp.square(1.0 - gt))     # (1-gt)^4

    pos_loss = jnp.sum(log_pred * jnp.square(1.0 - pred) * pos_inds)
    neg_loss = jnp.sum(log_1mpred * jnp.square(pred) * neg_weights * neg_inds)
    num_pos = jnp.sum(pos_inds)

    return jnp.where(num_pos == 0.0,
                     -neg_loss,
                     -(pos_loss + neg_loss) / jnp.maximum(num_pos, 1.0))


def _ind_smooth_l1(feat, ind, tgt_cn, w):
    """IndL1Loss1d('smooth_l1').

    feat   : [K, C, HW]  (lane axis = HW)
    ind    : [K, N] int32
    tgt_cn : [K, C, N]   (target, channel-major)
    w      : [K, N]
    """
    K, C, HW = feat.shape
    N = ind.shape[1]

    # one-hot gather via broadcast-compare + lane reduction (VPU + XLU; no MXU)
    iota = jax.lax.broadcasted_iota(jnp.int32, (K, N, HW), 2)
    onehot = (iota == ind[:, :, None]).astype(jnp.float32)        # [K, N, HW]

    total = jnp.float32(0.0)
    for c in range(C):                                            # C is tiny & static
        gathered = jnp.sum(onehot * feat[:, c:c + 1, :], axis=-1)  # [K, N]
        d = (gathered - tgt_cn[:, c, :]) * w                       # smooth_l1(o*w, t*w)
        total = total + jnp.sum(_smooth_l1(d))
    return total / (jnp.sum(w) * C + 1e-4)


# ----------------------------------------------------------------------------
# single fused kernel: all six losses + weighted total
# ----------------------------------------------------------------------------
def rcnn_snake_loss_kernel(
        act_logit_ref, act_gt_ref,
        awh_feat_ref, awh_ind_ref, awh_tgt_ref, act01_ref,
        cp_logit_ref, cp_gt_ref, act01_col_ref,
        cp_feat_ref, cp_ind_ref, cp_tgt_ref, cp01_ref,
        ex_pred_ref, ex_gt_ref, py_pred_ref, py_gt_ref,
        out_ref):
    f32 = jnp.float32

    # ---- act_loss: focal loss on the full act heatmap (no mask) ----
    act_loss = _focal_loss(act_logit_ref[...].astype(f32),
                           act_gt_ref[...].astype(f32))

    # ---- awh_loss: IndL1Loss1d(smooth_l1) ----
    awh_loss = _ind_smooth_l1(awh_feat_ref[...].astype(f32),
                              awh_ind_ref[...].astype(jnp.int32),
                              awh_tgt_ref[...].astype(f32),
                              act01_ref[...].astype(f32))

    # ---- cp_loss: focal loss restricted to active ROIs (mask broadcast in-kernel) ----
    act01_col = act01_col_ref[...].astype(f32)                    # [K, 1]
    cp_loss = _focal_loss(cp_logit_ref[...].astype(f32),
                          cp_gt_ref[...].astype(f32),
                          mask=act01_col)

    # ---- cp_wh_loss: IndL1Loss1d(smooth_l1) on active ROIs ----
    cp_w = cp01_ref[...].astype(f32) * act01_col                  # [K, M]
    cp_wh_loss = _ind_smooth_l1(cp_feat_ref[...].astype(f32),
                                cp_ind_ref[...].astype(jnp.int32),
                                cp_tgt_ref[...].astype(f32),
                                cp_w)

    # ---- ex / py: smooth-L1 means (lane-dense inputs) ----
    ex_loss = jnp.mean(_smooth_l1(ex_pred_ref[...].astype(f32) -
                                  ex_gt_ref[...].astype(f32)))
    py_loss = jnp.mean(_smooth_l1(py_pred_ref[...].astype(f32) -
                                  py_gt_ref[...].astype(f32)))

    total = (act_loss + 0.1 * awh_loss + cp_loss +
             0.1 * cp_wh_loss + ex_loss + py_loss)

    out_ref[0] = act_loss
    out_ref[1] = awh_loss
    out_ref[2] = cp_loss
    out_ref[3] = cp_wh_loss
    out_ref[4] = ex_loss
    out_ref[5] = py_loss
    out_ref[6] = total
    out_ref[7] = f32(0.0)


# ----------------------------------------------------------------------------
# NetworkWrapper.forward
# ----------------------------------------------------------------------------
def _lane_dense(x):
    """Contiguous reshape to a lane-dense 2-D view (last dim 128 if possible)."""
    n = x.size
    if n % 128 == 0:
        return x.reshape(n // 128, 128)
    return x.reshape(1, n)


def network_wrapper_forward(output, batch):
    B, Cact, H, W = batch['act_hm'].shape
    Bc, Nact, Ccp, Hc, Wc = batch['cp_hm'].shape
    K = Bc * Nact
    M = batch['cp_ind'].shape[-1]

    # heatmaps: flat lane-dense 2-D views (contiguous reshapes, no copies)
    act_logit = output['act_hm'].reshape(B * Cact, H * W)
    act_gt = batch['act_hm'].reshape(B * Cact, H * W)
    cp_logit = output['cp_hm'].reshape(K, Ccp * Hc * Wc)
    cp_gt = batch['cp_hm'].reshape(K, Ccp * Hc * Wc)

    # gather features keep native NCHW-contiguous [K, C, HW] (lane = HW)
    awh_feat = output['awh'].reshape(B, 2, H * W)
    awh_ind = batch['act_ind'].reshape(B, Nact)
    awh_tgt = batch['awh'].reshape(B, Nact, 2).transpose(0, 2, 1)      # [B, 2, Nact]
    act01 = batch['act_01'].reshape(B, Nact)
    act01_col = batch['act_01'].reshape(K, 1)                          # ROI mask column

    cp_feat = output['cp_wh'].reshape(K, 2, Hc * Wc)
    cp_ind = batch['cp_ind'].reshape(K, M)
    cp_tgt = batch['cp_wh'].reshape(K, M, 2).transpose(0, 2, 1)        # [K, 2, M]
    cp01 = batch['cp_01'].reshape(K, M)

    # torch: only the last snake iteration contributes to py_loss
    output['py_pred'] = [output['py_pred'][-1]]
    ex_pred = _lane_dense(output['ex_pred'])
    ex_gt = _lane_dense(output['i_gt_4py'])
    py_pred = _lane_dense(output['py_pred'][-1])
    py_gt = _lane_dense(output['i_gt_py'])

    inputs = (act_logit, act_gt,
              awh_feat, awh_ind, awh_tgt, act01,
              cp_logit, cp_gt, act01_col,
              cp_feat, cp_ind, cp_tgt, cp01,
              ex_pred, ex_gt, py_pred, py_gt)

    losses = pl.pallas_call(
        rcnn_snake_loss_kernel,
        out_shape=jax.ShapeDtypeStruct((8,), jnp.float32),
        in_specs=[pl.BlockSpec(memory_space=pltpu.MemorySpace.VMEM)] * len(inputs),
        out_specs=pl.BlockSpec(memory_space=pltpu.MemorySpace.SMEM),
    )(*inputs)

    loss = losses[6]
    scalar_stats = {
        'act_loss': losses[0],
        'awh_loss': losses[1],
        'cp_loss': losses[2],
        'cp_wh_loss': losses[3],
        'ex_loss': losses[4],
        'py_loss': losses[5],
        'loss': loss,
    }
    image_stats = {}
    return output, loss, scalar_stats, image_stats


# ----------------------------------------------------------------------------
# pure-JAX reference (torch-faithful) for a correctness check
# ----------------------------------------------------------------------------
def _reference_losses(output, batch):
    f32 = jnp.float32

    def sig(x):
        return jnp.clip(jax.nn.sigmoid(x.astype(f32)), 1e-4, 1.0 - 1e-4)

    def focal(pred, gt, mask=None):
        pos = (gt == 1.0).astype(f32)
        neg = (gt < 1.0).astype(f32)
        if mask is not None:
            pos = pos * mask
            neg = neg * mask
        nw = (1.0 - gt) ** 4
        pls = jnp.sum(jnp.log(pred) * (1.0 - pred) ** 2 * pos)
        nls = jnp.sum(jnp.log(1.0 - pred) * pred ** 2 * nw * neg)
        npos = jnp.sum(pos)
        return jnp.where(npos == 0.0, -nls, -(pls + nls) / jnp.maximum(npos, 1.0))

    def sl1(d):
        ad = jnp.abs(d)
        return jnp.where(ad < 1.0, 0.5 * d * d, ad - 0.5)

    def ind_l1(feat, tgt, ind, w):
        b, c, hw = feat.shape
        n = ind.shape[1]
        feat_t = jnp.transpose(feat, (0, 2, 1))                        # [b, hw, c]
        g = jnp.take_along_axis(
            feat_t, jnp.broadcast_to(ind[:, :, None], (b, n, c)), axis=1)
        d = (g - tgt) * w[:, :, None]
        return jnp.sum(sl1(d)) / (jnp.sum(w) * c + 1e-4)

    B, Cact, H, W = batch['act_hm'].shape
    Bc, Nact, Ccp, Hc, Wc = batch['cp_hm'].shape
    K = Bc * Nact
    M = batch['cp_ind'].shape[-1]

    act_loss = focal(sig(output['act_hm']), batch['act_hm'].astype(f32))
    awh_loss = ind_l1(output['awh'].reshape(B, 2, H * W).astype(f32),
                      batch['awh'].astype(f32), batch['act_ind'],
                      batch['act_01'].astype(f32))
    act01 = batch['act_01'].reshape(K).astype(f32)
    cp_loss = focal(sig(output['cp_hm']).reshape(K, -1),
                    batch['cp_hm'].reshape(K, -1).astype(f32),
                    mask=act01[:, None])
    cp_w = batch['cp_01'].reshape(K, M).astype(f32) * act01[:, None]
    cp_wh_loss = ind_l1(output['cp_wh'].reshape(K, 2, Hc * Wc).astype(f32),
                        batch['cp_wh'].reshape(K, M, 2).astype(f32),
                        batch['cp_ind'].reshape(K, M), cp_w)
    ex_loss = jnp.mean(sl1(output['ex_pred'].astype(f32) -
                           output['i_gt_4py'].astype(f32)))
    py_loss = jnp.mean(sl1(output['py_pred'][-1].astype(f32) -
                           output['i_gt_py'].astype(f32)))
    total = (act_loss + 0.1 * awh_loss + cp_loss +
             0.1 * cp_wh_loss + ex_loss + py_loss)
    return jnp.stack([act_loss, awh_loss, cp_loss, cp_wh_loss,
                      ex_loss, py_loss, total])


# ----------------------------------------------------------------------------
# main
# ----------------------------------------------------------------------------
if __name__ == "__main__":
    key = jax.random.PRNGKey(0)
    ks = jax.random.split(key, 16)

    B, Cact, H, W = 2, 4, 16, 16        # detection heatmap
    Nact, M = 8, 4                      # max ROIs per image, max components per ROI
    Hc = Wc = 16                        # component heatmap size
    K_roi = B * Nact

    def u(k, shape, lo=0.0, hi=1.0):
        return jax.random.uniform(k, shape, jnp.float32, lo, hi)

    # ground-truth heatmaps: mostly < 1 with a few exact 1.0 peaks
    act_hm_gt = u(ks[0], (B, Cact, H, W)) * 0.9
    act_hm_gt = jnp.where(u(ks[1], (B, Cact, H, W)) > 0.98, 1.0, act_hm_gt)
    cp_hm_gt = u(ks[2], (B, Nact, 1, Hc, Wc)) * 0.9
    cp_hm_gt = jnp.where(u(ks[3], (B, Nact, 1, Hc, Wc)) > 0.98, 1.0, cp_hm_gt)

    batch = dict(
        inp=u(ks[4], (B, Cact, H, W)),
        act_hm=act_hm_gt,
        awh=u(ks[5], (B, Nact, 2), 0.0, 4.0),
        act_ind=jax.random.randint(ks[6], (B, Nact), 0, H * W, dtype=jnp.int32),
        act_01=(u(ks[7], (B, Nact)) > 0.3).astype(jnp.float32),
        cp_hm=cp_hm_gt,
        cp_wh=u(ks[8], (B, Nact, M, 2), 0.0, 4.0),
        cp_ind=jax.random.randint(ks[9], (B, Nact, M), 0, Hc * Wc, dtype=jnp.int32),
        cp_01=(u(ks[10], (B, Nact, M)) > 0.3).astype(jnp.float32),
    )

    # TODO(synk): backbone `self.net` outputs synthesized (no checkpoint / external net).
    output = dict(
        act_hm=u(ks[11], (B, Cact, H, W), -3.0, 3.0),
        awh=u(ks[12], (B, 2, H, W), 0.0, 4.0),
        cp_hm=u(ks[13], (B, Nact, 1, Hc, Wc), -3.0, 3.0),
        cp_wh=u(ks[14], (B, Nact, 2, Hc, Wc), 0.0, 4.0),
        ex_pred=u(ks[15], (K_roi, 4, 2), 0.0, 16.0),
        i_gt_4py=u(ks[0], (K_roi, 4, 2), 0.0, 16.0),
        py_pred=[u(ks[1], (K_roi, 40, 2), 0.0, 16.0) for _ in range(3)],
        i_gt_py=u(ks[2], (K_roi, 40, 2), 0.0, 16.0),
    )

    out, loss, scalar_stats, image_stats = network_wrapper_forward(output, batch)
    jax.block_until_ready(loss)

    # correctness check against pure-JAX (torch-faithful) reference
    got = jnp.stack([scalar_stats[k] for k in
                     ('act_loss', 'awh_loss', 'cp_loss', 'cp_wh_loss',
                      'ex_loss', 'py_loss', 'loss')])
    ref = _reference_losses(output, batch)
    np.testing.assert_allclose(np.asarray(got), np.asarray(ref),
                               rtol=1e-3, atol=1e-4)

    print("KERNEL_OK")
</pallas_src>

<mosaic_0001>
module attributes {stable_mosaic.version = 11 : i64} {
  func.func @rcnn_snake_loss_kernel(%arg0: memref<8x256xf32, #tpu.memory_space<vmem>>, %arg1: memref<8x256xf32, #tpu.memory_space<vmem>>, %arg2: memref<2x2x256xf32, #tpu.memory_space<vmem>>, %arg3: memref<2x8xi32, #tpu.memory_space<vmem>>, %arg4: memref<2x2x8xf32, #tpu.memory_space<vmem>>, %arg5: memref<2x8xf32, #tpu.memory_space<vmem>>, %arg6: memref<16x256xf32, #tpu.memory_space<vmem>>, %arg7: memref<16x256xf32, #tpu.memory_space<vmem>>, %arg8: memref<16x1xf32, #tpu.memory_space<vmem>>, %arg9: memref<16x2x256xf32, #tpu.memory_space<vmem>>, %arg10: memref<16x4xi32, #tpu.memory_space<vmem>>, %arg11: memref<16x2x4xf32, #tpu.memory_space<vmem>>, %arg12: memref<16x4xf32, #tpu.memory_space<vmem>>, %arg13: memref<1x128xf32, #tpu.memory_space<vmem>>, %arg14: memref<1x128xf32, #tpu.memory_space<vmem>>, %arg15: memref<10x128xf32, #tpu.memory_space<vmem>>, %arg16: memref<10x128xf32, #tpu.memory_space<vmem>>, %arg17: memref<8xf32, #tpu.memory_space<smem>>) attributes {dimension_semantics = [], scalar_prefetch = 0 : i64, scratch_operands = 0 : i64, tpu.core_type = #tpu.core_type<tc>} {
    %c0 = arith.constant 0 : index
    %c0_0 = arith.constant 0 : index
    %0 = vector.load %arg0[%c0, %c0_0] : memref<8x256xf32, #tpu.memory_space<vmem>>, vector<8x256xf32>
    %c0_1 = arith.constant 0 : index
    %c0_2 = arith.constant 0 : index
    %1 = vector.load %arg1[%c0_1, %c0_2] : memref<8x256xf32, #tpu.memory_space<vmem>>, vector<8x256xf32>
    %cst = arith.constant 0.000000e+00 : f32
    %2 = vector.broadcast %cst : f32 to vector<8x256xf32>
    %3 = arith.maximumf %0, %2 : vector<8x256xf32>
    %4 = math.absf %0 : vector<8x256xf32>
    %cst_3 = arith.constant 0.000000e+00 : f32
    %5 = vector.broadcast %cst_3 : f32 to vector<8x256xf32>
    %6 = arith.subf %5, %4 : vector<8x256xf32>
    %7 = math.exp %6 : vector<8x256xf32>
    %cst_4 = arith.constant 1.000000e+00 : f32
    %8 = vector.broadcast %cst_4 : f32 to vector<8x256xf32>
    %9 = arith.addf %8, %7 : vector<8x256xf32>
    %10 = math.log %9 : vector<8x256xf32>
    %11 = arith.addf %3, %10 : vector<8x256xf32>
    %12 = arith.subf %0, %11 : vector<8x256xf32>
    %cst_5 = arith.constant 0.000000e+00 : f32
    %13 = vector.broadcast %cst_5 : f32 to vector<8x256xf32>
    %14 = arith.subf %13, %11 : vector<8x256xf32>
    %15 = math.exp %12 : vector<8x256xf32>
    %cst_6 = arith.constant 9.99999974E-5 : f32
    %cst_7 = arith.constant 0.999899983 : f32
    %16 = vector.broadcast %cst_6 : f32 to vector<8x256xf32>
    %17 = arith.maximumf %16, %15 : vector<8x256xf32>
    %18 = vector.broadcast %cst_7 : f32 to vector<8x256xf32>
    %19 = arith.minimumf %18, %17 : vector<8x256xf32>
    %cst_8 = arith.constant -9.21034049 : f32
    %cst_9 = arith.constant -1.000050e-04 : f32
    %20 = vector.broadcast %cst_8 : f32 to vector<8x256xf32>
    %21 = arith.maximumf %20, %12 : vector<8x256xf32>
    %22 = vector.broadcast %cst_9 : f32 to vector<8x256xf32>
    %23 = arith.minimumf %22, %21 : vector<8x256xf32>
    %cst_10 = arith.constant -9.21034049 : f32
    %cst_11 = arith.constant -1.000050e-04 : f32
    %24 = vector.broadcast %cst_10 : f32 to vector<8x256xf32>
    %25 = arith.maximumf %24, %14 : vector<8x256xf32>
    %26 = vector.broadcast %cst_11 : f32 to vector<8x256xf32>
    %27 = arith.minimumf %26, %25 : vector<8x256xf32>
    %cst_12 = arith.constant 1.000000e+00 : f32
    %28 = vector.broadcast %cst_12 : f32 to vector<8x256xf32>
    %29 = arith.cmpf oeq, %1, %28 : vector<8x256xf32>
    %30 = arith.extui %29 : vector<8x256xi1> to vector<8x256xi32>
    %31 = arith.sitofp %30 : vector<8x256xi32> to vector<8x256xf32>
    %cst_13 = arith.constant 1.000000e+00 : f32
    %32 = vector.broadcast %cst_13 : f32 to vector<8x256xf32>
    %33 = arith.cmpf olt, %1, %32 : vector<8x256xf32>
    %34 = arith.extui %33 : vector<8x256xi1> to vector<8x256xi32>
    %35 = arith.sitofp %34 : vector<8x256xi32> to vector<8x256xf32>
    %cst_14 = arith.constant 1.000000e+00 : f32
    %36 = vector.broadcast %cst_14 : f32 to vector<8x256xf32>
    %37 = arith.subf %36, %1 : vector<8x256xf32>
    %38 = arith.mulf %37, %37 : vector<8x256xf32>
    %39 = arith.mulf %38, %38 : vector<8x256xf32>
    %cst_15 = arith.constant 1.000000e+00 : f32
    %40 = vector.broadcast %cst_15 : f32 to vector<8x256xf32>
    %41 = arith.subf %40, %19 : vector<8x256xf32>
    %42 = arith.mulf %41, %41 : vector<8x256xf32>
    %43 = arith.mulf %23, %42 : vector<8x256xf32>
    %44 = arith.mulf %43, %31 : vector<8x256xf32>
    %45 = vector.shape_cast %44 : vector<8x256xf32> to vector<1x8x256xf32>
    %cst_16 = arith.constant dense<0.000000e+00> : vector<1xf32>
    %46 = vector.multi_reduction <add>, %45, %cst_16 [1, 2] : vector<1x8x256xf32> to vector<1xf32>
    %47 = vector.shape_cast %46 : vector<1xf32> to vector<1x1x1xf32>
    %48 = vector.extract %47[0, 0, 0] : f32 from vector<1x1x1xf32>
    %49 = arith.mulf %19, %19 : vector<8x256xf32>
    %50 = arith.mulf %27, %49 : vector<8x256xf32>
    %51 = arith.mulf %50, %39 : vector<8x256xf32>
    %52 = arith.mulf %51, %35 : vector<8x256xf32>
    %53 = vector.shape_cast %52 : vector<8x256xf32> to vector<1x8x256xf32>
    %cst_17 = arith.constant dense<0.000000e+00> : vector<1xf32>
    %54 = vector.multi_reduction <add>, %53, %cst_17 [1, 2] : vector<1x8x256xf32> to vector<1xf32>
    %55 = vector.shape_cast %54 : vector<1xf32> to vector<1x1x1xf32>
    %56 = vector.extract %55[0, 0, 0] : f32 from vector<1x1x1xf32>
    %57 = vector.shape_cast %31 : vector<8x256xf32> to vector<1x8x256xf32>
    %cst_18 = arith.constant dense<0.000000e+00> : vector<1xf32>
    %58 = vector.multi_reduction <add>, %57, %cst_18 [1, 2] : vector<1x8x256xf32> to vector<1xf32>
    %59 = vector.shape_cast %58 : vector<1xf32> to vector<1x1x1xf32>
    %60 = vector.extract %59[0, 0, 0] : f32 from vector<1x1x1xf32>
    %cst_19 = arith.constant 0.000000e+00 : f32
    %61 = arith.cmpf oeq, %60, %cst_19 : f32
    %cst_20 = arith.constant 0.000000e+00 : f32
    %62 = arith.subf %cst_20, %56 : f32
    %63 = arith.addf %48, %56 : f32
    %cst_21 = arith.constant 0.000000e+00 : f32
    %64 = arith.subf %cst_21, %63 : f32
    %cst_22 = arith.constant 1.000000e+00 : f32
    %65 = arith.maximumf %60, %cst_22 : f32
    %66 = arith.divf %64, %65 : f32
    %67 = arith.select %61, %62, %66 : f32
    %c0_23 = arith.constant 0 : index
    %c0_24 = arith.constant 0 : index
    %c0_25 = arith.constant 0 : index
    %68 = vector.load %arg2[%c0_23, %c0_24, %c0_25] : memref<2x2x256xf32, #tpu.memory_space<vmem>>, vector<2x2x256xf32>
    %c0_26 = arith.constant 0 : index
    %c0_27 = arith.constant 0 : index
    %69 = vector.load %arg3[%c0_26, %c0_27] : memref<2x8xi32, #tpu.memory_space<vmem>>, vector<2x8xi32>
    %c0_28 = arith.constant 0 : index
    %c0_29 = arith.constant 0 : index
    %c0_30 = arith.constant 0 : index
    %70 = vector.load %arg4[%c0_28, %c0_29, %c0_30] : memref<2x2x8xf32, #tpu.memory_space<vmem>>, vector<2x2x8xf32>
    %c0_31 = arith.constant 0 : index
    %c0_32 = arith.constant 0 : index
    %71 = vector.load %arg5[%c0_31, %c0_32] : memref<2x8xf32, #tpu.memory_space<vmem>>, vector<2x8xf32>
    %72 = tpu.iota {dimensions = array<i32: 2>} : vector<2x8x256xi32>
    %73 = vector.shape_cast %69 : vector<2x8xi32> to vector<2x8x1xi32>
    %74 = vector.broadcast %73 : vector<2x8x1xi32> to vector<2x8x256xi32>
    %75 = arith.cmpi eq, %72, %74 : vector<2x8x256xi32>
    %76 = arith.extui %75 : vector<2x8x256xi1> to vector<2x8x256xi32>
    %77 = arith.sitofp %76 : vector<2x8x256xi32> to vector<2x8x256xf32>
    %78 = vector.extract_strided_slice %68 {offsets = [0, 0, 0], sizes = [2, 1, 256], strides = [1, 1, 1]} : vector<2x2x256xf32> to vector<2x1x256xf32>
    %79 = vector.broadcast %78 : vector<2x1x256xf32> to vector<2x8x256xf32>
    %80 = arith.mulf %77, %79 : vector<2x8x256xf32>
    %cst_33 = arith.constant dense<0.000000e+00> : vector<2x8xf32>
    %81 = vector.multi_reduction <add>, %80, %cst_33 [2] : vector<2x8x256xf32> to vector<2x8xf32>
    %82 = vector.extract_strided_slice %70 {offsets = [0, 0, 0], sizes = [2, 1, 8], strides = [1, 1, 1]} : vector<2x2x8xf32> to vector<2x1x8xf32>
    %83 = vector.shape_cast %82 : vector<2x1x8xf32> to vector<2x8xf32>
    %84 = arith.subf %81, %83 : vector<2x8xf32>
    %85 = arith.mulf %84, %71 : vector<2x8xf32>
    %86 = math.absf %85 : vector<2x8xf32>
    %cst_34 = arith.constant 1.000000e+00 : f32
    %87 = vector.broadcast %cst_34 : f32 to vector<2x8xf32>
    %88 = arith.cmpf olt, %86, %87 : vector<2x8xf32>
    %cst_35 = arith.constant 5.000000e-01 : f32
    %89 = vector.broadcast %cst_35 : f32 to vector<2x8xf32>
    %90 = arith.mulf %89, %85 : vector<2x8xf32>
    %91 = arith.mulf %90, %85 : vector<2x8xf32>
    %cst_36 = arith.constant 5.000000e-01 : f32
    %92 = vector.broadcast %cst_36 : f32 to vector<2x8xf32>
    %93 = arith.subf %86, %92 : vector<2x8xf32>
    %94 = arith.select %88, %91, %93 : vector<2x8xi1>, vector<2x8xf32>
    %95 = vector.shape_cast %94 : vector<2x8xf32> to vector<1x2x8xf32>
    %cst_37 = arith.constant dense<0.000000e+00> : vector<1xf32>
    %96 = vector.multi_reduction <add>, %95, %cst_37 [1, 2] : vector<1x2x8xf32> to vector<1xf32>
    %97 = vector.shape_cast %96 : vector<1xf32> to vector<1x1x1xf32>
    %98 = vector.extract %97[0, 0, 0] : f32 from vector<1x1x1xf32>
    %cst_38 = arith.constant 0.000000e+00 : f32
    %99 = arith.addf %cst_38, %98 : f32
    %100 = vector.extract_strided_slice %68 {offsets = [0, 1, 0], sizes = [2, 1, 256], strides = [1, 1, 1]} : vector<2x2x256xf32> to vector<2x1x256xf32>
    %101 = vector.broadcast %100 : vector<2x1x256xf32> to vector<2x8x256xf32>
    %102 = arith.mulf %77, %101 : vector<2x8x256xf32>
    %cst_39 = arith.constant dense<0.000000e+00> : vector<2x8xf32>
    %103 = vector.multi_reduction <add>, %102, %cst_39 [2] : vector<2x8x256xf32> to vector<2x8xf32>
    %104 = vector.extract_strided_slice %70 {offsets = [0, 1, 0], sizes = [2, 1, 8], strides = [1, 1, 1]} : vector<2x2x8xf32> to vector<2x1x8xf32>
    %105 = vector.shape_cast %104 : vector<2x1x8xf32> to vector<2x8xf32>
    %106 = arith.subf %103, %105 : vector<2x8xf32>
    %107 = arith.mulf %106, %71 : vector<2x8xf32>
    %108 = math.absf %107 : vector<2x8xf32>
    %cst_40 = arith.constant 1.000000e+00 : f32
    %109 = vector.broadcast %cst_40 : f32 to vector<2x8xf32>
    %110 = arith.cmpf olt, %108, %109 : vector<2x8xf32>
    %cst_41 = arith.constant 5.000000e-01 : f32
    %111 = vector.broadcast %cst_41 : f32 to vector<2x8xf32>
    %112 = arith.mulf %111, %107 : vector<2x8xf32>
    %113 = arith.mulf %112, %107 : vector<2x8xf32>
    %cst_42 = arith.constant 5.000000e-01 : f32
    %114 = vector.broadcast %cst_42 : f32 to vector<2x8xf32>
    %115 = arith.subf %108, %114 : vector<2x8xf32>
    %116 = arith.select %110, %113, %115 : vector<2x8xi1>, vector<2x8xf32>
    %117 = vector.shape_cast %116 : vector<2x8xf32> to vector<1x2x8xf32>
    %cst_43 = arith.constant dense<0.000000e+00> : vector<1xf32>
    %118 = vector.multi_reduction <add>, %117, %cst_43 [1, 2] : vector<1x2x8xf32> to vector<1xf32>
    %119 = vector.shape_cast %118 : vector<1xf32> to vector<1x1x1xf32>
    %120 = vector.extract %119[0, 0, 0] : f32 from vector<1x1x1xf32>
    %121 = arith.addf %99, %120 : f32
    %122 = vector.shape_cast %71 : vector<2x8xf32> to vector<1x2x8xf32>
    %cst_44 = arith.constant dense<0.000000e+00> : vector<1xf32>
    %123 = vector.multi_reduction <add>, %122, %cst_44 [1, 2] : vector<1x2x8xf32> to vector<1xf32>
    %124 = vector.shape_cast %123 : vector<1xf32> to vector<1x1x1xf32>
    %125 = vector.extract %124[0, 0, 0] : f32 from vector<1x1x1xf32>
    %cst_45 = arith.constant 2.000000e+00 : f32
    %126 = arith.mulf %125, %cst_45 : f32
    %cst_46 = arith.constant 9.99999974E-5 : f32
    %127 = arith.addf %126, %cst_46 : f32
    %128 = arith.divf %121, %127 : f32
    %c0_47 = arith.constant 0 : index
    %c0_48 = arith.constant 0 : index
    %129 = vector.load %arg8[%c0_47, %c0_48] : memref<16x1xf32, #tpu.memory_space<vmem>>, vector<16x1xf32>
    %c0_49 = arith.constant 0 : index
    %c0_50 = arith.constant 0 : index
    %130 = vector.load %arg6[%c0_49, %c0_50] : memref<16x256xf32, #tpu.memory_space<vmem>>, vector<16x256xf32>
    %c0_51 = arith.constant 0 : index
    %c0_52 = arith.constant 0 : index
    %131 = vector.load %arg7[%c0_51, %c0_52] : memref<16x256xf32, #tpu.memory_space<vmem>>, vector<16x256xf32>
    %cst_53 = arith.constant 0.000000e+00 : f32
    %132 = vector.broadcast %cst_53 : f32 to vector<16x256xf32>
    %133 = arith.maximumf %130, %132 : vector<16x256xf32>
    %134 = math.absf %130 : vector<16x256xf32>
    %cst_54 = arith.constant 0.000000e+00 : f32
    %135 = vector.broadcast %cst_54 : f32 to vector<16x256xf32>
    %136 = arith.subf %135, %134 : vector<16x256xf32>
    %137 = math.exp %136 : vector<16x256xf32>
    %cst_55 = arith.constant 1.000000e+00 : f32
    %138 = vector.broadcast %cst_55 : f32 to vector<16x256xf32>
    %139 = arith.addf %138, %137 : vector<16x256xf32>
    %140 = math.log %139 : vector<16x256xf32>
    %141 = arith.addf %133, %140 : vector<16x256xf32>
    %142 = arith.subf %130, %141 : vector<16x256xf32>
    %cst_56 = arith.constant 0.000000e+00 : f32
    %143 = vector.broadcast %cst_56 : f32 to vector<16x256xf32>
    %144 = arith.subf %143, %141 : vector<16x256xf32>
    %145 = math.exp %142 : vector<16x256xf32>
    %cst_57 = arith.constant 9.99999974E-5 : f32
    %cst_58 = arith.constant 0.999899983 : f32
    %146 = vector.broadcast %cst_57 : f32 to vector<16x256xf32>
    %147 = arith.maximumf %146, %145 : vector<16x256xf32>
    %148 = vector.broadcast %cst_58 : f32 to vector<16x256xf32>
    %149 = arith.minimumf %148, %147 : vector<16x256xf32>
    %cst_59 = arith.constant -9.21034049 : f32
    %cst_60 = arith.constant -1.000050e-04 : f32
    %150 = vector.broadcast %cst_59 : f32 to vector<16x256xf32>
    %151 = arith.maximumf %150, %142 : vector<16x256xf32>
    %152 = vector.broadcast %cst_60 : f32 to vector<16x256xf32>
    %153 = arith.minimumf %152, %151 : vector<16x256xf32>
    %cst_61 = arith.constant -9.21034049 : f32
    %cst_62 = arith.constant -1.000050e-04 : f32
    %154 = vector.broadcast %cst_61 : f32 to vector<16x256xf32>
    %155 = arith.maximumf %154, %144 : vector<16x256xf32>
    %156 = vector.broadcast %cst_62 : f32 to vector<16x256xf32>
    %157 = arith.minimumf %156, %155 : vector<16x256xf32>
    %cst_63 = arith.constant 1.000000e+00 : f32
    %158 = vector.broadcast %cst_63 : f32 to vector<16x256xf32>
    %159 = arith.cmpf oeq, %131, %158 : vector<16x256xf32>
    %160 = arith.extui %159 : vector<16x256xi1> to vector<16x256xi32>
    %161 = arith.sitofp %160 : vector<16x256xi32> to vector<16x256xf32>
    %cst_64 = arith.constant 1.000000e+00 : f32
    %162 = vector.broadcast %cst_64 : f32 to vector<16x256xf32>
    %163 = arith.cmpf olt, %131, %162 : vector<16x256xf32>
    %164 = arith.extui %163 : vector<16x256xi1> to vector<16x256xi32>
    %165 = arith.sitofp %164 : vector<16x256xi32> to vector<16x256xf32>
    %166 = vector.broadcast %129 : vector<16x1xf32> to vector<16x256xf32>
    %167 = arith.mulf %161, %166 : vector<16x256xf32>
    %168 = vector.broadcast %129 : vector<16x1xf32> to vector<16x256xf32>
    %169 = arith.mulf %165, %168 : vector<16x256xf32>
    %cst_65 = arith.constant 1.000000e+00 : f32
    %170 = vector.broadcast %cst_65 : f32 to vector<16x256xf32>
    %171 = arith.subf %170, %131 : vector<16x256xf32>
    %172 = arith.mulf %171, %171 : vector<16x256xf32>
    %173 = arith.mulf %172, %172 : vector<16x256xf32>
    %cst_66 = arith.constant 1.000000e+00 : f32
    %174 = vector.broadcast %cst_66 : f32 to vector<16x256xf32>
    %175 = arith.subf %174, %149 : vector<16x256xf32>
    %176 = arith.mulf %175, %175 : vector<16x256xf32>
    %177 = arith.mulf %153, %176 : vector<16x256xf32>
    %178 = arith.mulf %177, %167 : vector<16x256xf32>
    %179 = vector.shape_cast %178 : vector<16x256xf32> to vector<1x16x256xf32>
    %cst_67 = arith.constant dense<0.000000e+00> : vector<1xf32>
    %180 = vector.multi_reduction <add>, %179, %cst_67 [1, 2] : vector<1x16x256xf32> to vector<1xf32>
    %181 = vector.shape_cast %180 : vector<1xf32> to vector<1x1x1xf32>
    %182 = vector.extract %181[0, 0, 0] : f32 from vector<1x1x1xf32>
    %183 = arith.mulf %149, %149 : vector<16x256xf32>
    %184 = arith.mulf %157, %183 : vector<16x256xf32>
    %185 = arith.mulf %184, %173 : vector<16x256xf32>
    %186 = arith.mulf %185, %169 : vector<16x256xf32>
    %187 = vector.shape_cast %186 : vector<16x256xf32> to vector<1x16x256xf32>
    %cst_68 = arith.constant dense<0.000000e+00> : vector<1xf32>
    %188 = vector.multi_reduction <add>, %187, %cst_68 [1, 2] : vector<1x16x256xf32> to vector<1xf32>
    %189 = vector.shape_cast %188 : vector<1xf32> to vector<1x1x1xf32>
    %190 = vector.extract %189[0, 0, 0] : f32 from vector<1x1x1xf32>
    %191 = vector.shape_cast %167 : vector<16x256xf32> to vector<1x16x256xf32>
    %cst_69 = arith.constant dense<0.000000e+00> : vector<1xf32>
    %192 = vector.multi_reduction <add>, %191, %cst_69 [1, 2] : vector<1x16x256xf32> to vector<1xf32>
    %193 = vector.shape_cast %192 : vector<1xf32> to vector<1x1x1xf32>
    %194 = vector.extract %193[0, 0, 0] : f32 from vector<1x1x1xf32>
    %cst_70 = arith.constant 0.000000e+00 : f32
    %195 = arith.cmpf oeq, %194, %cst_70 : f32
    %cst_71 = arith.constant 0.000000e+00 : f32
    %196 = arith.subf %cst_71, %190 : f32
    %197 = arith.addf %182, %190 : f32
    %cst_72 = arith.constant 0.000000e+00 : f32
    %198 = arith.subf %cst_72, %197 : f32
    %cst_73 = arith.constant 1.000000e+00 : f32
    %199 = arith.maximumf %194, %cst_73 : f32
    %200 = arith.divf %198, %199 : f32
    %201 = arith.select %195, %196, %200 : f32
    %c0_74 = arith.constant 0 : index
    %c0_75 = arith.constant 0 : index
    %202 = vector.load %arg12[%c0_74, %c0_75] : memref<16x4xf32, #tpu.memory_space<vmem>>, vector<16x4xf32>
    %203 = vector.broadcast %129 : vector<16x1xf32> to vector<16x4xf32>
    %204 = arith.mulf %202, %203 : vector<16x4xf32>
    %c0_76 = arith.constant 0 : index
    %c0_77 = arith.constant 0 : index
    %c0_78 = arith.constant 0 : index
    %205 = vector.load %arg9[%c0_76, %c0_77, %c0_78] : memref<16x2x256xf32, #tpu.memory_space<vmem>>, vector<16x2x256xf32>
    %c0_79 = arith.constant 0 : index
    %c0_80 = arith.constant 0 : index
    %206 = vector.load %arg10[%c0_79, %c0_80] : memref<16x4xi32, #tpu.memory_space<vmem>>, vector<16x4xi32>
    %c0_81 = arith.constant 0 : index
    %c0_82 = arith.constant 0 : index
    %c0_83 = arith.constant 0 : index
    %207 = vector.load %arg11[%c0_81, %c0_82, %c0_83] : memref<16x2x4xf32, #tpu.memory_space<vmem>>, vector<16x2x4xf32>
    %208 = tpu.iota {dimensions = array<i32: 2>} : vector<16x4x256xi32>
    %209 = vector.shape_cast %206 : vector<16x4xi32> to vector<16x4x1xi32>
    %210 = vector.broadcast %209 : vector<16x4x1xi32> to vector<16x4x256xi32>
    %211 = arith.cmpi eq, %208, %210 : vector<16x4x256xi32>
    %212 = arith.extui %211 : vector<16x4x256xi1> to vector<16x4x256xi32>
    %213 = arith.sitofp %212 : vector<16x4x256xi32> to vector<16x4x256xf32>
    %214 = vector.extract_strided_slice %205 {offsets = [0, 0, 0], sizes = [16, 1, 256], strides = [1, 1, 1]} : vector<16x2x256xf32> to vector<16x1x256xf32>
    %215 = vector.broadcast %214 : vector<16x1x256xf32> to vector<16x4x256xf32>
    %216 = arith.mulf %213, %215 : vector<16x4x256xf32>
    %cst_84 = arith.constant dense<0.000000e+00> : vector<16x4xf32>
    %217 = vector.multi_reduction <add>, %216, %cst_84 [2] : vector<16x4x256xf32> to vector<16x4xf32>
    %218 = vector.extract_strided_slice %207 {offsets = [0, 0, 0], sizes = [16, 1, 4], strides = [1, 1, 1]} : vector<16x2x4xf32> to vector<16x1x4xf32>
    %219 = vector.shape_cast %218 : vector<16x1x4xf32> to vector<16x4xf32>
    %220 = arith.subf %217, %219 : vector<16x4xf32>
    %221 = arith.mulf %220, %204 : vector<16x4xf32>
    %222 = math.absf %221 : vector<16x4xf32>
    %cst_85 = arith.constant 1.000000e+00 : f32
    %223 = vector.broadcast %cst_85 : f32 to vector<16x4xf32>
    %224 = arith.cmpf olt, %222, %223 : vector<16x4xf32>
    %cst_86 = arith.constant 5.000000e-01 : f32
    %225 = vector.broadcast %cst_86 : f32 to vector<16x4xf32>
    %226 = arith.mulf %225, %221 : vector<16x4xf32>
    %227 = arith.mulf %226, %221 : vector<16x4xf32>
    %cst_87 = arith.constant 5.000000e-01 : f32
    %228 = vector.broadcast %cst_87 : f32 to vector<16x4xf32>
    %229 = arith.subf %222, %228 : vector<16x4xf32>
    %230 = arith.select %224, %227, %229 : vector<16x4xi1>, vector<16x4xf32>
    %231 = vector.shape_cast %230 : vector<16x4xf32> to vector<1x16x4xf32>
    %cst_88 = arith.constant dense<0.000000e+00> : vector<1xf32>
    %232 = vector.multi_reduction <add>, %231, %cst_88 [1, 2] : vector<1x16x4xf32> to vector<1xf32>
    %233 = vector.shape_cast %232 : vector<1xf32> to vector<1x1x1xf32>
    %234 = vector.extract %233[0, 0, 0] : f32 from vector<1x1x1xf32>
    %cst_89 = arith.constant 0.000000e+00 : f32
    %235 = arith.addf %cst_89, %234 : f32
    %236 = vector.extract_strided_slice %205 {offsets = [0, 1, 0], sizes = [16, 1, 256], strides = [1, 1, 1]} : vector<16x2x256xf32> to vector<16x1x256xf32>
    %237 = vector.broadcast %236 : vector<16x1x256xf32> to vector<16x4x256xf32>
    %238 = arith.mulf %213, %237 : vector<16x4x256xf32>
    %cst_90 = arith.constant dense<0.000000e+00> : vector<16x4xf32>
    %239 = vector.multi_reduction <add>, %238, %cst_90 [2] : vector<16x4x256xf32> to vector<16x4xf32>
    %240 = vector.extract_strided_slice %207 {offsets = [0, 1, 0], sizes = [16, 1, 4], strides = [1, 1, 1]} : vector<16x2x4xf32> to vector<16x1x4xf32>
    %241 = vector.shape_cast %240 : vector<16x1x4xf32> to vector<16x4xf32>
    %242 = arith.subf %239, %241 : vector<16x4xf32>
    %243 = arith.mulf %242, %204 : vector<16x4xf32>
    %244 = math.absf %243 : vector<16x4xf32>
    %cst_91 = arith.constant 1.000000e+00 : f32
    %245 = vector.broadcast %cst_91 : f32 to vector<16x4xf32>
    %246 = arith.cmpf olt, %244, %245 : vector<16x4xf32>
    %cst_92 = arith.constant 5.000000e-01 : f32
    %247 = vector.broadcast %cst_92 : f32 to vector<16x4xf32>
    %248 = arith.mulf %247, %243 : vector<16x4xf32>
    %249 = arith.mulf %248, %243 : vector<16x4xf32>
    %cst_93 = arith.constant 5.000000e-01 : f32
    %250 = vector.broadcast %cst_93 : f32 to vector<16x4xf32>
    %251 = arith.subf %244, %250 : vector<16x4xf32>
    %252 = arith.select %246, %249, %251 : vector<16x4xi1>, vector<16x4xf32>
    %253 = vector.shape_cast %252 : vector<16x4xf32> to vector<1x16x4xf32>
    %cst_94 = arith.constant dense<0.000000e+00> : vector<1xf32>
    %254 = vector.multi_reduction <add>, %253, %cst_94 [1, 2] : vector<1x16x4xf32> to vector<1xf32>
    %255 = vector.shape_cast %254 : vector<1xf32> to vector<1x1x1xf32>
    %256 = vector.extract %255[0, 0, 0] : f32 from vector<1x1x1xf32>
    %257 = arith.addf %235, %256 : f32
    %258 = vector.shape_cast %204 : vector<16x4xf32> to vector<1x16x4xf32>
    %cst_95 = arith.constant dense<0.000000e+00> : vector<1xf32>
    %259 = vector.multi_reduction <add>, %258, %cst_95 [1, 2] : vector<1x16x4xf32> to vector<1xf32>
    %260 = vector.shape_cast %259 : vector<1xf32> to vector<1x1x1xf32>
    %261 = vector.extract %260[0, 0, 0] : f32 from vector<1x1x1xf32>
    %cst_96 = arith.constant 2.000000e+00 : f32
    %262 = arith.mulf %261, %cst_96 : f32
    %cst_97 = arith.constant 9.99999974E-5 : f32
    %263 = arith.addf %262, %cst_97 : f32
    %264 = arith.divf %257, %263 : f32
    %c0_98 = arith.constant 0 : index
    %c0_99 = arith.constant 0 : index
    %265 = vector.load %arg13[%c0_98, %c0_99] : memref<1x128xf32, #tpu.memory_space<vmem>>, vector<1x128xf32>
    %c0_100 = arith.constant 0 : index
    %c0_101 = arith.constant 0 : index
    %266 = vector.load %arg14[%c0_100, %c0_101] : memref<1x128xf32, #tpu.memory_space<vmem>>, vector<1x128xf32>
    %267 = arith.subf %265, %266 : vector<1x128xf32>
    %268 = math.absf %267 : vector<1x128xf32>
    %cst_102 = arith.constant 1.000000e+00 : f32
    %269 = vector.broadcast %cst_102 : f32 to vector<1x128xf32>
    %270 = arith.cmpf olt, %268, %269 : vector<1x128xf32>
    %cst_103 = arith.constant 5.000000e-01 : f32
    %271 = vector.broadcast %cst_103 : f32 to vector<1x128xf32>
    %272 = arith.mulf %271, %267 : vector<1x128xf32>
    %273 = arith.mulf %272, %267 : vector<1x128xf32>
    %cst_104 = arith.constant 5.000000e-01 : f32
    %274 = vector.broadcast %cst_104 : f32 to vector<1x128xf32>
    %275 = arith.subf %268, %274 : vector<1x128xf32>
    %276 = arith.select %270, %273, %275 : vector<1x128xi1>, vector<1x128xf32>
    %277 = vector.shape_cast %276 : vector<1x128xf32> to vector<1x1x128xf32>
    %cst_105 = arith.constant dense<0.000000e+00> : vector<1xf32>
    %278 = vector.multi_reduction <add>, %277, %cst_105 [1, 2] : vector<1x1x128xf32> to vector<1xf32>
    %279 = vector.shape_cast %278 : vector<1xf32> to vector<1x1x1xf32>
    %280 = vector.extract %279[0, 0, 0] : f32 from vector<1x1x1xf32>
    %cst_106 = arith.constant 1.280000e+02 : f32
    %281 = arith.divf %280, %cst_106 : f32
    %c0_107 = arith.constant 0 : index
    %c0_108 = arith.constant 0 : index
    %282 = vector.load %arg15[%c0_107, %c0_108] : memref<10x128xf32, #tpu.memory_space<vmem>>, vector<10x128xf32>
    %c0_109 = arith.constant 0 : index
    %c0_110 = arith.constant 0 : index
    %283 = vector.load %arg16[%c0_109, %c0_110] : memref<10x128xf32, #tpu.memory_space<vmem>>, vector<10x128xf32>
    %284 = arith.subf %282, %283 : vector<10x128xf32>
    %285 = math.absf %284 : vector<10x128xf32>
    %cst_111 = arith.constant 1.000000e+00 : f32
    %286 = vector.broadcast %cst_111 : f32 to vector<10x128xf32>
    %287 = arith.cmpf olt, %285, %286 : vector<10x128xf32>
    %cst_112 = arith.constant 5.000000e-01 : f32
    %288 = vector.broadcast %cst_112 : f32 to vector<10x128xf32>
    %289 = arith.mulf %288, %284 : vector<10x128xf32>
    %290 = arith.mulf %289, %284 : vector<10x128xf32>
    %cst_113 = arith.constant 5.000000e-01 : f32
    %291 = vector.broadcast %cst_113 : f32 to vector<10x128xf32>
    %292 = arith.subf %285, %291 : vector<10x128xf32>
    %293 = arith.select %287, %290, %292 : vector<10x128xi1>, vector<10x128xf32>
    %294 = vector.shape_cast %293 : vector<10x128xf32> to vector<1x10x128xf32>
    %cst_114 = arith.constant dense<0.000000e+00> : vector<1xf32>
    %295 = vector.multi_reduction <add>, %294, %cst_114 [1, 2] : vector<1x10x128xf32> to vector<1xf32>
    %296 = vector.shape_cast %295 : vector<1xf32> to vector<1x1x1xf32>
    %297 = vector.extract %296[0, 0, 0] : f32 from vector<1x1x1xf32>
    %cst_115 = arith.constant 1.280000e+03 : f32
    %298 = arith.divf %297, %cst_115 : f32
    %cst_116 = arith.constant 1.000000e-01 : f32
    %299 = arith.mulf %cst_116, %128 : f32
    %300 = arith.addf %67, %299 : f32
    %301 = arith.addf %300, %201 : f32
    %cst_117 = arith.constant 1.000000e-01 : f32
    %302 = arith.mulf %cst_117, %264 : f32
    %303 = arith.addf %301, %302 : f32
    %304 = arith.addf %303, %281 : f32
    %305 = arith.addf %304, %298 : f32
    %c0_118 = arith.constant 0 : index
    %306 = memref.load %arg17[%c0_118] : memref<8xf32, #tpu.memory_space<smem>>
    memref.store %67, %arg17[%c0_118] : memref<8xf32, #tpu.memory_space<smem>>
    %c1 = arith.constant 1 : index
    %307 = memref.load %arg17[%c1] : memref<8xf32, #tpu.memory_space<smem>>
    memref.store %128, %arg17[%c1] : memref<8xf32, #tpu.memory_space<smem>>
    %c2 = arith.constant 2 : index
    %308 = memref.load %arg17[%c2] : memref<8xf32, #tpu.memory_space<smem>>
    memref.store %201, %arg17[%c2] : memref<8xf32, #tpu.memory_space<smem>>
    %c3 = arith.constant 3 : index
    %309 = memref.load %arg17[%c3] : memref<8xf32, #tpu.memory_space<smem>>
    memref.store %264, %arg17[%c3] : memref<8xf32, #tpu.memory_space<smem>>
    %c4 = arith.constant 4 : index
    %310 = memref.load %arg17[%c4] : memref<8xf32, #tpu.memory_space<smem>>
    memref.store %281, %arg17[%c4] : memref<8xf32, #tpu.memory_space<smem>>
    %c5 = arith.constant 5 : index
    %311 = memref.load %arg17[%c5] : memref<8xf32, #tpu.memory_space<smem>>
    memref.store %298, %arg17[%c5] : memref<8xf32, #tpu.memory_space<smem>>
    %c6 = arith.constant 6 : index
    %312 = memref.load %arg17[%c6] : memref<8xf32, #tpu.memory_space<smem>>
    memref.store %305, %arg17[%c6] : memref<8xf32, #tpu.memory_space<smem>>
    %cst_119 = arith.constant 0.000000e+00 : f32
    %c7 = arith.constant 7 : index
    %313 = memref.load %arg17[%c7] : memref<8xf32, #tpu.memory_space<smem>>
    memref.store %cst_119, %arg17[%c7] : memref<8xf32, #tpu.memory_space<smem>>
    return
  }
}

</mosaic_0001>

<bundles_post_ra>
// kernel: tpu_custom_call.1
= control target key start
LH: loop header
LB: loop body
LE: loop exit
PB: predicated region body
PF: predicated region fallthrough
CT: control target
= control target key end

     0   :  { %s4674_s0 = inlined_call_operand.vmem [shape: f32[8,256], index: 0, kind: input, shape index: {}]   ;;  %s4675_s1 = inlined_call_operand.hbm [shape: f32[8,256], index: 1, kind: input, shape index: {}]   ;;  %s4676_s2 = inlined_call_operand.hbm [shape: f32[2,2,256], index: 2, kind: input, shape index: {}]   ;;  %s4677_s3 = inlined_call_operand.vmem [shape: s32[2,8], index: 3, kind: input, shape index: {}]   ;;  %s4678_s4 = inlined_call_operand.hbm [shape: f32[2,2,8], index: 4, kind: input, shape index: {}]   ;;  %s4679_s5 = inlined_call_operand.hbm [shape: f32[2,8], index: 5, kind: input, shape index: {}]   ;;  %s4680_s6 = inlined_call_operand.vmem [shape: f32[16,256], index: 6, kind: input, shape index: {}]   ;;  %s4681_s7 = inlined_call_operand.hbm [shape: f32[16,256], index: 7, kind: input, shape index: {}]   ;;  %s4682_s8 = inlined_call_operand.vmem [shape: f32[16,1], index: 8, kind: input, shape index: {}]   ;;  %s4683_s9 = inlined_call_operand.vmem [shape: f32[16,2,256], index: 9, kind: input, shape index: {}]   ;;  %s4684_s10 = inlined_call_operand.vmem [shape: s32[16,4], index: 10, kind: input, shape index: {}]   ;;  %s4685_s11 = inlined_call_operand.vmem [shape: f32[16,2,4], index: 11, kind: input, shape index: {}]   ;;  %s4686_s12 = inlined_call_operand.vmem [shape: f32[16,4], index: 12, kind: input, shape index: {}]   ;;  %s4687_s13 = inlined_call_operand.hbm [shape: f32[1,128], index: 13, kind: input, shape index: {}]   ;;  %s4688_s14 = inlined_call_operand.vmem [shape: f32[1,128], index: 14, kind: input, shape index: {}]   ;;  %s4689_s15 = inlined_call_operand.vmem [shape: f32[10,128], index: 15, kind: input, shape index: {}]   ;;  %s4690_s16 = inlined_call_operand.vmem [shape: f32[10,128], index: 16, kind: input, shape index: {}]   ;;  %s4691_s17 = inlined_call_operand.hbm [shape: f32[8], index: 17, kind: output, shape index: {}]  }
   0x1   :  { %4714 = sst [smem:[#allocation40_spill]] %s4674_s0 }
   0x2   :  { %4715 = sst [smem:[#allocation41_spill]] %s4675_s1 }
   0x3   :  { %4716 = sst [smem:[#allocation42_spill]] %s4691_s17 }
   0x4   :  { %22 = vsyncpa [#allocation3], 0 }
   0x5   :  { %23 = vsyncpa [#allocation6], 0 }
   0x6   :  { %24 = vsyncpa [#allocation9], 0 }
   0x7   :  { %25 = vsyncpa [#allocation12], 0 }
   0x8   :  { %26 = vsyncpa [#allocation4], 0  ;;  %s3249_s24 = smov [#allocation5]   ;;  %s3097_s28 = scalar_lea.hbm %s4676_s2, 128 }
   0x9   :  { %s44_s25 = sshll.u32 %s3249_s24, 4  ;;  %p3098_p0 = scmp.ne.s32.totalorder %s4676_s2, %s3097_s28  ;;  %s45_s25 = int_to_ptr.vmem [resolvable:$true] %s44_s25 }
   0xa   :  { %p3101_p1 = scmp.lt.u32.totalorder %s3097_s28, %s4676_s2 }
   0xc   :  { %p3103_p2 = pnand %p3101_p1, %p3098_p0 }
   0xe   :  { %3106 = shalt.err (!%p3103_p2)
}
   0xf   :  { %s3107_s19 = scalar_lea.vmem %s45_s25, 128  ;;  %p3112_p4 = scmp.lt.s32.totalorder %s45_s25, %s45_s25 }
  0x10   :  { %p3108_p3 = scmp.ne.s32.totalorder %s45_s25, %s3107_s19  ;;  %p3113_p5 = scmp.lt.s32.totalorder %s3107_s19, %s3107_s19 }
  0x12   :  { %p3114_p6 = por %p3113_p5, %p3112_p4 }
  0x14   :  { %p3115_p7 = pnand %p3114_p6, %p3108_p3 }
  0x16   :  { %3118 = shalt.err (!%p3115_p7)
}
  0x17   :  { %s3250_s1 = smov 64   ;;  %s3251_s20 = smov 4  }
  0x18   :  { %50 = dma.hbm_to_vmem [thread:$0]  %s4676_s2, 128, %s45_s25, [#allocation6], %s3250_s1, %s3250_s1, %s3251_s20  }
  0x19   :  { %s3252_s23 = smov [#allocation8]   ;;  %s3253_s26 = smov [#allocation2]  }
  0x1a   :  { %s71_s24 = sshll.u32 %s3252_s23, 4  ;;  %s35_s27 = sshll.u32 %s3253_s26, 4  ;;  %s72_s24 = int_to_ptr.vmem [resolvable:$true] %s71_s24  ;;  %s36_s27 = int_to_ptr.vmem [resolvable:$true] %s35_s27 }
  0x1b   :  { %s3119_s0 = scalar_lea.hbm %s4679_s5, 32 }
  0x1c   :  { %p3120_p8 = scmp.ne.s32.totalorder %s4679_s5, %s3119_s0  ;;  %p3123_p9 = scmp.lt.u32.totalorder %s3119_s0, %s4679_s5 }
  0x1e   :  { %p3125_p10 = pnand %p3123_p9, %p3120_p8 }
  0x20   :  { %3128 = shalt.err (!%p3125_p10)
}
  0x21   :  { %s3129_s2 = scalar_lea.vmem %s72_s24, 32  ;;  %p3134_p12 = scmp.lt.s32.totalorder %s72_s24, %s72_s24 }
  0x22   :  { %p3130_p11 = scmp.ne.s32.totalorder %s72_s24, %s3129_s2  ;;  %p3135_p13 = scmp.lt.s32.totalorder %s3129_s2, %s3129_s2 }
  0x24   :  { %p3136_p0 = por %p3135_p13, %p3134_p12 }
  0x26   :  { %p3137_p1 = pnand %p3136_p0, %p3130_p11 }
  0x28   :  { %3140 = shalt.err (!%p3137_p1)
}
  0x29   :  { %74 = dma.hbm_to_vmem [thread:$0]  %s4679_s5, 32, %s72_s24, [#allocation9]  }
  0x2a   :  { %s4717_s22 = sld [smem:[#allocation41_spill]] }
  0x30   :  { %s3141_s23 = scalar_lea.hbm %s4717_s22, 256 }
  0x31   :  { %p3142_p2 = scmp.ne.s32.totalorder %s4717_s22, %s3141_s23  ;;  %p3145_p3 = scmp.lt.u32.totalorder %s3141_s23, %s4717_s22 }
  0x33   :  { %p3147_p4 = pnand %p3145_p3, %p3142_p2 }
  0x35   :  { %3150 = shalt.err (!%p3147_p4)
}
  0x36   :  { %s3151_s0 = scalar_lea.vmem %s36_s27, 256  ;;  %p3156_p6 = scmp.lt.s32.totalorder %s36_s27, %s36_s27 }
  0x37   :  { %p3152_p5 = scmp.ne.s32.totalorder %s36_s27, %s3151_s0  ;;  %p3157_p7 = scmp.lt.s32.totalorder %s3151_s0, %s3151_s0 }
  0x39   :  { %p3158_p8 = por %p3157_p7, %p3156_p6 }
  0x3b   :  { %p3159_p9 = pnand %p3158_p8, %p3152_p5 }
  0x3d   :  { %3162 = shalt.err (!%p3159_p9)
}
  0x3e   :  { %38 = dma.hbm_to_vmem [thread:$0]  %s4717_s22, 256, %s36_s27, [#allocation3]  }
  0x3f   :  { %s3254_s30 = smov [#allocation7]   ;;  %s3163_s25 = scalar_lea.hbm %s4678_s4, 64 }
  0x40   :  { %s58_s18 = sshll.u32 %s3254_s30, 4  ;;  %p3164_p10 = scmp.ne.s32.totalorder %s4678_s4, %s3163_s25  ;;  %s59_s18 = int_to_ptr.vmem [resolvable:$true] %s58_s18 }
  0x41   :  { %p3167_p11 = scmp.lt.u32.totalorder %s3163_s25, %s4678_s4 }
  0x43   :  { %p3169_p12 = pnand %p3167_p11, %p3164_p10 }
  0x45   :  { %3172 = shalt.err (!%p3169_p12)
}
  0x46   :  { %s3173_s17 = scalar_lea.vmem %s59_s18, 64  ;;  %p3178_p0 = scmp.lt.s32.totalorder %s59_s18, %s59_s18 }
  0x47   :  { %p3174_p13 = scmp.ne.s32.totalorder %s59_s18, %s3173_s17  ;;  %p3179_p1 = scmp.lt.s32.totalorder %s3173_s17, %s3173_s17 }
  0x49   :  { %p3180_p2 = por %p3179_p1, %p3178_p0 }
  0x4b   :  { %p3181_p3 = pnand %p3180_p2, %p3174_p13 }
  0x4d   :  { %3184 = shalt.err (!%p3181_p3)
}
  0x4e   :  { %s3255_s27 = smov 32   ;;  %s3256_s22 = smov 2  }
  0x4f   :  { %64 = dma.hbm_to_vmem [thread:$0]  %s4678_s4, 64, %s59_s18, [#allocation6], %s3255_s27, %s3255_s27, %s3256_s22  }
  0x50   :  { %s3257_s29 = smov [#allocation10]   ;;  %s3185_s30 = scalar_lea.hbm %s4681_s7, 512 }
  0x51   :  { %s82_s0 = sshll.u32 %s3257_s29, 4  ;;  %p3186_p4 = scmp.ne.s32.totalorder %s4681_s7, %s3185_s30  ;;  %s83_s0 = int_to_ptr.vmem [resolvable:$true] %s82_s0 }
  0x52   :  { %p3189_p5 = scmp.lt.u32.totalorder %s3185_s30, %s4681_s7 }
  0x54   :  { %p3191_p6 = pnand %p3189_p5, %p3186_p4 }
  0x56   :  { %3194 = shalt.err (!%p3191_p6)
}
  0x57   :  { %s3195_s20 = scalar_lea.vmem %s83_s0, 512  ;;  %p3200_p8 = scmp.lt.s32.totalorder %s83_s0, %s83_s0 }
  0x58   :  { %p3196_p7 = scmp.ne.s32.totalorder %s83_s0, %s3195_s20  ;;  %p3201_p9 = scmp.lt.s32.totalorder %s3195_s20, %s3195_s20 }
  0x5a   :  { %p3202_p10 = por %p3201_p9, %p3200_p8 }
  0x5c   :  { %p3203_p11 = pnand %p3202_p10, %p3196_p7 }
  0x5e   :  { %3206 = shalt.err (!%p3203_p11)
}
  0x5f   :  { %s3258_s4 = smov 256   ;;  %s3259_s18 = smov 16  }
  0x60   :  { %88 = dma.hbm_to_vmem [thread:$0]  %s4681_s7, 512, %s83_s0, [#allocation9], %s3258_s4, %s3258_s4, %s3259_s18  }
  0x61   :  { %s3260_s17 = smov [#allocation11]   ;;  %s3207_s28 = scalar_lea.hbm %s4687_s13, 16 }
  0x62   :  { %s105_s27 = sshll.u32 %s3260_s17, 4  ;;  %p3208_p12 = scmp.ne.s32.totalorder %s4687_s13, %s3207_s28  ;;  %s106_s27 = int_to_ptr.vmem [resolvable:$true] %s105_s27 }
  0x63   :  { %p3211_p13 = scmp.lt.u32.totalorder %s3207_s28, %s4687_s13 }
  0x65   :  { %p3213_p0 = pnand %p3211_p13, %p3208_p12 }
  0x67   :  { %3216 = shalt.err (!%p3213_p0)
}
  0x68   :  { %s3217_s19 = scalar_lea.vmem %s106_s27, 16  ;;  %s3221_s7 = scalar_lea.vmem %s106_s27, 32 }
  0x69   :  { %p3218_p1 = scmp.ne.s32.totalorder %s106_s27, %s3217_s19  ;;  %p3222_p2 = scmp.lt.s32.totalorder %s106_s27, %s106_s27 }
  0x6a   :  { %p3223_p3 = scmp.lt.s32.totalorder %s3221_s7, %s3217_s19 }
  0x6c   :  { %p3224_p4 = por %p3223_p3, %p3222_p2 }
  0x6e   :  { %p3225_p5 = pnand %p3224_p4, %p3218_p1 }
  0x70   :  { %3228 = shalt.err (!%p3225_p5)
}
  0x71   :  { %108 = dma.hbm_to_vmem [thread:$0]  %s4687_s13, 16, %s106_s27, [#allocation12]  }
  0x72   :  { %3239 = dma.done.wait [#allocation3], 256  }
  0x73   :  { %3240 = vsyncadd [#allocation3], 4294967040 }
  0x74   :  { %3241 = dma.done.wait [#allocation6], 192  }
  0x75   :  { %3242 = vsyncadd [#allocation6], 4294967104 }
  0x76   :  { %3243 = dma.done.wait [#allocation9], 544  }
  0x77   :  { %3244 = vsyncadd [#allocation9], 4294966752 }
  0x78   :  { %3245 = dma.done.wait [#allocation12], 16  }
  0x79   :  { %3246 = vsyncadd [#allocation12], 4294967280  ;;  %v255_v0 = vlaneseq  ;;  %v251_v3 = vld [vmem:[%s4677_s3] sm:$0x3]  ;;  %v3439_v5 = vld [vmem:[#allocation2 + $0x8] sm:$0xff]  ;;  %s4719_s4 = sld [smem:[#allocation40_spill]] }
  0x7a   :  { %v3437_v4 = vld [vmem:[#allocation2] sm:$0xff]  ;;  %vm176_vm1 = vcmp.eq.f32.partialorder %v3439_v5, 1.0  ;;  %v4695_v10 = vmov 0.0   ;;  %v3459_v13 = vld [vmem:[#allocation7 + $0x2] sm:$0x3]  ;;  %v188_v48 = vsub.f32 1.0, %v3439_v5 }
  0x7b   :  { %v3429_v1 = vshrl.u32 %v255_v0, 7  ;;  %vm175_vm0 = vcmp.eq.f32.partialorder %v3437_v4, 1.0  ;;  %v3457_v12 = vsel %vm176_vm1, 1.0, %v4695_v10  ;;  %v252_v24 = vld [vmem:[#allocation7] sm:$0x3]  ;;  %v187_v47 = vsub.f32 1.0, %v3437_v4 }
  0x7c   :  { %v3454_v11 = vsel %vm175_vm0, 1.0, %v4695_v10  ;;  %v3467_v29 = vld [vmem:[#allocation8] sm:$0x3]  ;;  %v190_v56 = vmul.f32 %v188_v48, %v188_v48  ;;  %vm181_vm2 = vcmp.lt.f32.partialorder %v3437_v4, 1.0  ;;  %vm182_vm3 = vcmp.lt.f32.partialorder %v3439_v5, 1.0  ;;  %s3263_s30 = smov 1.0  }
  0x7d   :  { %4718 = vst [vmem:[#allocation19_spill] sm:$0xff] %v3429_v1  ;;  %v3432_v2 = vsub.s32 1, %v3429_v1  ;;  %v3442_v6 = vsub.s32 0, %v3429_v1  ;;  %v229_v14 = vadd.f32 %v3457_v12, %v3454_v11  ;;  %v189_v53 = vmul.f32 %v187_v47, %v187_v47 }
  0x7e   :  { %vm402_vm8 = vcmask 58368  }
  0x7f   :  { %v268_v7 = vrot.slane %v251_v3, %v3432_v2  ;;  %v133_v8 = vld [vmem:[%s4719_s4] sm:$0xff]  ;;  %v134_v9 = vld [vmem:[%s4719_s4 + $0x8] sm:$0xff]  ;;  %v344_v17 = vrot.slane %v3459_v13, %v3442_v6  ;;  %230 = vadd.xlane.f32.xlu1 %v229_v14  ;;  %v261_v22 = vrot.slane %v251_v3, %v3442_v6  ;;  %v337_v28 = vrot.slane %v252_v24, %v3442_v6 }
  0x80   :  { %v139_v15 = vand.u32 2147483647, %v133_v8  ;;  %v140_v16 = vand.u32 2147483647, %v134_v9  ;;  %v356_v30 = vrot.slane %v3467_v29, %v3442_v6  ;;  %v363_v31 = vrot.slane %v3467_v29, %v3432_v2 }
  0x81   :  { %270 = vbcast.lane.b32.xlu0 %v268_v7, 256  ;;  %v137_v32 = vmax.f32 %v133_v8, 0.0  ;;  %v138_v34 = vmax.f32 %v134_v9, 0.0  ;;  %v463_v38 = vrot.slane %v252_v24, %v3432_v2  ;;  %v191_v7 = vmul.f32 %v189_v53, %v189_v53 }
  0x82   :  { %v141_v18 = vsub.f32 0.0, %v139_v15  ;;  %v142_v19 = vsub.f32 0.0, %v140_v16  ;;  %v192_v15 = vmul.f32 %v190_v56, %v190_v56 }
  0x84   :  { %v143_v20 = vmul.f32 1.442695, %v141_v18  ;;  %v145_v21 = vmul.f32 1.442695, %v142_v19 }
  0x85   :  { %346 = vbcast.lane.b32.xlu0 %v344_v17, 256 }
  0x86   :  { %3053 = vpow2.f32 %v143_v20  ;;  %v2913_v20 = vsel %vm181_vm2, 1.0, %v4695_v10 }
  0x87   :  { %3055 = vpow2.f32 %v145_v21 }
  0x90   :  { %v3054_v23 = vpop.eup %3053  ;;  %263 = vbcast.lane.b32.xlu1 %v261_v22, 256 }
  0x91   :  { %v3056_v25 = vpop.eup %3055  ;;  %v147_v26 = vadd.f32 1.0, %v3054_v23  ;;  %v2914_v23 = vsel %vm182_vm3, 1.0, %v4695_v10  ;;  %vm1337_vm3 = vcmask 1043456  }
  0x92   :  { %v148_v27 = vadd.f32 1.0, %v3056_v25 }
  0x93   :  { %3057 = vlog2.f32 %v147_v26 }
  0x94   :  { %3059 = vlog2.f32 %v148_v27  ;;  %339 = vbcast.lane.b32.xlu1 %v337_v28, 256 }
  0x98   :  { %358 = vbcast.lane.b32.xlu1 %v356_v30, 256 }
  0x9c   :  { %365 = vbcast.lane.b32.xlu1 %v363_v31, 256 }
  0x9d   :  { %v3058_v33 = vpop.eup %3057 }
  0x9e   :  { %v3060_v35 = vpop.eup %3059  ;;  %v150_v36 = vmul.f32 0.6931472, %v3058_v33  ;;  %v3483_v33 = vsub.s32 2, %v3429_v1 }
  0x9f   :  { %v152_v37 = vmul.f32 0.6931472, %v3060_v35  ;;  %v3486_v35 = vand.u32 127, %v255_v0 }
  0xa0   :  { %v153_v39 = vadd.f32 %v150_v36, %v137_v32  ;;  %465 = vbcast.lane.b32.xlu1 %v463_v38, 256  ;;  %v3262_v32 = vmov 0  }
  0xa1   :  { %v154_v40 = vadd.f32 %v152_v37, %v138_v34  ;;  %3051 = vset.pattern.permute.xlu0 %v3262_v32  ;;  %3052 = vset.pattern.permute.xlu1 %v3262_v32  ;;  %v250_v34 = vld [vmem:[#allocation5 + $0x4] sm:$0xf] }
  0xa2   :  { %v155_v41 = vsub.f32 %v133_v8, %v153_v39  ;;  %v157_v45 = vsub.f32 0.0, %v153_v39  ;;  %v301_v36 = vrot.slane %v250_v34, %v3483_v33 }
  0xa3   :  { %v156_v42 = vsub.f32 %v134_v9, %v154_v40  ;;  %v158_v46 = vsub.f32 0.0, %v154_v40 }
  0xa4   :  { %v159_v43 = vmul.f32 1.442695, %v155_v41  ;;  %v171_v49 = vmax.f32 %v157_v45, -9.2103405  ;;  %v167_v55 = vmax.f32 %v155_v41, -9.2103405  ;;  %v321_v38 = vrot.slane %v301_v36, %v3442_v6 }
  0xa5   :  { %v161_v44 = vmul.f32 1.442695, %v156_v42  ;;  %v172_v51 = vmax.f32 %v158_v46, -9.2103405  ;;  %v168_v58 = vmax.f32 %v156_v42, -9.2103405 }
  0xa6   :  { %3061 = vpow2.f32 %v159_v43  ;;  %v173_v60 = vmin.f32 %v171_v49, -0.000100005  ;;  %v169_v63 = vmin.f32 %v167_v55, -0.000100005  ;;  %v3500_v45 = vsub.s32 3, %v3429_v1 }
  0xa7   :  { %3063 = vpow2.f32 %v161_v44  ;;  %v174_v62 = vmin.f32 %v172_v51, -0.000100005  ;;  %v170_v9 = vmin.f32 %v168_v58, -0.000100005  ;;  %v249_v44 = vld [vmem:[#allocation5] sm:$0xf]  ;;  %v425_v51 = vrot.slane %v250_v34, %v3432_v2 }
  0xa8   :  { %v289_v46 = vrot.slane %v249_v44, %v3442_v6  ;;  %v293_v47 = vrot.slane %v249_v44, %v3483_v33  ;;  %v417_v48 = vrot.slane %v249_v44, %v3432_v2  ;;  %v421_v49 = vrot.slane %v249_v44, %v3500_v45 }
  0xa9   :  { %v445_v58 = vrot.slane %v425_v51, %v3432_v2  ;;  %v3540_v44 = vsub.s32 4, %v3429_v1 }
  0xaa   :  { %v309_v53 = vrot.slane %v289_v46, %v3442_v6  ;;  %v437_v55 = vrot.slane %v417_v48, %v3432_v2  ;;  %v441_v56 = vrot.slane %v421_v49, %v3432_v2  ;;  %v3543_v46 = vsub.s32 5, %v3429_v1  ;;  %v537_v49 = vld [vmem:[%s4682_s8] sm:$0xff] }
  0xab   :  { %4721 = vst [vmem:[#allocation21_spill] sm:$0xff] %v3540_v44 }
  0xac   :  { %4722 = vst [vmem:[#allocation22_spill] sm:$0xff] %v3543_v46 }
  0xb0   :  { %v3062_v50 = vpop.eup %3061 }
  0xb1   :  { %v3064_v52 = vpop.eup %3063  ;;  %v163_v54 = vmax.f32 %v3062_v50, 0.0001 }
  0xb2   :  { %v164_v57 = vmax.f32 %v3064_v52, 0.0001  ;;  %v429_v52 = vrot.slane %v250_v34, %v3500_v45 }
  0xb3   :  { %v165_v59 = vmin.f32 %v163_v54, 0.9999  ;;  %v313_v54 = vrot.slane %v293_v47, %v3442_v6 }
  0xb4   :  { %v166_v61 = vmin.f32 %v164_v57, 0.9999 }
  0xb5   :  { %v193_v3 = vsub.f32 1.0, %v165_v59  ;;  %v211_v8 = vmul.f32 %v165_v59, %v165_v59  ;;  %v449_v59 = vrot.slane %v429_v52, %v3432_v2 }
  0xb6   :  { %v194_v14 = vsub.f32 1.0, %v166_v61  ;;  %v212_v16 = vmul.f32 %v166_v61, %v166_v61 }
  0xb7   :  { %v195_v17 = vmul.f32 %v193_v3, %v193_v3  ;;  %v213_v18 = vmul.f32 %v211_v8, %v173_v60 }
  0xb8   :  { %v196_v19 = vmul.f32 %v194_v14, %v194_v14  ;;  %v214_v21 = vmul.f32 %v212_v16, %v174_v62 }
  0xb9   :  { %v197_v22 = vmul.f32 %v195_v17, %v169_v63  ;;  %v215_v4 = vmul.f32 %v213_v18, %v191_v7  ;;  %v3521_v17 = vld [vmem:[%s4684_s10] sm:$0xff] }
  0xba   :  { %v198_v24 = vmul.f32 %v196_v19, %v170_v9  ;;  %v216_v5 = vmul.f32 %v214_v21, %v192_v15  ;;  %v796_v18 = vrot.slane %v3521_v17, %v3442_v6  ;;  %v803_v19 = vrot.slane %v3521_v17, %v3432_v2 }
  0xbb   :  { %v199_v25 = vmul.f32 %v3454_v11, %v197_v22  ;;  %v217_v26 = vmul.f32 %v2913_v20, %v215_v4  ;;  %v297_v11 = vrot.slane %v250_v34, %v3442_v6  ;;  %v776_v20 = vld [vmem:[%s4684_s10 + $0x8] sm:$0xff]  ;;  %v470_v22 = vrot.slane %v3459_v13, %v3432_v2 }
  0xbc   :  { %v200_v27 = vmul.f32 %v3457_v12, %v198_v24  ;;  %v218_v28 = vmul.f32 %v2914_v23, %v216_v5  ;;  %v3491_v12 = vadd.s32 128, %v3486_v35  ;;  %v859_v21 = vrot.slane %v776_v20, %v3432_v2 }
  0xbd   :  { %v317_v37 = vrot.slane %v297_v11, %v3442_v6  ;;  %v866_v36 = vrot.slane %v776_v20, %v3483_v33  ;;  %v880_v47 = vrot.slane %v776_v20, %v3540_v44  ;;  %v887_v48 = vrot.slane %v776_v20, %v3543_v46 }
  0xbe   :  { %v201_v30 = vadd.f32 %v200_v27, %v199_v25  ;;  %v219_v31 = vadd.f32 %v218_v28, %v217_v26  ;;  %v521_v27 = vsel %vm402_vm8, %v3467_v29, 0.0  ;;  %v852_v51 = vrot.slane %v776_v20, %v3442_v6 }
  0xc0   :  { %202 = vadd.xlane.f32.xlu0 %v201_v30 }
  0xc4   :  { %220 = vadd.xlane.f32.xlu0 %v219_v31 }
  0xf3   :  { %v271_v39 = vpop.permute.xlu0 %270 }
  0xf4   :  { %vm274_vm4 = vcmp.eq.s32.totalorder %v3486_v35, %v271_v39  ;;  %vm275_vm5 = vcmp.eq.s32.totalorder %v3491_v12, %v271_v39  ;;  %v873_v39 = vrot.slane %v776_v20, %v3500_v45 }
  0xf5   :  { %v2917_v40 = vsel %vm274_vm4, 1.0, %v4695_v10  ;;  %v2918_v0 = vsel %vm275_vm5, 1.0, %v4695_v10 }
  0xf6   :  { %v324_v41 = vmul.f32 %v2917_v40, %v317_v37  ;;  %v325_v42 = vmul.f32 %v2918_v0, %v321_v38  ;;  %v452_v14 = vmul.f32 %v2917_v40, %v445_v58  ;;  %v453_v15 = vmul.f32 %v2918_v0, %v449_v59 }
  0xf7   :  { %v3533_v23 = vpop.permute.xlu0 %346  ;;  %v831_v58 = vrot.slane %v3521_v17, %v3543_v46 }
  0xf8   :  { %v329_v43 = vadd.f32 %v325_v42, %v324_v41  ;;  %v457_v16 = vadd.f32 %v453_v15, %v452_v14  ;;  %4720 = vst [vmem:[#allocation20_spill] sm:$0xff] %v3533_v23 }
  0xfa   :  { %330 = vadd.xlane.f32.xlu0 %v329_v43 }
 0x10c   :  { %v231_v50 = vpop.xlane.xlu1 %230 }
 0x10d   :  { %v232_v4 = vrot.slane %v231_v50, 4 }
 0x10f   :  { %v233_v24 = vadd.f32 %v232_v4, %v231_v50  ;;  %v3551_v50 = vsub.s32 6, %v3429_v1 }
 0x110   :  { %v264_v57 = vpop.permute.xlu1 %263 }
 0x111   :  { %vm272_vm6 = vcmp.eq.s32.totalorder %v3486_v35, %v264_v57  ;;  %vm273_vm7 = vcmp.eq.s32.totalorder %v3491_v12, %v264_v57  ;;  %v234_v30 = vrot.slane %v233_v24, 2  ;;  %4723 = vst [vmem:[#allocation23_spill] sm:$0xff] %v3551_v50  ;;  %v894_v52 = vrot.slane %v776_v20, %v3551_v50 }
 0x112   :  { %v2915_v60 = vsel %vm272_vm6, 1.0, %v4695_v10  ;;  %v2916_v61 = vsel %vm273_vm7, 1.0, %v4695_v10  ;;  %v824_v57 = vrot.slane %v3521_v17, %v3540_v44  ;;  %v838_v59 = vrot.slane %v3521_v17, %v3551_v50 }
 0x113   :  { %v322_v62 = vmul.f32 %v2915_v60, %v309_v53  ;;  %v323_v63 = vmul.f32 %v2916_v61, %v313_v54  ;;  %v450_v3 = vmul.f32 %v2915_v60, %v437_v55  ;;  %v451_v7 = vmul.f32 %v2916_v61, %v441_v56  ;;  %v538_v61 = vld [vmem:[%s4682_s8 + $0x8] sm:$0xff] }
 0x114   :  { %v235_v11 = vadd.f32 %v234_v30, %v233_v24  ;;  %v3556_v53 = vsub.s32 7, %v3429_v1  ;;  %v810_v54 = vrot.slane %v3521_v17, %v3483_v33  ;;  %v817_v56 = vrot.slane %v3521_v17, %v3500_v45 }
 0x115   :  { %v326_v8 = vadd.f32 %v323_v63, %v322_v62  ;;  %v454_v9 = vadd.f32 %v451_v7, %v450_v3  ;;  %v539_v63 = vld [vmem:[%s4680_s6] sm:$0xff]  ;;  %v540_v3 = vld [vmem:[%s4680_s6 + $0x8] sm:$0xff] }
 0x116   :  { %v236_v41 = vrot.slane %v235_v11, 1  ;;  %4724 = vst [vmem:[#allocation24_spill] sm:$0xff] %v3556_v53  ;;  %v901_v55 = vrot.slane %v776_v20, %v3556_v53  ;;  %v845_v60 = vrot.slane %v3521_v17, %v3556_v53  ;;  %v551_v7 = vand.u32 2147483647, %v539_v63 }
 0x117   :  { %327 = vadd.xlane.f32.xlu1 %v326_v8  ;;  %455 = vadd.xlane.f32.xlu0 %v454_v9  ;;  %v552_v8 = vand.u32 2147483647, %v540_v3 }
 0x118   :  { %v237_v43 = vadd.f32 %v236_v41, %v235_v11  ;;  %v555_v9 = vsub.f32 0.0, %v551_v7 }
 0x119   :  { %v556_v15 = vsub.f32 0.0, %v552_v8 }
 0x11b   :  { %458 = vadd.xlane.f32.xlu0 %v457_v16  ;;  %v559_v16 = vmul.f32 1.442695, %v555_v9  ;;  %v561_v17 = vmul.f32 1.442695, %v556_v15  ;;  %v543_v15 = vld [vmem:[#allocation10] sm:$0xff] }
 0x11c   :  { %vm635_vm9 = vcmp.lt.f32.partialorder %v543_v15, 1.0  ;;  %vm623_vm11 = vcmp.eq.f32.partialorder %v543_v15, 1.0 }
 0x128   :  { %798 = vbcast.lane.b32.xlu1 %v796_v18, 256  ;;  %v541_v18 = vld [vmem:[%s4680_s6 + $0x10] sm:$0xff] }
 0x129   :  { %v553_v20 = vand.u32 2147483647, %v541_v18 }
 0x12c   :  { %805 = vbcast.lane.b32.xlu1 %v803_v19, 256  ;;  %v542_v19 = vld [vmem:[%s4680_s6 + $0x18] sm:$0xff] }
 0x130   :  { %861 = vbcast.lane.b32.xlu1 %v859_v21, 256  ;;  %v554_v21 = vand.u32 2147483647, %v542_v19 }
 0x131   :  { %472 = vbcast.lane.b32.xlu0 %v470_v22, 256  ;;  %v557_v22 = vsub.f32 0.0, %v553_v20 }
 0x132   :  { %v558_v4 = vsub.f32 0.0, %v554_v21 }
 0x134   :  { %868 = vbcast.lane.b32.xlu1 %v866_v36, 256  ;;  %v547_v36 = vmax.f32 %v539_v63, 0.0 }
 0x138   :  { %875 = vbcast.lane.b32.xlu1 %v873_v39, 256 }
 0x13c   :  { %882 = vbcast.lane.b32.xlu1 %v880_v47, 256 }
 0x140   :  { %889 = vbcast.lane.b32.xlu1 %v887_v48, 256 }
 0x144   :  { %896 = vbcast.lane.b32.xlu1 %v894_v52, 256 }
 0x148   :  { %903 = vbcast.lane.b32.xlu1 %v901_v55, 256 }
 0x14d   :  { %v203_v5 = vpop.xlane.xlu0 %202 }
 0x14e   :  { %v204_v25 = vrot.slane %v203_v5, 4 }
 0x150   :  { %v205_v26 = vadd.f32 %v204_v25, %v203_v5  ;;  %522 = vadd.xlane.f32.xlu0 %v521_v27  ;;  %v563_v5 = vmul.f32 1.442695, %v557_v22  ;;  %v565_v25 = vmul.f32 1.442695, %v558_v4  ;;  %v665_v22 = vsub.f32 1.0, %v543_v15 }
 0x151   :  { %v221_v28 = vpop.xlane.xlu0 %220 }
 0x152   :  { %v222_v31 = vrot.slane %v221_v28, 4  ;;  %v206_v32 = vrot.slane %v205_v26, 2 }
 0x154   :  { %v223_v34 = vadd.f32 %v222_v31, %v221_v28  ;;  %v207_v13 = vadd.f32 %v206_v32, %v205_v26 }
 0x156   :  { %v208_v37 = vrot.slane %v207_v13, 1  ;;  %v224_v38 = vrot.slane %v223_v34, 2 }
 0x158   :  { %v209_v40 = vadd.f32 %v208_v37, %v207_v13  ;;  %v225_v0 = vadd.f32 %v224_v38, %v223_v34  ;;  %v548_v38 = vmax.f32 %v540_v3, 0.0 }
 0x15a   :  { %2998 = vpush %v209_v40  ;;  %v226_v29 = vrot.slane %v225_v0, 1 }
 0x15c   :  { %v227_v42 = vadd.f32 %v226_v29, %v225_v0 }
 0x15e   :  { %3000 = vpush %v227_v42 }
 0x15f   :  { %3002 = vpush %v237_v43 }
 0x166   :  { %649 = vperm.xlu0 %3051, %v537_v49   ;;  %v549_v49 = vmax.f32 %v541_v18, 0.0 }
 0x16a   :  { %854 = vbcast.lane.b32.xlu0 %v852_v51, 256 }
 0x16e   :  { %812 = vbcast.lane.b32.xlu0 %v810_v54, 256  ;;  %v550_v54 = vmax.f32 %v542_v19, 0.0 }
 0x172   :  { %819 = vbcast.lane.b32.xlu0 %v817_v56, 256 }
 0x176   :  { %826 = vbcast.lane.b32.xlu0 %v824_v57, 256 }
 0x17a   :  { %833 = vbcast.lane.b32.xlu0 %v831_v58, 256 }
 0x17e   :  { %840 = vbcast.lane.b32.xlu0 %v838_v59, 256 }
 0x182   :  { %847 = vbcast.lane.b32.xlu0 %v845_v60, 256 }
 0x186   :  { %654 = vperm.xlu0 %3051, %v538_v61  }
 0x187   :  { %v3602_v48 = vpop.xlane.xlu0 %330 }
 0x188   :  { %4725 = vst [vmem:[#allocation25_spill] sm:$0xff] %v3602_v48 }
 0x18b   :  { %s3574_s29 = spop %2998 }
 0x18f   :  { %s3576_s5 = spop %3000 }
 0x190   :  { %s3578_s24 = spop %3002  ;;  %s241_s6 = sadd.f32 %s3576_s5, %s3574_s29 }
 0x191   :  { %s243_s19 = smax.f32 %s3263_s30, %s3578_s24  ;;  %s240_s18 = ssub.f32 0.0, %s3576_s5 }
 0x192   :  { %v244_v62 = vstv %s243_s19  ;;  %s242_s4 = ssub.f32 0.0, %s241_s6  ;;  %p239_p6 = scmp.eq.f32.partialorder %s3578_s24, 0.0 }
 0x193   :  { %3065 = vrcp.f32 %v244_v62 }
 0x194   :  { %3067 = vpow2.f32 %v559_v16  ;;  %v3627_v16 = vpop.permute.xlu1 %339 }
 0x195   :  { %3069 = vpow2.f32 %v561_v17  ;;  %4729 = vst [vmem:[#allocation29_spill] sm:$0xff] %v3627_v16  ;;  %v544_v17 = vld [vmem:[#allocation10 + $0x8] sm:$0xff] }
 0x196   :  { %3071 = vpow2.f32 %v563_v5  ;;  %vm636_vm10 = vcmp.lt.f32.partialorder %v544_v17, 1.0  ;;  %vm624_vm12 = vcmp.eq.f32.partialorder %v544_v17, 1.0 }
 0x197   :  { %3073 = vpow2.f32 %v565_v25 }
 0x19d   :  { %v3066_v14 = vpop.eup %3065 }
 0x19e   :  { %3004 = vpush %v3066_v14  ;;  %v3068_v24 = vpop.eup %3067 }
 0x19f   :  { %v3070_v26 = vpop.eup %3069  ;;  %v567_v27 = vadd.f32 1.0, %v3068_v24  ;;  %v666_v24 = vsub.f32 1.0, %v544_v17 }
 0x1a0   :  { %v568_v28 = vadd.f32 1.0, %v3070_v26  ;;  %v3072_v30 = vpop.eup %3071  ;;  %v3631_v26 = vpop.permute.xlu1 %358 }
 0x1a1   :  { %3075 = vlog2.f32 %v567_v27  ;;  %v3074_v31 = vpop.eup %3073  ;;  %v569_v34 = vadd.f32 1.0, %v3072_v30  ;;  %4731 = vst [vmem:[#allocation31_spill] sm:$0xff] %v3631_v26 }
 0x1a2   :  { %3077 = vlog2.f32 %v568_v28  ;;  %v570_v13 = vadd.f32 1.0, %v3074_v31  ;;  %v669_v28 = vmul.f32 %v665_v22, %v665_v22 }
 0x1a3   :  { %3079 = vlog2.f32 %v569_v34 }
 0x1a4   :  { %3081 = vlog2.f32 %v570_v13  ;;  %v3608_v56 = vpop.xlane.xlu0 %455 }
 0x1a5   :  { %4726 = vst [vmem:[#allocation26_spill] sm:$0xff] %v3608_v56 }
 0x1a8   :  { %v3621_v61 = vpop.xlane.xlu0 %458 }
 0x1a9   :  { %4727 = vst [vmem:[#allocation27_spill] sm:$0xff] %v3621_v61 }
 0x1ab   :  { %v3076_v32 = vpop.eup %3075 }
 0x1ac   :  { %v3078_v11 = vpop.eup %3077  ;;  %v572_v37 = vmul.f32 0.6931472, %v3076_v32  ;;  %v3625_v14 = vpop.permute.xlu0 %472  ;;  %v670_v32 = vmul.f32 %v666_v24, %v666_v24 }
 0x1ad   :  { %v574_v39 = vmul.f32 0.6931472, %v3078_v11  ;;  %v3080_v42 = vpop.eup %3079  ;;  %4728 = vst [vmem:[#allocation28_spill] sm:$0xff] %v3625_v14 }
 0x1ae   :  { %v579_v40 = vadd.f32 %v572_v37, %v547_v36  ;;  %v3082_v43 = vpop.eup %3081  ;;  %v576_v51 = vmul.f32 0.6931472, %v3080_v42 }
 0x1af   :  { %v580_v0 = vadd.f32 %v574_v39, %v548_v38  ;;  %v578_v55 = vmul.f32 0.6931472, %v3082_v43  ;;  %v3638_v39 = vsel %vm635_vm9, 1.0, %v4695_v10  ;;  %v767_v43 = vld [vmem:[%s4683_s9 + $0x20] sm:$0xf] }
 0x1b0   :  { %v3596_v41 = vsub.f32 %v539_v63, %v579_v40  ;;  %v3610_v57 = vadd.f32 %v576_v51, %v549_v49  ;;  %v587_v8 = vsub.f32 0.0, %v579_v40  ;;  %v673_v40 = vmul.f32 %v669_v28, %v669_v28 }
 0x1b1   :  { %v3598_v29 = vsub.f32 %v540_v3, %v580_v0  ;;  %v3613_v58 = vadd.f32 %v578_v55, %v550_v54  ;;  %v674_v49 = vmul.f32 %v670_v32, %v670_v32  ;;  %v2051_v24 = vrot.slane %v767_v43, %v3432_v2 }
 0x1b2   :  { %v591_v47 = vmul.f32 1.442695, %v3596_v41  ;;  %v3616_v59 = vsub.f32 %v541_v18, %v3610_v57  ;;  %v588_v18 = vsub.f32 0.0, %v580_v0  ;;  %v615_v21 = vmax.f32 %v587_v8, -9.2103405 }
 0x1b3   :  { %v593_v52 = vmul.f32 1.442695, %v3598_v29  ;;  %v3619_v60 = vsub.f32 %v542_v19, %v3613_v58  ;;  %v607_v34 = vmax.f32 %v3596_v41, -9.2103405  ;;  %v608_v37 = vmax.f32 %v3598_v29, -9.2103405  ;;  %v3648_v29 = vpop.permute.xlu1 %365 }
 0x1b4   :  { %3083 = vpow2.f32 %v591_v47  ;;  %v595_v63 = vmul.f32 1.442695, %v3616_v59  ;;  %v616_v25 = vmax.f32 %v588_v18, -9.2103405  ;;  %v619_v27 = vmin.f32 %v615_v21, -0.000100005 }
 0x1b5   :  { %3085 = vpow2.f32 %v593_v52  ;;  %v597_v3 = vmul.f32 1.442695, %v3619_v60  ;;  %v3646_v41 = vsel %vm636_vm10, 1.0, %v4695_v10  ;;  %v611_v51 = vmin.f32 %v607_v34, -0.000100005  ;;  %4732 = vst [vmem:[#allocation32_spill] sm:$0xff] %v3648_v29 }
 0x1b6   :  { %3087 = vpow2.f32 %v595_v63  ;;  %v620_v13 = vmin.f32 %v616_v25, -0.000100005  ;;  %v590_v63 = vsub.f32 0.0, %v3613_v58  ;;  %v3656_v8 = vld [vmem:[%s4683_s9 + $0x8] sm:$0xf]  ;;  %v3663_v21 = vld [vmem:[#allocation10 + $0x10] sm:$0xff] }
 0x1b7   :  { %3089 = vpow2.f32 %v597_v3  ;;  %v612_v18 = vmin.f32 %v608_v37, -0.000100005  ;;  %v3668_v58 = vsel %vm623_vm11, 1.0, %v4695_v10  ;;  %v3672_v25 = vpop.permute.xlu1 %465  ;;  %v1036_v32 = vrot.slane %v3656_v8, %v3442_v6 }
 0x1b8   :  { %4733 = vst [vmem:[#allocation33_spill] sm:$0xff] %v3672_v25  ;;  %v667_v37 = vsub.f32 1.0, %v3663_v21  ;;  %vm637_vm13 = vcmp.lt.f32.partialorder %v3663_v21, 1.0  ;;  %vm625_vm15 = vcmp.eq.f32.partialorder %v3663_v21, 1.0  ;;  %vm1970_vm11 = vcmask 31744  }
 0x1be   :  { %v3084_v62 = vpop.eup %3083 }
 0x1bf   :  { %v3086_v7 = vpop.eup %3085  ;;  %v599_v9 = vmax.f32 %v3084_v62, 0.0001  ;;  %v589_v62 = vsub.f32 0.0, %v3610_v57  ;;  %v3665_v57 = vld [vmem:[#allocation10 + $0x18] sm:$0xff] }
 0x1c0   :  { %v600_v19 = vmax.f32 %v3086_v7, 0.0001  ;;  %v3088_v36 = vpop.eup %3087  ;;  %v1084_v7 = vrot.slane %v767_v43, %v3442_v6  ;;  %vm638_vm14 = vcmp.lt.f32.partialorder %v3665_v57, 1.0  ;;  %vm626_vm0 = vcmp.eq.f32.partialorder %v3665_v57, 1.0 }
 0x1c1   :  { %v603_v20 = vmin.f32 %v599_v9, 0.9999  ;;  %v3090_v38 = vpop.eup %3089  ;;  %v601_v54 = vmax.f32 %v3088_v36, 0.0001 }
 0x1c2   :  { %v604_v5 = vmin.f32 %v600_v19, 0.9999  ;;  %v602_v3 = vmax.f32 %v3090_v38, 0.0001  ;;  %v3683_v36 = vrot.slane %v1084_v7, %v3442_v6  ;;  %v668_v38 = vsub.f32 1.0, %v3665_v57 }
 0x1c3   :  { %v705_v30 = vmul.f32 %v603_v20, %v603_v20  ;;  %v677_v42 = vsub.f32 1.0, %v603_v20  ;;  %v1088_v20 = vrot.slane %v767_v43, %v3483_v33 }
 0x1c4   :  { %v706_v11 = vmul.f32 %v604_v5, %v604_v5  ;;  %v678_v52 = vsub.f32 1.0, %v604_v5  ;;  %v2055_v5 = vrot.slane %v767_v43, %v3500_v45  ;;  %v606_v34 = vmin.f32 %v602_v3, 0.9999 }
 0x1c5   :  { %v709_v0 = vmul.f32 %v705_v30, %v619_v27  ;;  %v681_v19 = vmul.f32 %v677_v42, %v677_v42  ;;  %v605_v27 = vmin.f32 %v601_v54, 0.9999  ;;  %v3678_v30 = vsel %vm624_vm12, 1.0, %v4695_v10 }
 0x1c6   :  { %v710_v55 = vmul.f32 %v706_v11, %v620_v13  ;;  %v682_v22 = vmul.f32 %v678_v52, %v678_v52  ;;  %v617_v13 = vmax.f32 %v589_v62, -9.2103405  ;;  %v618_v11 = vmax.f32 %v590_v63, -9.2103405  ;;  %v3715_v62 = vld [vmem:[%s4683_s9 + $0xc] sm:$0xf] }
 0x1c7   :  { %v3658_v9 = vmul.f32 %v709_v0, %v673_v40  ;;  %v3687_v40 = vmul.f32 %v681_v19, %v611_v51  ;;  %v3690_v0 = vrot.slane %v1088_v20, %v3442_v6  ;;  %v3697_v43 = vrot.slane %v2051_v24, %v3432_v2  ;;  %v3717_v19 = vpop.xlane.xlu1 %327 }
 0x1c8   :  { %v3674_v28 = vmul.f32 %v710_v55, %v674_v49  ;;  %v3694_v42 = vmul.f32 %v682_v22, %v612_v18  ;;  %v3700_v49 = vrot.slane %v2055_v5, %v3432_v2  ;;  %v1040_v52 = vrot.slane %v3656_v8, %v3483_v33  ;;  %4734 = vst [vmem:[#allocation34_spill] sm:$0xff] %v3717_v19 }
 0x1c9   :  { %v3706_v51 = vrot.slane %v1036_v32, %v3442_v6  ;;  %v2003_v54 = vrot.slane %v3656_v8, %v3432_v2  ;;  %v621_v63 = vmin.f32 %v617_v13, -0.000100005  ;;  %v622_v3 = vmin.f32 %v618_v11, -0.000100005  ;;  %v3747_v13 = vld [vmem:[%s4683_s9 + $0x4] sm:$0xf] }
 0x1ca   :  { %v707_v7 = vmul.f32 %v605_v27, %v605_v27  ;;  %v708_v18 = vmul.f32 %v606_v34, %v606_v34  ;;  %v671_v20 = vmul.f32 %v667_v37, %v667_v37  ;;  %v672_v22 = vmul.f32 %v668_v38, %v668_v38 }
 0x1cb   :  { %v609_v24 = vmax.f32 %v3616_v59, -9.2103405  ;;  %v679_v5 = vsub.f32 1.0, %v605_v27  ;;  %v610_v55 = vmax.f32 %v3619_v60, -9.2103405  ;;  %v680_v10 = vsub.f32 1.0, %v606_v34 }
 0x1cc   :  { %v4735_v11 = vmov 0.0   ;;  %v759_v59 = vld [vmem:[%s4683_s9] sm:$0xf]  ;;  %v3737_v60 = vrot.slane %v1040_v52, %v3442_v6  ;;  %v3740_v27 = vrot.slane %v2003_v54, %v3432_v2  ;;  %v711_v34 = vmul.f32 %v707_v7, %v621_v63 }
 0x1cd   :  { %v3731_v37 = vsel %vm637_vm13, 1.0, %v4735_v11  ;;  %v712_v38 = vmul.f32 %v708_v18, %v622_v3  ;;  %v675_v53 = vmul.f32 %v671_v20, %v671_v20  ;;  %v676_v50 = vmul.f32 %v672_v22, %v672_v22  ;;  %v3763_v22 = vld [vmem:[%s4683_s9 + $0x24] sm:$0xf] }
 0x1ce   :  { %v613_v46 = vmin.f32 %v609_v24, -0.000100005  ;;  %v683_v52 = vmul.f32 %v679_v5, %v679_v5  ;;  %v2930_v54 = vsel %vm638_vm14, 1.0, %v4735_v11  ;;  %v614_v63 = vmin.f32 %v610_v55, -0.000100005 }
 0x1cf   :  { %s3005_s21 = spop %3004  ;;  %v684_v21 = vmul.f32 %v680_v10, %v680_v10  ;;  %v1020_v3 = vrot.slane %v759_v59, %v3442_v6  ;;  %v2925_v7 = vsel %vm625_vm15, 1.0, %v4735_v11  ;;  %v2926_v18 = vsel %vm626_vm0, 1.0, %v4735_v11 }
 0x1d0   :  { %s247_s3 = smul.f32 %s3005_s21, %s242_s4  ;;  %v1024_v44 = vrot.slane %v759_v59, %v3483_v33  ;;  %v1028_v20 = vrot.slane %v3747_v13, %v3442_v6  ;;  %v1032_v10 = vrot.slane %v3747_v13, %v3483_v33  ;;  %v1987_v57 = vrot.slane %v759_v59, %v3432_v2 }
 0x1d1   :  { %v1991_v55 = vrot.slane %v759_v59, %v3500_v45  ;;  %v715_v24 = vmul.f32 %v711_v34, %v675_v53  ;;  %v716_v5 = vmul.f32 %v712_v38, %v676_v50  ;;  %v687_v61 = vmul.f32 %v683_v52, %v613_v46 }
 0x1d2   :  { %s4789_s18 = smov (!%p239_p6, %s240_s18), %s247_s3  ;;  %v688_v56 = vmul.f32 %v684_v21, %v614_v63  ;;  %v1180_v25 = vrot.slane %v1020_v3, %v3442_v6  ;;  %v1092_v26 = vrot.slane %v3763_v22, %v3442_v6  ;;  %v1096_v19 = vrot.slane %v3763_v22, %v3483_v33 }
 0x1d3   :  { %2879 = sst [smem:[#allocation13]] %s4789_s18  ;;  %v1188_v50 = vrot.slane %v1028_v20, %v3442_v6  ;;  %v1995_v46 = vrot.slane %v3747_v13, %v3432_v2  ;;  %v1192_v34 = vrot.slane %v1032_v10, %v3442_v6  ;;  %v2147_v38 = vrot.slane %v1987_v57, %v3432_v2 }
 0x1d4   :  { %v2151_v52 = vrot.slane %v1991_v55, %v3432_v2  ;;  %v1252_v57 = vrot.slane %v1092_v26, %v3442_v6  ;;  %v1256_v55 = vrot.slane %v1096_v19, %v3442_v6 }
 0x1dd   :  { %v3629_v4 = vpop.xlane.xlu0 %522 }
 0x1de   :  { %4730 = vst [vmem:[#allocation30_spill] sm:$0xff] %v3629_v4  ;;  %v799_v4 = vpop.permute.xlu1 %798 }
 0x1df   :  { %vm905_vm1 = vcmp.eq.s32.totalorder %v3486_v35, %v799_v4  ;;  %vm906_vm2 = vcmp.eq.s32.totalorder %v3491_v12, %v799_v4  ;;  %v1184_v4 = vrot.slane %v1024_v44, %v3442_v6 }
 0x1e0   :  { %v2931_v16 = vsel %vm905_vm1, 1.0, %v4735_v11  ;;  %v2932_v53 = vsel %vm906_vm2, 1.0, %v4735_v11 }
 0x1e1   :  { %v1305_v10 = vmul.f32 %v2931_v16, %v1180_v25  ;;  %v2272_v26 = vmul.f32 %v2931_v16, %v2147_v38  ;;  %v2273_v25 = vmul.f32 %v2932_v53, %v2151_v52 }
 0x1e2   :  { %v806_v59 = vpop.permute.xlu1 %805 }
 0x1e3   :  { %vm907_vm5 = vcmp.eq.s32.totalorder %v3486_v35, %v806_v59  ;;  %vm908_vm6 = vcmp.eq.s32.totalorder %v3491_v12, %v806_v59  ;;  %v1338_v16 = vsel %vm1337_vm3, %v1305_v10, 0.0 }
 0x1e4   :  { %v2933_v29 = vsel %vm907_vm5, 1.0, %v4735_v11 }
 0x1e5   :  { %v3633_v31 = vpop.permute.xlu0 %649 }
 0x1e6   :  { %v661_v63 = vmul.f32 %v3638_v39, %v3633_v31  ;;  %v662_v21 = vmul.f32 %v3646_v41, %v3633_v31  ;;  %v3793_v44 = vmul.f32 %v3668_v58, %v3633_v31  ;;  %v3797_v3 = vmul.f32 %v3678_v30, %v3633_v31  ;;  %v862_v59 = vpop.permute.xlu1 %861 }
 0x1e7   :  { %v1999_v39 = vrot.slane %v3747_v13, %v3500_v45  ;;  %v3810_v41 = vrot.slane %v1995_v46, %v3432_v2  ;;  %v1306_v58 = vmul.f32 %v2932_v53, %v1184_v4  ;;  %vm923_vm9 = vcmp.eq.s32.totalorder %v3486_v35, %v862_v59 }
 0x1e8   :  { %v717_v30 = vmul.f32 %v3658_v9, %v661_v63  ;;  %v718_v19 = vmul.f32 %v3674_v28, %v662_v21  ;;  %v689_v13 = vmul.f32 %v3687_v40, %v3793_v44  ;;  %vm924_vm10 = vcmp.eq.s32.totalorder %v3491_v12, %v862_v59 }
 0x1e9   :  { %v3643_v47 = vpop.permute.xlu0 %854 }
 0x1ea   :  { %vm921_vm4 = vcmp.eq.s32.totalorder %v3486_v35, %v3643_v47  ;;  %vm922_vm7 = vcmp.eq.s32.totalorder %v3491_v12, %v3643_v47  ;;  %v2934_v47 = vsel %vm908_vm6, 1.0, %v4735_v11  ;;  %v721_v52 = vadd.f32 %v718_v19, %v717_v30 }
 0x1eb   :  { %v2947_v46 = vsel %vm921_vm4, 1.0, %v4735_v11  ;;  %v2948_v9 = vsel %vm922_vm7, 1.0, %v4735_v11 }
 0x1ec   :  { %v1321_v10 = vmul.f32 %v2947_v46, %v3683_v36  ;;  %v2059_v36 = vrot.slane %v3763_v22, %v3432_v2 }
 0x1ed   :  { %v3661_v15 = vpop.permute.xlu0 %812 }
 0x1ee   :  { %vm909_vm12 = vcmp.eq.s32.totalorder %v3486_v35, %v3661_v15  ;;  %vm910_vm13 = vcmp.eq.s32.totalorder %v3491_v12, %v3661_v15 }
 0x1f1   :  { %v3692_v17 = vpop.permute.xlu0 %819 }
 0x1f2   :  { %vm911_vm14 = vcmp.eq.s32.totalorder %v3486_v35, %v3692_v17  ;;  %vm912_vm15 = vcmp.eq.s32.totalorder %v3491_v12, %v3692_v17 }
 0x1f5   :  { %v3720_v32 = vpop.permute.xlu0 %826 }
 0x1f6   :  { %vm913_vm0 = vcmp.eq.s32.totalorder %v3486_v35, %v3720_v32  ;;  %vm914_vm1 = vcmp.eq.s32.totalorder %v3491_v12, %v3720_v32 }
 0x1f7   :  { %v2939_v32 = vsel %vm913_vm0, 1.0, %v4735_v11 }
 0x1f9   :  { %v3749_v1 = vpop.permute.xlu0 %833 }
 0x1fa   :  { %4736 = vst [vmem:[#allocation35_spill] sm:$0xff] %v3749_v1 }
 0x1fd   :  { %v3771_v14 = vpop.permute.xlu0 %840 }
 0x1fe   :  { %4737 = vst [vmem:[#allocation36_spill] sm:$0xff] %v3771_v14 }
 0x201   :  { %v3799_v20 = vpop.permute.xlu0 %847 }
 0x202   :  { %4738 = vst [vmem:[#allocation37_spill] sm:$0xff] %v3799_v20  ;;  %v690_v20 = vmul.f32 %v3694_v42, %v3797_v3  ;;  %v1339_v42 = vsel %vm1337_vm3, %v1306_v58, 0.0  ;;  %v2063_v58 = vrot.slane %v3763_v22, %v3500_v45 }
 0x203   :  { %v1340_v30 = vadd.f32 %v1339_v42, %v1338_v16  ;;  %v2219_v16 = vrot.slane %v2059_v36, %v3432_v2 }
 0x204   :  { %v693_v21 = vadd.f32 %v690_v20, %v689_v13  ;;  %v2159_v20 = vrot.slane %v1999_v39, %v3432_v2  ;;  %v1378_v39 = vsel %vm1337_vm3, %v1321_v10, 0.0  ;;  %v2305_v13 = vsel %vm1337_vm3, %v2273_v25, 0.0 }
 0x205   :  { %v655_v14 = vpop.permute.xlu0 %654  ;;  %v2288_v25 = vmul.f32 %v2947_v46, %v3697_v43  ;;  %v733_v46 = vadd.f32 %v3797_v3, %v3793_v44 }
 0x206   :  { %v663_v28 = vmul.f32 %v3731_v37, %v655_v14  ;;  %v664_v4 = vmul.f32 %v2930_v54, %v655_v14  ;;  %v3826_v53 = vmul.f32 %v2925_v7, %v655_v14  ;;  %v3828_v40 = vmul.f32 %v2926_v18, %v655_v14 }
 0x207   :  { %v1322_v37 = vmul.f32 %v2948_v9, %v3690_v0  ;;  %v1307_v54 = vmul.f32 %v2933_v29, %v1188_v50  ;;  %v1308_v7 = vmul.f32 %v2934_v47, %v1192_v34  ;;  %v755_v0 = vld [vmem:[%s4686_s12] sm:$0xff]  ;;  %v2304_v34 = vsel %vm1337_vm3, %v2272_v26, 0.0 }
 0x208   :  { %v719_v38 = vmul.f32 %v715_v24, %v663_v28  ;;  %v691_v63 = vmul.f32 %v687_v61, %v3826_v53  ;;  %v720_v18 = vmul.f32 %v716_v5, %v664_v4  ;;  %v692_v48 = vmul.f32 %v688_v56, %v3828_v40  ;;  %v756_v56 = vld [vmem:[%s4686_s12 + $0x8] sm:$0xff] }
 0x209   :  { %v2949_v24 = vsel %vm923_vm9, 1.0, %v4735_v11  ;;  %v2950_v61 = vsel %vm924_vm10, 1.0, %v4735_v11  ;;  %v1379_v19 = vsel %vm1337_vm3, %v1322_v37, 0.0  ;;  %v1343_v59 = vsel %vm1337_vm3, %v1307_v54, 0.0 }
 0x20a   :  { %v722_v1 = vadd.f32 %v721_v52, %v719_v38  ;;  %v694_v23 = vadd.f32 %v693_v21, %v691_v63  ;;  %v1344_v28 = vsel %vm1337_vm3, %v1308_v7, 0.0  ;;  %v3867_v22 = vmul.f32 %v756_v56, %v655_v14 }
 0x20b   :  { %v1380_v26 = vadd.f32 %v1379_v19, %v1378_v39  ;;  %v2223_v4 = vrot.slane %v2063_v58, %v3432_v2  ;;  %v2275_v42 = vmul.f32 %v2934_v47, %v2159_v20  ;;  %v2935_v38 = vsel %vm909_vm12, 1.0, %v4735_v11 }
 0x20c   :  { %v723_v5 = vadd.f32 %v722_v1, %v720_v18  ;;  %v695_v50 = vadd.f32 %v694_v23, %v692_v48  ;;  %v1323_v1 = vmul.f32 %v2949_v24, %v1252_v57  ;;  %v1324_v23 = vmul.f32 %v2950_v61, %v1256_v55 }
 0x20d   :  { %v3861_v48 = vmul.f32 %v755_v0, %v3633_v31  ;;  %v1345_v57 = vadd.f32 %v1344_v28, %v1343_v59  ;;  %v2289_v55 = vmul.f32 %v2948_v9, %v3700_v49  ;;  %v2274_v31 = vmul.f32 %v2933_v29, %v3810_v41 }
 0x20e   :  { %724 = vadd.xlane.f32.xlu0 %v723_v5  ;;  %696 = vadd.xlane.f32.xlu1 %v695_v50  ;;  %v2936_v52 = vsel %vm910_vm13, 1.0, %v4735_v11  ;;  %v2306_v14 = vadd.f32 %v2305_v13, %v2304_v34  ;;  %v1383_v15 = vsel %vm1337_vm3, %v1323_v1, 0.0  ;;  %v1384_v43 = vsel %vm1337_vm3, %v1324_v23, 0.0  ;;  %v763_v50 = vld [vmem:[%s4683_s9 + $0x10] sm:$0xf] }
 0x20f   :  { %v2797_v49 = vsel %vm1970_vm11, %v3861_v48, 0.0  ;;  %v2798_v29 = vsel %vm1970_vm11, %v3867_v22, 0.0  ;;  %v2344_v41 = vsel %vm1337_vm3, %v2288_v25, 0.0  ;;  %v4739_v47 = vrot.slane %v3656_v8, %v3500_v45 }
 0x210   :  { %v2011_v63 = vrot.slane %v3715_v62, %v3432_v2  ;;  %v3891_v21 = vadd.f32 %v2798_v29, %v2797_v49  ;;  %v2345_v44 = vsel %vm1337_vm3, %v2289_v55, 0.0  ;;  %v1309_v3 = vmul.f32 %v2935_v38, %v3706_v51 }
 0x211   :  { %v2167_v9 = vrot.slane %v4739_v47, %v3432_v2  ;;  %v1310_v10 = vmul.f32 %v2936_v52, %v3737_v60  ;;  %v734_v37 = vadd.f32 %v733_v46, %v3826_v53  ;;  %v1385_v54 = vadd.f32 %v1384_v43, %v1383_v15  ;;  %v764_v43 = vld [vmem:[%s4683_s9 + $0x14] sm:$0xf] }
 0x212   :  { %1341 = vadd.xlane.f32.xlu0 %v1340_v30  ;;  %1381 = vadd.xlane.f32.xlu1 %v1380_v26  ;;  %4740 = vst [vmem:[#allocation38_spill] sm:$0xff] %v3891_v21  ;;  %v2309_v7 = vsel %vm1337_vm3, %v2274_v31, 0.0  ;;  %v2310_v8 = vsel %vm1337_vm3, %v2275_v42, 0.0  ;;  %v2290_v18 = vmul.f32 %v2949_v24, %v2219_v16  ;;  %v2291_v20 = vmul.f32 %v2950_v61, %v2223_v4 }
 0x213   :  { %v3904_v51 = vadd.f32 %v734_v37, %v3828_v40  ;;  %v2346_v60 = vadd.f32 %v2345_v44, %v2344_v41  ;;  %v4742_v53 = vrot.slane %v3715_v62, %v3442_v6  ;;  %v4743_v24 = vrot.slane %v3715_v62, %v3483_v33  ;;  %v4744_v37 = vld [vmem:[#allocation20_spill] sm:$0xff] }
 0x214   :  { %v2015_v56 = vrot.slane %v3715_v62, %v3500_v45  ;;  %v1348_v17 = vsel %vm1337_vm3, %v1309_v3, 0.0  ;;  %v1349_v61 = vsel %vm1337_vm3, %v1310_v10, 0.0  ;;  %v2276_v40 = vmul.f32 %v2935_v38, %v3740_v27 }
 0x215   :  { %4741 = vst [vmem:[#allocation39_spill] sm:$0xff] %v3904_v51  ;;  %v1204_v36 = vrot.slane %v4742_v53, %v3442_v6  ;;  %v1208_v0 = vrot.slane %v4743_v24, %v3442_v6  ;;  %v2277_v5 = vmul.f32 %v2936_v52, %v2167_v9  ;;  %v2937_v34 = vsel %vm911_vm14, 1.0, %v4735_v11 }
 0x216   :  { %1346 = vadd.xlane.f32.xlu0 %v1345_v57  ;;  %2307 = vadd.xlane.f32.xlu1 %v2306_v14  ;;  %v2938_v58 = vsel %vm912_vm15, 1.0, %v4735_v11  ;;  %v2311_v30 = vadd.f32 %v2310_v8, %v2309_v7  ;;  %v2349_v62 = vsel %vm1337_vm3, %v2290_v18, 0.0  ;;  %v2350_v39 = vsel %vm1337_vm3, %v2291_v20, 0.0  ;;  %v4746_v8 = vld [vmem:[#allocation35_spill] sm:$0xff] }
 0x217   :  { %v2171_v19 = vrot.slane %v2011_v63, %v3432_v2  ;;  %v1350_v13 = vadd.f32 %v1349_v61, %v1348_v17  ;;  %v2175_v27 = vrot.slane %v2015_v56, %v3432_v2  ;;  %v1052_v59 = vrot.slane %v763_v50, %v3442_v6  ;;  %v765_v61 = vld [vmem:[%s4683_s9 + $0x18] sm:$0xf] }
 0x218   :  { %v1056_v28 = vrot.slane %v763_v50, %v3483_v33  ;;  %v2314_v1 = vsel %vm1337_vm3, %v2276_v40, 0.0  ;;  %v2315_v23 = vsel %vm1337_vm3, %v2277_v5, 0.0  ;;  %v1311_v26 = vmul.f32 %v2937_v34, %v1204_v36 }
 0x219   :  { %v1312_v25 = vmul.f32 %v2938_v58, %v1208_v0  ;;  %v2351_v16 = vadd.f32 %v2350_v39, %v2349_v62  ;;  %v2019_v4 = vrot.slane %v763_v50, %v3432_v2  ;;  %v2316_v57 = vadd.f32 %v2315_v23, %v2314_v1 }
 0x21a   :  { %1386 = vadd.xlane.f32.xlu0 %v1385_v54  ;;  %2347 = vadd.xlane.f32.xlu1 %v2346_v60  ;;  %v1212_v55 = vrot.slane %v1052_v59, %v3442_v6  ;;  %v1216_v31 = vrot.slane %v1056_v28, %v3442_v6  ;;  %v2023_v42 = vrot.slane %v763_v50, %v3500_v45  ;;  %v1353_v38 = vsel %vm1337_vm3, %v1311_v26, 0.0  ;;  %v4745_v54 = vld [vmem:[#allocation25_spill] sm:$0xff]  ;;  %v4747_v50 = vld [vmem:[#allocation32_spill] sm:$0xff] }
 0x21b   :  { %v1354_v52 = vsel %vm1337_vm3, %v1312_v25, 0.0  ;;  %v2278_v14 = vmul.f32 %v2937_v34, %v2171_v19  ;;  %v2279_v15 = vmul.f32 %v2938_v58, %v2175_v27  ;;  %v2940_v46 = vsel %vm914_vm1, 1.0, %v4735_v11  ;;  %v4748_v26 = vld [vmem:[#allocation36_spill] sm:$0xff] }
 0x21c   :  { %v2179_v49 = vrot.slane %v2019_v4, %v3432_v2  ;;  %v1355_v29 = vadd.f32 %v1354_v52, %v1353_v38  ;;  %v2183_v41 = vrot.slane %v2023_v42, %v3432_v2  ;;  %v1060_v47 = vrot.slane %v764_v43, %v3442_v6 }
 0x21d   :  { %v1064_v9 = vrot.slane %v764_v43, %v3483_v33  ;;  %v2319_v63 = vsel %vm1337_vm3, %v2278_v14, 0.0  ;;  %v2320_v44 = vsel %vm1337_vm3, %v2279_v15, 0.0  ;;  %v1313_v3 = vmul.f32 %v2939_v32, %v1212_v55 }
 0x21e   :  { %2312 = vadd.xlane.f32.xlu0 %v2311_v30  ;;  %1351 = vadd.xlane.f32.xlu1 %v1350_v13  ;;  %v1314_v10 = vmul.f32 %v2940_v46, %v1216_v31  ;;  %v351_v7 = vsub.f32 %v4745_v54, %v4744_v37  ;;  %vm915_vm2 = vcmp.eq.s32.totalorder %v3486_v35, %v4746_v8  ;;  %v766_v31 = vld [vmem:[%s4683_s9 + $0x1c] sm:$0xf]  ;;  %v4749_v37 = vld [vmem:[#allocation37_spill] sm:$0xff] }
 0x21f   :  { %vm916_vm4 = vcmp.eq.s32.totalorder %v3491_v12, %v4746_v8  ;;  %v2027_v18 = vrot.slane %v764_v43, %v3432_v2  ;;  %v2321_v20 = vadd.f32 %v2320_v44, %v2319_v63  ;;  %v1220_v60 = vrot.slane %v1060_v47, %v3442_v6 }
 0x220   :  { %v1224_v53 = vrot.slane %v1064_v9, %v3442_v6  ;;  %v2031_v36 = vrot.slane %v764_v43, %v3500_v45  ;;  %v1358_v24 = vsel %vm1337_vm3, %v1313_v3, 0.0  ;;  %v1359_v0 = vsel %vm1337_vm3, %v1314_v10, 0.0 }
 0x221   :  { %v2280_v56 = vmul.f32 %v2939_v32, %v2179_v49  ;;  %v2281_v17 = vmul.f32 %v2940_v46, %v2183_v41  ;;  %v2941_v40 = vsel %vm915_vm2, 1.0, %v4735_v11  ;;  %v2942_v5 = vsel %vm916_vm4, 1.0, %v4735_v11 }
 0x222   :  { %2352 = vadd.xlane.f32.xlu0 %v2351_v16  ;;  %2317 = vadd.xlane.f32.xlu1 %v2316_v57  ;;  %v370_v34 = vmul.f32 %v4747_v50, %v351_v7  ;;  %v2187_v58 = vrot.slane %v2027_v18, %v3432_v2  ;;  %v1360_v30 = vadd.f32 %v1359_v0, %v1358_v24 }
 0x223   :  { %v2191_v62 = vrot.slane %v2031_v36, %v3432_v2  ;;  %v1068_v39 = vrot.slane %v765_v61, %v3442_v6  ;;  %v1072_v19 = vrot.slane %v765_v61, %v3483_v33  ;;  %v2324_v13 = vsel %vm1337_vm3, %v2280_v56, 0.0 }
 0x224   :  { %v2325_v27 = vsel %vm1337_vm3, %v2281_v17, 0.0  ;;  %v1315_v59 = vmul.f32 %v2941_v40, %v1220_v60  ;;  %v1316_v28 = vmul.f32 %v2942_v5, %v1224_v53  ;;  %v2035_v1 = vrot.slane %v765_v61, %v3432_v2 }
 0x225   :  { %v376_v23 = vmul.f32 0.5, %v370_v34  ;;  %vm917_vm5 = vcmp.eq.s32.totalorder %v3486_v35, %v4748_v26  ;;  %vm918_vm6 = vcmp.eq.s32.totalorder %v3491_v12, %v4748_v26  ;;  %v372_v25 = vand.u32 2147483647, %v370_v34 }
 0x226   :  { %1356 = vadd.xlane.f32.xlu1 %v1355_v29  ;;  %v2326_v16 = vadd.f32 %v2325_v27, %v2324_v13  ;;  %v1228_v4 = vrot.slane %v1068_v39, %v3442_v6  ;;  %v1232_v57 = vrot.slane %v1072_v19, %v3442_v6  ;;  %v2039_v55 = vrot.slane %v765_v61, %v3500_v45 }
 0x227   :  { %v1363_v42 = vsel %vm1337_vm3, %v1315_v59, 0.0  ;;  %v1364_v38 = vsel %vm1337_vm3, %v1316_v28, 0.0  ;;  %v2282_v52 = vmul.f32 %v2941_v40, %v2187_v58  ;;  %v2283_v14 = vmul.f32 %v2942_v5, %v2191_v62  ;;  %v769_v28 = vld [vmem:[%s4683_s9 + $0x28] sm:$0xf] }
 0x228   :  { %v2943_v15 = vsel %vm917_vm5, 1.0, %v4735_v11  ;;  %v2944_v43 = vsel %vm918_vm6, 1.0, %v4735_v11  ;;  %v378_v32 = vmul.f32 %v376_v23, %v370_v34  ;;  %v2920_v46 = vadd.f32 -0.5, %v372_v25 }
 0x229   :  { %v2195_v49 = vrot.slane %v2035_v1, %v3432_v2  ;;  %v1076_v29 = vrot.slane %v766_v31, %v3442_v6  ;;  %v1365_v41 = vadd.f32 %v1364_v38, %v1363_v42  ;;  %vm374_vm7 = vcmp.lt.f32.partialorder %v372_v25, 1.0  ;;  %v869_v1 = vpop.permute.xlu1 %868 }
 0x22a   :  { %2322 = vadd.xlane.f32.xlu1 %v2321_v20  ;;  %v2199_v47 = vrot.slane %v2039_v55, %v3432_v2  ;;  %v1080_v9 = vrot.slane %v766_v31, %v3483_v33  ;;  %v2329_v63 = vsel %vm1337_vm3, %v2282_v52, 0.0  ;;  %v2330_v44 = vsel %vm1337_vm3, %v2283_v14, 0.0  ;;  %v4751_v55 = vld [vmem:[#allocation34_spill] sm:$0xff] }
 0x22b   :  { %v1317_v3 = vmul.f32 %v2943_v15, %v1228_v4  ;;  %v1318_v10 = vmul.f32 %v2944_v43, %v1232_v57  ;;  %vm919_vm9 = vcmp.eq.s32.totalorder %v3486_v35, %v4749_v37  ;;  %vm920_vm10 = vcmp.eq.s32.totalorder %v3491_v12, %v4749_v37  ;;  %v4750_v57 = vld [vmem:[#allocation29_spill] sm:$0xff] }
 0x22c   :  { %v382_v54 = vsel %vm374_vm7, %v378_v32, %v2920_v46  ;;  %v1236_v7 = vrot.slane %v1076_v29, %v3442_v6  ;;  %v2331_v8 = vadd.f32 %v2330_v44, %v2329_v63  ;;  %v1240_v18 = vrot.slane %v1080_v9, %v3442_v6  ;;  %v770_v46 = vld [vmem:[%s4683_s9 + $0x2c] sm:$0xf] }
 0x22d   :  { %v2043_v20 = vrot.slane %v766_v31, %v3432_v2  ;;  %v2047_v60 = vrot.slane %v766_v31, %v3500_v45  ;;  %v1368_v53 = vsel %vm1337_vm3, %v1317_v3, 0.0  ;;  %v1369_v36 = vsel %vm1337_vm3, %v1318_v10, 0.0 }
 0x22e   :  { %1361 = vadd.xlane.f32.xlu1 %v1360_v30  ;;  %v2284_v24 = vmul.f32 %v2943_v15, %v2195_v49  ;;  %v2285_v0 = vmul.f32 %v2944_v43, %v2199_v47  ;;  %v2945_v56 = vsel %vm919_vm9, 1.0, %v4735_v11  ;;  %v2946_v17 = vsel %vm920_vm10, 1.0, %v4735_v11  ;;  %v4752_v49 = vld [vmem:[#allocation31_spill] sm:$0xff] }
 0x22f   :  { %v1370_v61 = vadd.f32 %v1369_v36, %v1368_v53  ;;  %v2203_v40 = vrot.slane %v2043_v20, %v3432_v2  ;;  %v2207_v5 = vrot.slane %v2047_v60, %v3432_v2  ;;  %v1319_v30 = vmul.f32 %v2945_v56, %v1236_v7 }
 0x230   :  { %v2334_v34 = vsel %vm1337_vm3, %v2284_v24, 0.0  ;;  %v2335_v58 = vsel %vm1337_vm3, %v2285_v0, 0.0  ;;  %v1320_v62 = vmul.f32 %v2946_v17, %v1240_v18  ;;  %v1100_v26 = vrot.slane %v769_v28, %v3442_v6 }
 0x231   :  { %v2336_v39 = vadd.f32 %v2335_v58, %v2334_v34  ;;  %v1373_v19 = vsel %vm1337_vm3, %v1319_v30, 0.0  ;;  %v2286_v27 = vmul.f32 %v2945_v56, %v2203_v40  ;;  %v2287_v59 = vmul.f32 %v2946_v17, %v2207_v5  ;;  %v771_v40 = vld [vmem:[%s4683_s9 + $0x30] sm:$0xf] }
 0x232   :  { %2327 = vadd.xlane.f32.xlu1 %v2326_v16  ;;  %v1374_v13 = vsel %vm1337_vm3, %v1320_v62, 0.0  ;;  %v1104_v4 = vrot.slane %v769_v28, %v3483_v33  ;;  %vm925_vm12 = vcmp.eq.s32.totalorder %v3486_v35, %v869_v1  ;;  %v350_v31 = vsub.f32 %v4751_v55, %v4750_v57 }
 0x233   :  { %v1375_v23 = vadd.f32 %v1374_v13, %v1373_v19  ;;  %v2339_v25 = vsel %vm1337_vm3, %v2286_v27, 0.0  ;;  %v2340_v16 = vsel %vm1337_vm3, %v2287_v59, 0.0  ;;  %vm926_vm13 = vcmp.eq.s32.totalorder %v3491_v12, %v869_v1 }
 0x234   :  { %v2341_v42 = vadd.f32 %v2340_v16, %v2339_v25  ;;  %v1260_v38 = vrot.slane %v1100_v26, %v3442_v6  ;;  %v2067_v52 = vrot.slane %v769_v28, %v3432_v2  ;;  %v2071_v14 = vrot.slane %v769_v28, %v3500_v45  ;;  %v4073_v25 = vld [vmem:[%s4685_s11] sm:$0x3] }
 0x235   :  { %v2951_v15 = vsel %vm925_vm12, 1.0, %v4735_v11  ;;  %v1264_v43 = vrot.slane %v1104_v4, %v3442_v6  ;;  %v2952_v32 = vsel %vm926_vm13, 1.0, %v4735_v11  ;;  %v369_v29 = vmul.f32 %v4752_v49, %v350_v31  ;;  %v772_v31 = vld [vmem:[%s4683_s9 + $0x34] sm:$0xf] }
 0x236   :  { %1366 = vadd.xlane.f32.xlu1 %v1365_v41  ;;  %v876_v41 = vpop.permute.xlu1 %875  ;;  %v1325_v47 = vmul.f32 %v2951_v15, %v1260_v38  ;;  %v2227_v9 = vrot.slane %v2067_v52, %v3432_v2  ;;  %v2231_v63 = vrot.slane %v2071_v14, %v3432_v2  ;;  %v1108_v3 = vrot.slane %v770_v46, %v3442_v6 }
 0x237   :  { %v1326_v44 = vmul.f32 %v2952_v32, %v1264_v43  ;;  %v1112_v10 = vrot.slane %v770_v46, %v3483_v33  ;;  %vm927_vm14 = vcmp.eq.s32.totalorder %v3486_v35, %v876_v41  ;;  %v371_v37 = vand.u32 2147483647, %v369_v29 }
 0x238   :  { %389 = vperm.xlu0 %3051, %v382_v54   ;;  %v375_v54 = vmul.f32 0.5, %v369_v29  ;;  %vm928_vm15 = vcmp.eq.s32.totalorder %v3491_v12, %v876_v41  ;;  %v1388_v7 = vsel %vm1337_vm3, %v1325_v47, 0.0  ;;  %v2293_v18 = vmul.f32 %v2952_v32, %v2231_v63  ;;  %v4755_v41 = vld [vmem:[#allocation33_spill] sm:$0xff]  ;;  %v4756_v47 = vld [vmem:[#allocation26_spill] sm:$0xff] }
 0x239   :  { %v1389_v20 = vsel %vm1337_vm3, %v1326_v44, 0.0  ;;  %v1268_v60 = vrot.slane %v1108_v3, %v3442_v6  ;;  %v2075_v53 = vrot.slane %v770_v46, %v3432_v2  ;;  %v2079_v36 = vrot.slane %v770_v46, %v3500_v45  ;;  %v4093_v63 = vld [vmem:[%s4685_s11 + $0x10] sm:$0x3] }
 0x23a   :  { %2332 = vadd.xlane.f32.xlu1 %v2331_v8  ;;  %v2292_v8 = vmul.f32 %v2951_v15, %v2227_v9  ;;  %v2953_v24 = vsel %vm927_vm14, 1.0, %v4735_v11  ;;  %v1272_v0 = vrot.slane %v1112_v10, %v3442_v6  ;;  %v2954_v56 = vsel %vm928_vm15, 1.0, %v4735_v11  ;;  %v883_v17 = vpop.permute.xlu1 %882  ;;  %v4757_v10 = vld [vmem:[#allocation28_spill] sm:$0xff] }
 0x23b   :  { %vm4051_vm0 = vcmp.lt.f32.partialorder %v371_v37, 1.0  ;;  %v1390_v5 = vadd.f32 %v1389_v20, %v1388_v7  ;;  %v377_v58 = vmul.f32 %v375_v54, %v369_v29  ;;  %v2919_v30 = vadd.f32 -0.5, %v371_v37  ;;  %v4758_v37 = vld [vmem:[#allocation27_spill] sm:$0xff] }
 0x23c   :  { %v2354_v34 = vsel %vm1337_vm3, %v2292_v8, 0.0  ;;  %v2355_v62 = vsel %vm1337_vm3, %v2293_v18, 0.0  ;;  %v2235_v19 = vrot.slane %v2075_v53, %v3432_v2  ;;  %v2239_v13 = vrot.slane %v2079_v36, %v3432_v2 }
 0x23d   :  { %vm929_vm1 = vcmp.eq.s32.totalorder %v3486_v35, %v883_v17  ;;  %v1328_v27 = vmul.f32 %v2954_v56, %v1272_v0  ;;  %v1116_v59 = vrot.slane %v771_v40, %v3442_v6  ;;  %v1120_v28 = vrot.slane %v771_v40, %v3483_v33  ;;  %v4108_v0 = vld [vmem:[%s4685_s11 + $0x12] sm:$0x3] }
 0x23e   :  { %1371 = vadd.xlane.f32.xlu1 %v1370_v61  ;;  %v2083_v1 = vrot.slane %v771_v40, %v3432_v2  ;;  %vm930_vm2 = vcmp.eq.s32.totalorder %v3491_v12, %v883_v17  ;;  %v381_v26 = vsel %vm4051_vm0, %v377_v58, %v2919_v30  ;;  %v2955_v16 = vsel %vm929_vm1, 1.0, %v4735_v11  ;;  %v890_v43 = vpop.permute.xlu1 %889 }
 0x23f   :  { %v2356_v4 = vadd.f32 %v2355_v62, %v2354_v34  ;;  %v2294_v57 = vmul.f32 %v2953_v24, %v2235_v19  ;;  %v2295_v55 = vmul.f32 %v2954_v56, %v2239_v13  ;;  %v1394_v38 = vsel %vm1337_vm3, %v1328_v27, 0.0  ;;  %v773_v13 = vld [vmem:[%s4683_s9 + $0x38] sm:$0xf] }
 0x240   :  { %v1276_v52 = vrot.slane %v1116_v59, %v3442_v6  ;;  %v1280_v14 = vrot.slane %v1120_v28, %v3442_v6  ;;  %v2956_v15 = vsel %vm930_vm2, 1.0, %v4735_v11  ;;  %v1437_v32 = vrot.slane %v4073_v25, %v3442_v6 }
 0x241   :  { %v2243_v46 = vrot.slane %v2083_v1, %v3432_v2  ;;  %v476_v9 = vsub.f32 %v4756_v47, %v4755_v41  ;;  %v1124_v44 = vrot.slane %v772_v31, %v3442_v6  ;;  %v1128_v3 = vrot.slane %v772_v31, %v3483_v33 }
 0x242   :  { %2337 = vadd.xlane.f32.xlu1 %v2336_v39  ;;  %v1327_v39 = vmul.f32 %v2953_v24, %v1268_v60  ;;  %v477_v54 = vsub.f32 %v4758_v37, %v4757_v10  ;;  %v2359_v8 = vsel %vm1337_vm3, %v2294_v57, 0.0  ;;  %v2360_v18 = vsel %vm1337_vm3, %v2295_v55, 0.0  ;;  %v897_v27 = vpop.permute.xlu1 %896 }
 0x243   :  { %vm931_vm4 = vcmp.eq.s32.totalorder %v3486_v35, %v890_v43  ;;  %vm932_vm5 = vcmp.eq.s32.totalorder %v3491_v12, %v890_v43  ;;  %v1329_v20 = vmul.f32 %v2955_v16, %v1276_v52  ;;  %v1330_v60 = vmul.f32 %v2956_v15, %v1280_v14 }
 0x244   :  { %v1493_v53 = vrot.slane %v4093_v63, %v3442_v6  ;;  %v2296_v36 = vmul.f32 %v2955_v16, %v2243_v46  ;;  %v1284_v56 = vrot.slane %v1124_v44, %v3442_v6  ;;  %v1288_v17 = vrot.slane %v1128_v3, %v3442_v6 }
 0x245   :  { %v2091_v61 = vrot.slane %v772_v31, %v3432_v2  ;;  %v2958_v34 = vsel %vm932_vm5, 1.0, %v4735_v11  ;;  %v2361_v58 = vadd.f32 %v2360_v18, %v2359_v8  ;;  %v478_v30 = vmul.f32 %v476_v9, %v4752_v49  ;;  %v774_v8 = vld [vmem:[%s4683_s9 + $0x3c] sm:$0xf] }
 0x246   :  { %1376 = vadd.xlane.f32.xlu1 %v1375_v23  ;;  %v2087_v23 = vrot.slane %v771_v40, %v3500_v45  ;;  %v2095_v40 = vrot.slane %v772_v31, %v3500_v45  ;;  %v479_v62 = vmul.f32 %v477_v54, %v4747_v50  ;;  %v1399_v19 = vsel %vm1337_vm3, %v1330_v60, 0.0  ;;  %v778_v54 = vld [vmem:[%s4685_s11 + $0x2] sm:$0x3] }
 0x247   :  { %v1500_v59 = vrot.slane %v4108_v0, %v3442_v6  ;;  %v2364_v28 = vsel %vm1337_vm3, %v2296_v36, 0.0  ;;  %v1332_v50 = vmul.f32 %v2958_v34, %v1288_v17  ;;  %v1136_v57 = vrot.slane %v773_v13, %v3483_v33  ;;  %v904_v36 = vpop.permute.xlu1 %903 }
 0x248   :  { %v2247_v29 = vrot.slane %v2087_v23, %v3432_v2  ;;  %v2251_v23 = vrot.slane %v2091_v61, %v3432_v2  ;;  %vm933_vm6 = vcmp.eq.s32.totalorder %v3486_v35, %v897_v27  ;;  %v480_v55 = vand.u32 2147483647, %v478_v30 }
 0x249   :  { %v484_v31 = vmul.f32 0.5, %v478_v30  ;;  %vm934_vm7 = vcmp.eq.s32.totalorder %v3491_v12, %v897_v27  ;;  %v2387_v52 = vrot.slane %v4073_v25, %v3432_v2  ;;  %v485_v14 = vmul.f32 0.5, %v479_v62 }
 0x24a   :  { %2342 = vadd.xlane.f32.xlu1 %v2341_v42  ;;  %v1393_v42 = vsel %vm1337_vm3, %v1327_v39, 0.0  ;;  %v2297_v24 = vmul.f32 %v2956_v15, %v2247_v29  ;;  %v1398_v39 = vsel %vm1337_vm3, %v1329_v20, 0.0  ;;  %v1404_v43 = vsel %vm1337_vm3, %v1332_v50, 0.0 }
 0x24b   :  { %v1395_v7 = vadd.f32 %v1394_v38, %v1393_v42  ;;  %v1400_v16 = vadd.f32 %v1399_v19, %v1398_v39  ;;  %v481_v42 = vand.u32 2147483647, %v479_v62  ;;  %v1296_v41 = vrot.slane %v1136_v57, %v3442_v6 }
 0x24c   :  { %v2365_v49 = vsel %vm1337_vm3, %v2297_v24, 0.0  ;;  %v2099_v47 = vrot.slane %v773_v13, %v3432_v2  ;;  %v2103_v9 = vrot.slane %v773_v13, %v3500_v45  ;;  %v2959_v44 = vsel %vm933_vm6, 1.0, %v4735_v11 }
 0x24d   :  { %v2366_v38 = vadd.f32 %v2365_v49, %v2364_v28  ;;  %v2960_v25 = vsel %vm934_vm7, 1.0, %v4735_v11  ;;  %v486_v3 = vmul.f32 %v484_v31, %v478_v30  ;;  %v2921_v10 = vadd.f32 -0.5, %v480_v55 }
 0x24e   :  { %vm4145_vm9 = vcmp.lt.f32.partialorder %v480_v55, 1.0  ;;  %vm4149_vm10 = vcmp.lt.f32.partialorder %v481_v42, 1.0  ;;  %v2259_v17 = vrot.slane %v2099_v47, %v3432_v2  ;;  %v2263_v61 = vrot.slane %v2103_v9, %v3432_v2 }
 0x24f   :  { %vm935_vm12 = vcmp.eq.s32.totalorder %v3486_v35, %v904_v36  ;;  %vm936_vm13 = vcmp.eq.s32.totalorder %v3491_v12, %v904_v36  ;;  %v2107_v28 = vrot.slane %v774_v8, %v3432_v2  ;;  %v2111_v49 = vrot.slane %v774_v8, %v3500_v45 }
 0x250   :  { %v2300_v19 = vmul.f32 %v2959_v44, %v2259_v17  ;;  %v2961_v12 = vsel %vm935_vm12, 1.0, %v4735_v11  ;;  %v2443_v50 = vrot.slane %v4093_v63, %v3432_v2 }
 0x251   :  { %v2267_v31 = vrot.slane %v2107_v28, %v3432_v2 }
 0x257   :  { %1391 = vadd.xlane.f32.xlu0 %v1390_v5  ;;  %v2957_v5 = vsel %vm931_vm4, 1.0, %v4735_v11 }
 0x258   :  { %v1331_v1 = vmul.f32 %v2957_v5, %v1284_v56  ;;  %v1334_v56 = vmul.f32 %v2960_v25, %v1296_v41 }
 0x25a   :  { %v1403_v15 = vsel %vm1337_vm3, %v1331_v1, 0.0  ;;  %v1409_v39 = vsel %vm1337_vm3, %v1334_v56, 0.0  ;;  %v2962_v1 = vsel %vm936_vm13, 1.0, %v4735_v11  ;;  %v2271_v11 = vrot.slane %v2111_v49, %v3432_v2  ;;  %v787_v56 = vld [vmem:[%s4685_s11 + $0x14] sm:$0x3] }
 0x25b   :  { %2357 = vadd.xlane.f32.xlu0 %v2356_v4  ;;  %386 = vperm.xlu1 %3052, %v381_v26   ;;  %v2255_v26 = vrot.slane %v2095_v40, %v3432_v2  ;;  %v1132_v4 = vrot.slane %v773_v13, %v3442_v6  ;;  %v1405_v18 = vadd.f32 %v1404_v43, %v1403_v15 }
 0x25c   :  { %v490_v40 = vsel %vm4145_vm9, %v486_v3, %v2921_v10  ;;  %v2301_v13 = vmul.f32 %v2960_v25, %v2263_v61  ;;  %v2303_v15 = vmul.f32 %v2962_v1, %v2271_v11  ;;  %v1639_v25 = vrot.slane %v3867_v22, %v3442_v6  ;;  %v781_v10 = vld [vmem:[%s4685_s11 + $0x8] sm:$0x3] }
 0x25d   :  { %v2299_v46 = vmul.f32 %v2958_v34, %v2255_v26  ;;  %v1292_v29 = vrot.slane %v1132_v4, %v3442_v6  ;;  %v1144_v34 = vrot.slane %v774_v8, %v3483_v33  ;;  %v1465_v37 = vrot.slane %v781_v10, %v3442_v6 }
 0x25e   :  { %v2375_v4 = vsel %vm1337_vm3, %v2301_v13, 0.0  ;;  %v2380_v41 = vsel %vm1337_vm3, %v2303_v15, 0.0  ;;  %v1604_v61 = vrot.slane %v3861_v48, %v3500_v45  ;;  %v1590_v49 = vrot.slane %v3861_v48, %v3432_v2 }
 0x25f   :  { %1396 = vadd.xlane.f32.xlu0 %v1395_v7  ;;  %1439 = vbcast.lane.b32.xlu1 %v1437_v32, 256  ;;  %v2298_v32 = vmul.f32 %v2957_v5, %v2251_v23  ;;  %v2922_v7 = vadd.f32 -0.5, %v481_v42  ;;  %v2370_v60 = vsel %vm1337_vm3, %v2299_v46, 0.0  ;;  %v1333_v24 = vmul.f32 %v2959_v44, %v1292_v29  ;;  %v779_v23 = vld [vmem:[%s4685_s11 + $0x4] sm:$0x3] }
 0x260   :  { %v1140_v5 = vrot.slane %v774_v8, %v3442_v6  ;;  %v1451_v42 = vrot.slane %v779_v23, %v3442_v6  ;;  %v2401_v43 = vrot.slane %v779_v23, %v3432_v2  ;;  %v1583_v44 = vrot.slane %v3861_v48, %v3442_v6  ;;  %v789_v23 = vld [vmem:[%s4685_s11 + $0x18] sm:$0x3] }
 0x261   :  { %v2369_v20 = vsel %vm1337_vm3, %v2298_v32, 0.0  ;;  %v780_v32 = vld [vmem:[%s4685_s11 + $0x6] sm:$0x3]  ;;  %v1444_v8 = vrot.slane %v778_v54, %v3442_v6  ;;  %v1653_v11 = vrot.slane %v3867_v22, %v3483_v33 }
 0x262   :  { %v1300_v27 = vrot.slane %v1140_v5, %v3442_v6  ;;  %v1458_v47 = vrot.slane %v780_v32, %v3442_v6  ;;  %v2408_v3 = vrot.slane %v780_v32, %v3432_v2  ;;  %v1660_v32 = vrot.slane %v3867_v22, %v3500_v45 }
 0x263   :  { %2362 = vadd.xlane.f32.xlu0 %v2361_v58  ;;  %1495 = vbcast.lane.b32.xlu1 %v1493_v53, 256  ;;  %v487_v53 = vmul.f32 %v485_v14, %v479_v62  ;;  %v2371_v58 = vadd.f32 %v2370_v60, %v2369_v20  ;;  %v1408_v62 = vsel %vm1337_vm3, %v1333_v24, 0.0  ;;  %v2302_v14 = vmul.f32 %v2961_v12, %v2267_v31  ;;  %v782_v20 = vld [vmem:[%s4685_s11 + $0xa] sm:$0x3] }
 0x264   :  { %v1410_v26 = vadd.f32 %v1409_v39, %v1408_v62  ;;  %v1335_v57 = vmul.f32 %v2961_v12, %v1300_v27  ;;  %v2394_v60 = vrot.slane %v778_v54, %v3432_v2  ;;  %v1472_v36 = vrot.slane %v782_v20, %v3442_v6  ;;  %v4763_v27 = vld [vmem:[#allocation21_spill] sm:$0xff] }
 0x265   :  { %v491_v30 = vsel %vm4149_vm10, %v487_v53, %v2922_v7  ;;  %v2379_v29 = vsel %vm1337_vm3, %v2302_v14, 0.0  ;;  %v1597_v7 = vrot.slane %v3861_v48, %v3483_v33  ;;  %v2450_v24 = vrot.slane %v4108_v0, %v3432_v2  ;;  %v4234_v0 = vld [vmem:[%s4685_s11 + $0xc] sm:$0x3] }
 0x266   :  { %v2381_v9 = vadd.f32 %v2380_v41, %v2379_v29  ;;  %v1479_v39 = vrot.slane %v4234_v0, %v3442_v6  ;;  %v791_v41 = vld [vmem:[%s4685_s11 + $0x1c] sm:$0x3] }
 0x267   :  { %1401 = vadd.xlane.f32.xlu0 %v1400_v16  ;;  %1502 = vbcast.lane.b32.xlu1 %v1500_v59, 256  ;;  %v1304_v59 = vrot.slane %v1144_v34, %v3442_v6  ;;  %v2374_v16 = vsel %vm1337_vm3, %v2300_v19, 0.0  ;;  %v2422_v34 = vrot.slane %v782_v20, %v3432_v2 }
 0x268   :  { %v2376_v63 = vadd.f32 %v2375_v4, %v2374_v16  ;;  %v1521_v4 = vrot.slane %v789_v23, %v3442_v6 }
 0x269   :  { %v1336_v55 = vmul.f32 %v2962_v1, %v1304_v59  ;;  %v1611_v59 = vrot.slane %v3861_v48, %v4763_v27  ;;  %v1646_v1 = vrot.slane %v3867_v22, %v3432_v2 }
 0x26b   :  { %2367 = vadd.xlane.f32.xlu0 %v2366_v38  ;;  %2389 = vbcast.lane.b32.xlu1 %v2387_v52, 256  ;;  %v1413_v38 = vsel %vm1337_vm3, %v1335_v57, 0.0  ;;  %v1414_v52 = vsel %vm1337_vm3, %v1336_v55, 0.0  ;;  %vm399_vm3 = vcmask 1041409  }
 0x26c   :  { %v1415_v46 = vadd.f32 %v1414_v52, %v1413_v38  ;;  %v790_v38 = vld [vmem:[%s4685_s11 + $0x1a] sm:$0x3] }
 0x26d   :  { %v1528_v14 = vrot.slane %v790_v38, %v3442_v6  ;;  %v2478_v29 = vrot.slane %v790_v38, %v3432_v2 }
 0x26f   :  { %1406 = vadd.xlane.f32.xlu0 %v1405_v18  ;;  %495 = vperm.xlu1 %3052, %v490_v40   ;;  %v2415_v18 = vrot.slane %v781_v10, %v3432_v2  ;;  %v1507_v40 = vrot.slane %v787_v56, %v3442_v6  ;;  %v4764_v10 = vld [vmem:[#allocation19_spill] sm:$0xff] }
 0x273   :  { %2372 = vadd.xlane.f32.xlu0 %v2371_v58  ;;  %498 = vperm.xlu1 %3052, %v491_v30   ;;  %v2457_v58 = vrot.slane %v787_v56, %v3432_v2  ;;  %v788_v30 = vld [vmem:[%s4685_s11 + $0x16] sm:$0x3] }
 0x274   :  { %v1514_v19 = vrot.slane %v788_v30, %v3442_v6 }
 0x277   :  { %1411 = vadd.xlane.f32.xlu0 %v1410_v26  ;;  %2445 = vbcast.lane.b32.xlu1 %v2443_v50, 256  ;;  %v2464_v50 = vrot.slane %v788_v30, %v3432_v2 }
 0x27b   :  { %2377 = vadd.xlane.f32.xlu0 %v2376_v63  ;;  %1453 = vbcast.lane.b32.xlu1 %v1451_v42, 256  ;;  %v2471_v63 = vrot.slane %v789_v23, %v3432_v2  ;;  %v4768_v23 = vld [vmem:[#allocation24_spill] sm:$0xff] }
 0x27f   :  { %1416 = vadd.xlane.f32.xlu0 %v1415_v46  ;;  %2403 = vbcast.lane.b32.xlu1 %v2401_v43, 256 }
 0x283   :  { %2382 = vadd.xlane.f32.xlu0 %v2381_v9  ;;  %1460 = vbcast.lane.b32.xlu1 %v1458_v47, 256  ;;  %v1535_v9 = vrot.slane %v791_v41, %v3442_v6 }
 0x287   :  { %1585 = vbcast.lane.b32.xlu1 %v1583_v44, 256 }
 0x28b   :  { %1641 = vbcast.lane.b32.xlu1 %v1639_v25, 256 }
 0x28f   :  { %2410 = vbcast.lane.b32.xlu1 %v2408_v3, 256  ;;  %v1667_v3 = vrot.slane %v3867_v22, %v4763_v27 }
 0x293   :  { %1467 = vbcast.lane.b32.xlu1 %v1465_v37, 256  ;;  %v4310_v37 = vsub.s32 %v3486_v35, %v4764_v10 }
 0x295   :  { %4765 = vst [vmem:[#allocation20_spill] sm:$0xff] %v4310_v37 }
 0x297   :  { %1599 = vbcast.lane.b32.xlu1 %v1597_v7, 256  ;;  %v2485_v7 = vrot.slane %v791_v41, %v3432_v2 }
 0x299   :  { %1446 = vbcast.lane.b32.xlu0 %v1444_v8, 256  ;;  %v792_v8 = vld [vmem:[%s4685_s11 + $0x1e] sm:$0x3] }
 0x29a   :  { %v2492_v30 = vrot.slane %v792_v8, %v3432_v2 }
 0x29b   :  { %2417 = vbcast.lane.b32.xlu1 %v2415_v18, 256  ;;  %v4215_v53 = vpop.xlane.xlu1 %696  ;;  %v4261_v26 = vpop.xlane.xlu0 %724 }
 0x29d   :  { %2396 = vbcast.lane.b32.xlu0 %v2394_v60, 256 }
 0x29f   :  { %1474 = vbcast.lane.b32.xlu1 %v1472_v36, 256  ;;  %v4223_v17 = vpop.xlane.xlu1 %1381  ;;  %v4266_v57 = vpop.xlane.xlu0 %1341  ;;  %v1542_v36 = vrot.slane %v792_v8, %v3442_v6 }
 0x2a1   :  { %2452 = vbcast.lane.b32.xlu0 %v2450_v24, 256 }
 0x2a3   :  { %1606 = vbcast.lane.b32.xlu1 %v1604_v61, 256  ;;  %v4228_v5 = vpop.xlane.xlu1 %2307  ;;  %v4274_v42 = vpop.xlane.xlu0 %1346 }
 0x2a5   :  { %1509 = vbcast.lane.b32.xlu0 %v1507_v40, 256  ;;  %v4766_v40 = vld [vmem:[#allocation22_spill] sm:$0xff] }
 0x2a7   :  { %2424 = vbcast.lane.b32.xlu1 %v2422_v34, 256  ;;  %v4240_v62 = vpop.xlane.xlu1 %2347  ;;  %v4283_v15 = vpop.xlane.xlu0 %1386  ;;  %v1674_v34 = vrot.slane %v3867_v22, %v4766_v40 }
 0x2a9   :  { %2459 = vbcast.lane.b32.xlu0 %v2457_v58, 256 }
 0x2ab   :  { %1481 = vbcast.lane.b32.xlu1 %v1479_v39, 256  ;;  %v4245_v13 = vpop.xlane.xlu1 %1351  ;;  %v4291_v46 = vpop.xlane.xlu0 %2312 }
 0x2ad   :  { %1516 = vbcast.lane.b32.xlu0 %v1514_v19, 256 }
 0x2af   :  { %1613 = vbcast.lane.b32.xlu1 %v1611_v59, 256  ;;  %v4249_v28 = vpop.xlane.xlu1 %2317  ;;  %v4300_v44 = vpop.xlane.xlu0 %2352  ;;  %v4767_v59 = vld [vmem:[#allocation23_spill] sm:$0xff] }
 0x2b1   :  { %1592 = vbcast.lane.b32.xlu0 %v1590_v49, 256  ;;  %v1681_v49 = vrot.slane %v3867_v22, %v4767_v59 }
 0x2b3   :  { %v4253_v12 = vpop.xlane.xlu1 %1356 }
 0x2b5   :  { %1648 = vbcast.lane.b32.xlu0 %v1646_v1, 256 }
 0x2b7   :  { %v4263_v16 = vpop.xlane.xlu1 %2322  ;;  %v390_v54 = vpop.permute.xlu0 %389 }
 0x2b8   :  { %v398_v20 = vrot.slane %v390_v54, %v4310_v37 }
 0x2b9   :  { %2466 = vbcast.lane.b32.xlu0 %v2464_v50, 256 }
 0x2bb   :  { %v4268_v55 = vpop.xlane.xlu1 %1361 }
 0x2bd   :  { %1523 = vbcast.lane.b32.xlu0 %v1521_v4, 256  ;;  %v1688_v4 = vrot.slane %v3867_v22, %v4768_v23 }
 0x2bf   :  { %v4270_v31 = vpop.xlane.xlu1 %2327 }
 0x2c1   :  { %1655 = vbcast.lane.b32.xlu0 %v1653_v11, 256 }
 0x2c3   :  { %v4280_v52 = vpop.xlane.xlu1 %1366 }
 0x2c5   :  { %2473 = vbcast.lane.b32.xlu0 %v2471_v63, 256 }
 0x2c7   :  { %v4285_v43 = vpop.xlane.xlu1 %2332 }
 0x2c9   :  { %1530 = vbcast.lane.b32.xlu0 %v1528_v14, 256 }
 0x2cb   :  { %v4287_v33 = vpop.xlane.xlu1 %1371 }
 0x2cd   :  { %1662 = vbcast.lane.b32.xlu0 %v1660_v32, 256 }
 0x2cf   :  { %v4297_v47 = vpop.xlane.xlu1 %2337 }
 0x2d1   :  { %2480 = vbcast.lane.b32.xlu0 %v2478_v29, 256 }
 0x2d3   :  { %v4302_v25 = vpop.xlane.xlu1 %1376 }
 0x2d5   :  { %1537 = vbcast.lane.b32.xlu0 %v1535_v9, 256 }
 0x2d7   :  { %v4304_v45 = vpop.xlane.xlu1 %2342 }
 0x2d9   :  { %1669 = vbcast.lane.b32.xlu0 %v1667_v3, 256 }
 0x2db   :  { %v387_v18 = vpop.permute.xlu1 %386 }
 0x2dc   :  { %v394_v60 = vrot.slane %v387_v18, %v4310_v37 }
 0x2dd   :  { %2487 = vbcast.lane.b32.xlu0 %v2485_v7, 256 }
 0x2de   :  { %v400_v35 = vsel %vm399_vm3, %v398_v20, %v394_v60  ;;  %v2429_v20 = vrot.slane %v4234_v0, %v3432_v2  ;;  %v784_v60 = vld [vmem:[%s4685_s11 + $0xe] sm:$0x3] }
 0x2df   :  { %v1440_v24 = vpop.permute.xlu1 %1439  ;;  %v403_v56 = vsel %vm402_vm8, %v400_v35, 0.0 }
 0x2e0   :  { %404 = vadd.xlane.f32.xlu1 %v403_v56  ;;  %v1486_v56 = vrot.slane %v784_v60, %v3442_v6 }
 0x2e1   :  { %1544 = vbcast.lane.b32.xlu0 %v1542_v36, 256 }
 0x2e3   :  { %v1496_v61 = vpop.permute.xlu1 %1495 }
 0x2e4   :  { %v4323_v58 = vpop.xlane.xlu0 %1391 }
 0x2e5   :  { %1676 = vbcast.lane.b32.xlu0 %v1674_v34, 256 }
 0x2e7   :  { %v4326_v39 = vpop.permute.xlu1 %1502 }
 0x2e8   :  { %v4328_v19 = vpop.xlane.xlu0 %2357 }
 0x2e9   :  { %2494 = vbcast.lane.b32.xlu0 %v2492_v30, 256 }
 0x2eb   :  { %v2390_v27 = vpop.permute.xlu1 %2389 }
 0x2ec   :  { %v4332_v1 = vpop.xlane.xlu0 %1396 }
 0x2ed   :  { %1683 = vbcast.lane.b32.xlu0 %v1681_v49, 256 }
 0x2ef   :  { %v496_v50 = vpop.permute.xlu1 %495 }
 0x2f0   :  { %v4336_v11 = vpop.xlane.xlu0 %2362  ;;  %v503_v38 = vrot.slane %v496_v50, %v4310_v37  ;;  %v1618_v50 = vrot.slane %v3861_v48, %v4766_v40 }
 0x2f1   :  { %1690 = vbcast.lane.b32.xlu0 %v1688_v4, 256  ;;  %v2436_v4 = vrot.slane %v784_v60, %v3432_v2  ;;  %v2512_v2 = vsub.f32 %v4228_v5, %v2390_v27  ;;  %v1632_v60 = vrot.slane %v3861_v48, %v4768_v23 }
 0x2f3   :  { %v499_v63 = vpop.permute.xlu1 %498 }
 0x2f4   :  { %v507_v14 = vrot.slane %v499_v63, %v4310_v37  ;;  %v4340_v32 = vpop.xlane.xlu0 %1401  ;;  %v1562_v63 = vsub.f32 %v4266_v57, %v1440_v24 }
 0x2f6   :  { %v508_v29 = vsel %vm399_vm3, %v507_v14, %v503_v38 }
 0x2f7   :  { %v2446_v41 = vpop.permute.xlu1 %2445  ;;  %v510_v9 = vsel %vm402_vm8, %v508_v29, 0.0  ;;  %v1570_v29 = vsub.f32 %v4223_v17, %v1496_v61 }
 0x2f8   :  { %v4344_v3 = vpop.xlane.xlu0 %2367  ;;  %511 = vadd.xlane.f32.xlu1 %v510_v9 }
 0x2fb   :  { %v4346_v10 = vpop.permute.xlu1 %1453 }
 0x2fc   :  { %v4348_v22 = vpop.xlane.xlu0 %1406  ;;  %v1564_v23 = vsub.f32 %v4245_v13, %v4346_v10 }
 0x2ff   :  { %v4350_v54 = vpop.permute.xlu1 %2403 }
 0x300   :  { %v4352_v7 = vpop.xlane.xlu0 %2372 }
 0x303   :  { %v4354_v8 = vpop.permute.xlu1 %1460 }
 0x304   :  { %v4356_v18 = vpop.xlane.xlu0 %1411 }
 0x307   :  { %v1586_v36 = vpop.permute.xlu1 %1585 }
 0x308   :  { %v4363_v35 = vpop.xlane.xlu0 %2377  ;;  %v1708_v14 = vmul.f32 %v1586_v36, %v1562_v63  ;;  %v2528_v57 = vmul.f32 %v2512_v2, %v1586_v36 }
 0x309   :  { %2431 = vbcast.lane.b32.xlu1 %v2429_v20, 256  ;;  %v1625_v20 = vrot.slane %v3861_v48, %v4767_v59 }
 0x30a   :  { %v1724_v40 = vand.u32 2147483647, %v1708_v14  ;;  %v2544_v37 = vand.u32 2147483647, %v2528_v57  ;;  %v2576_v51 = vmul.f32 0.5, %v2528_v57 }
 0x30b   :  { %v1642_v34 = vpop.permute.xlu1 %1641 }
 0x30c   :  { %v4366_v30 = vpop.xlane.xlu0 %1416  ;;  %v1716_v21 = vmul.f32 %v1642_v34, %v1570_v29  ;;  %v2963_v59 = vadd.f32 -0.5, %v1724_v40  ;;  %vm1740_vm8 = vcmp.lt.f32.partialorder %v1724_v40, 1.0  ;;  %v2520_v29 = vsub.f32 %v4240_v62, %v2446_v41 }
 0x30d   :  { %1488 = vbcast.lane.b32.xlu1 %v1486_v56, 256  ;;  %v1756_v56 = vmul.f32 0.5, %v1708_v14  ;;  %v2592_v40 = vmul.f32 %v2576_v51, %v2528_v57  ;;  %vm4401_vm15 = vcmp.lt.f32.partialorder %v2544_v37, 1.0 }
 0x30e   :  { %v1732_v17 = vand.u32 2147483647, %v1716_v21  ;;  %v1764_v61 = vmul.f32 0.5, %v1716_v21  ;;  %v2536_v36 = vmul.f32 %v2520_v29, %v1642_v34 }
 0x30f   :  { %v4368_v49 = vpop.permute.xlu1 %2410 }
 0x310   :  { %v4372_v0 = vpop.xlane.xlu0 %2382  ;;  %v1780_v27 = vmul.f32 %v1764_v61, %v1716_v21  ;;  %v2971_v48 = vadd.f32 -0.5, %v1732_v17  ;;  %vm1748_vm14 = vcmp.lt.f32.partialorder %v1732_v17, 1.0  ;;  %v2979_v21 = vadd.f32 -0.5, %v2544_v37 }
 0x311   :  { %1620 = vbcast.lane.b32.xlu1 %v1618_v50, 256  ;;  %v2552_v34 = vand.u32 2147483647, %v2536_v36  ;;  %v1565_v37 = vsub.f32 %v4253_v12, %v4354_v8  ;;  %v1571_v12 = vsub.f32 %v4283_v15, %v4326_v39 }
 0x312   :  { %v1812_v61 = vsel %vm1748_vm14, %v1780_v27, %v2971_v48  ;;  %v2624_v13 = vsel %vm4401_vm15, %v2592_v40, %v2979_v21 }
 0x313   :  { %v4376_v38 = vpop.permute.xlu1 %1467  ;;  %v2987_v57 = vadd.f32 -0.5, %v2552_v34  ;;  %vm2568_vm0 = vcmp.lt.f32.partialorder %v2552_v34, 1.0 }
 0x314   :  { %v4378_v6 = vpop.permute.xlu0 %1446 }
 0x315   :  { %2438 = vbcast.lane.b32.xlu1 %v2436_v4, 256  ;;  %v1772_v4 = vmul.f32 %v1756_v56, %v1708_v14  ;;  %v2514_v14 = vsub.f32 %v4249_v28, %v4350_v54  ;;  %v2584_v56 = vmul.f32 0.5, %v2536_v36 }
 0x317   :  { %v1600_v9 = vpop.permute.xlu1 %1599  ;;  %v1804_v2 = vsel %vm1740_vm8, %v1772_v4, %v2963_v59  ;;  %v2600_v51 = vmul.f32 %v2584_v56, %v2536_v36  ;;  %v2515_v36 = vsub.f32 %v4263_v16, %v4368_v49 }
 0x318   :  { %v4383_v50 = vpop.permute.xlu0 %2396  ;;  %v2530_v17 = vmul.f32 %v2514_v14, %v1600_v9 }
 0x319   :  { %1627 = vbcast.lane.b32.xlu1 %v1625_v20, 256  ;;  %v2632_v40 = vsel %vm2568_vm0, %v2600_v51, %v2987_v57 }
 0x31a   :  { %v2546_v29 = vand.u32 2147483647, %v2530_v17  ;;  %v2578_v27 = vmul.f32 0.5, %v2530_v17 }
 0x31b   :  { %v4386_v24 = vpop.permute.xlu1 %2417 }
 0x31c   :  { %v4390_v63 = vpop.permute.xlu0 %2452  ;;  %v2981_v56 = vadd.f32 -0.5, %v2546_v29  ;;  %vm4429_vm2 = vcmp.lt.f32.partialorder %v2546_v29, 1.0 }
 0x31d   :  { %1634 = vbcast.lane.b32.xlu1 %v1632_v60, 256  ;;  %v1710_v60 = vmul.f32 %v1600_v9, %v1564_v23  ;;  %v1563_v9 = vsub.f32 %v4274_v42, %v4378_v6  ;;  %v2594_v42 = vmul.f32 %v2578_v27, %v2530_v17  ;;  %v2513_v6 = vsub.f32 %v4291_v46, %v4383_v50 }
 0x31e   :  { %v1566_v17 = vsub.f32 %v4268_v55, %v4376_v38  ;;  %v2521_v46 = vsub.f32 %v4300_v44, %v4390_v63  ;;  %v2516_v63 = vsub.f32 %v4270_v31, %v4386_v24 }
 0x31f   :  { %v4393_v5 = vpop.permute.xlu1 %1474  ;;  %v1726_v28 = vand.u32 2147483647, %v1710_v60  ;;  %v1758_v10 = vmul.f32 0.5, %v1710_v60 }
 0x320   :  { %v4395_v20 = vpop.permute.xlu0 %1509 }
 0x321   :  { %1837 = vperm.xlu1 %3052, %v1804_v2   ;;  %v1774_v23 = vmul.f32 %v1758_v10, %v1710_v60  ;;  %v2965_v41 = vadd.f32 -0.5, %v1726_v28  ;;  %vm4423_vm1 = vcmp.lt.f32.partialorder %v1726_v28, 1.0 }
 0x323   :  { %v1607_v62 = vpop.permute.xlu1 %1606 }
 0x324   :  { %v4405_v4 = vpop.permute.xlu0 %2459  ;;  %v1711_v2 = vmul.f32 %v1607_v62, %v1565_v37  ;;  %v2531_v34 = vmul.f32 %v2515_v36, %v1607_v62  ;;  %v2626_v37 = vsel %vm4429_vm2, %v2594_v42, %v2981_v56 }
 0x325   :  { %1861 = vperm.xlu1 %3052, %v1812_v61  }
 0x326   :  { %v1727_v16 = vand.u32 2147483647, %v1711_v2  ;;  %v1759_v49 = vmul.f32 0.5, %v1711_v2  ;;  %v2547_v28 = vand.u32 2147483647, %v2531_v34  ;;  %v2579_v10 = vmul.f32 0.5, %v2531_v34 }
 0x327   :  { %v4407_v59 = vpop.permute.xlu1 %2424 }
 0x328   :  { %v4411_v54 = vpop.permute.xlu0 %1516  ;;  %v1775_v29 = vmul.f32 %v1759_v49, %v1711_v2  ;;  %v2966_v36 = vadd.f32 -0.5, %v1727_v16  ;;  %vm4443_vm5 = vcmp.lt.f32.partialorder %v1727_v16, 1.0  ;;  %v2595_v42 = vmul.f32 %v2579_v10, %v2531_v34 }
 0x329   :  { %2657 = vperm.xlu1 %3052, %v2624_v13   ;;  %v1806_v13 = vsel %vm4423_vm1, %v1774_v23, %v2965_v41  ;;  %vm4455_vm7 = vcmp.lt.f32.partialorder %v2547_v28, 1.0  ;;  %v2982_v31 = vadd.f32 -0.5, %v2547_v28  ;;  %v1573_v56 = vsub.f32 %v4332_v1, %v4411_v54 }
 0x32b   :  { %v4417_v48 = vpop.permute.xlu1 %1481 }
 0x32c   :  { %v1593_v14 = vpop.permute.xlu0 %1592 }
 0x32d   :  { %v1709_v8 = vmul.f32 %v1593_v14, %v1563_v9  ;;  %2681 = vperm.xlu1 %3052, %v2632_v40   ;;  %v2529_v50 = vmul.f32 %v2513_v6, %v1593_v14  ;;  %v1807_v6 = vsel %vm4443_vm5, %v1775_v29, %v2966_v36 }
 0x32f   :  { %v1757_v60 = vmul.f32 0.5, %v1709_v8  ;;  %v1725_v15 = vand.u32 2147483647, %v1709_v8  ;;  %v1614_v62 = vpop.permute.xlu1 %1613  ;;  %v2545_v14 = vand.u32 2147483647, %v2529_v50  ;;  %v2577_v41 = vmul.f32 0.5, %v2529_v50 }
 0x330   :  { %v1649_v39 = vpop.permute.xlu0 %1648  ;;  %v1712_v23 = vmul.f32 %v1614_v62, %v1566_v17  ;;  %v2532_v49 = vmul.f32 %v2516_v63, %v1614_v62  ;;  %v1572_v17 = vsub.f32 %v4323_v58, %v4395_v20  ;;  %v2627_v62 = vsel %vm4455_vm7, %v2595_v42, %v2982_v31 }
 0x331   :  { %v1717_v51 = vmul.f32 %v1649_v39, %v1571_v12  ;;  %1843 = vperm.xlu1 %3052, %v1806_v13   ;;  %v1773_v57 = vmul.f32 %v1757_v60, %v1709_v8  ;;  %vm1741_vm4 = vcmp.lt.f32.partialorder %v1725_v15, 1.0  ;;  %v2964_v55 = vadd.f32 -0.5, %v1725_v15 }
 0x332   :  { %v2537_v12 = vmul.f32 %v2521_v46, %v1649_v39  ;;  %v1728_v24 = vand.u32 2147483647, %v1712_v23  ;;  %v1760_v16 = vmul.f32 0.5, %v1712_v23  ;;  %v2593_v15 = vmul.f32 %v2577_v41, %v2529_v50 }
 0x333   :  { %v1733_v27 = vand.u32 2147483647, %v1717_v51  ;;  %v1765_v9 = vmul.f32 0.5, %v1717_v51  ;;  %v1805_v8 = vsel %vm1741_vm4, %v1773_v57, %v2964_v55  ;;  %v2980_v13 = vadd.f32 -0.5, %v2545_v14 }
 0x334   :  { %v4441_v38 = vpop.permute.xlu0 %2466  ;;  %1840 = vperm.xlu0 %3051, %v1805_v8   ;;  %v2553_v34 = vand.u32 2147483647, %v2537_v12  ;;  %v2585_v39 = vmul.f32 0.5, %v2537_v12  ;;  %v2522_v46 = vsub.f32 %v4328_v19, %v4405_v4  ;;  %vm4467_vm9 = vcmp.lt.f32.partialorder %v2545_v14, 1.0 }
 0x335   :  { %v1781_v40 = vmul.f32 %v1765_v9, %v1717_v51  ;;  %2663 = vperm.xlu1 %3052, %v2626_v37   ;;  %vm4449_vm6 = vcmp.lt.f32.partialorder %v1733_v27, 1.0  ;;  %v2972_v21 = vadd.f32 -0.5, %v1733_v27  ;;  %v1776_v28 = vmul.f32 %v1760_v16, %v1712_v23 }
 0x336   :  { %v2548_v10 = vand.u32 2147483647, %v2532_v49  ;;  %v2580_v50 = vmul.f32 0.5, %v2532_v49  ;;  %v2967_v37 = vadd.f32 -0.5, %v1728_v24  ;;  %vm1744_vm10 = vcmp.lt.f32.partialorder %v1728_v24, 1.0 }
 0x337   :  { %v1813_v61 = vsel %vm4449_vm6, %v1781_v40, %v2972_v21  ;;  %v2601_v58 = vmul.f32 %v2585_v39, %v2537_v12  ;;  %v2625_v19 = vsel %vm4467_vm9, %v2593_v15, %v2980_v13  ;;  %v2988_v4 = vadd.f32 -0.5, %v2553_v34 }
 0x338   :  { %v4459_v60 = vpop.permute.xlu0 %1523  ;;  %1864 = vperm.xlu0 %3051, %v1813_v61   ;;  %vm2569_vm12 = vcmp.lt.f32.partialorder %v2553_v34, 1.0  ;;  %v2596_v36 = vmul.f32 %v2580_v50, %v2532_v49  ;;  %v1808_v23 = vsel %vm1744_vm10, %v1776_v28, %v2967_v37  ;;  %v2983_v44 = vadd.f32 -0.5, %v2548_v10 }
 0x339   :  { %1846 = vperm.xlu1 %3052, %v1807_v6   ;;  %vm2564_vm8 = vcmp.lt.f32.partialorder %v2548_v10, 1.0  ;;  %v2633_v2 = vsel %vm2569_vm12, %v2601_v58, %v2988_v4  ;;  %v2523_v31 = vsub.f32 %v4336_v11, %v4441_v38  ;;  %v1574_v11 = vsub.f32 %v4340_v32, %v4459_v60 }
 0x33a   :  { %v2628_v21 = vsel %vm2564_vm8, %v2596_v36, %v2983_v44 }
 0x33c   :  { %v1656_v57 = vpop.permute.xlu0 %1655  ;;  %2660 = vperm.xlu0 %3051, %v2625_v19  }
 0x33d   :  { %v1718_v29 = vmul.f32 %v1656_v57, %v1572_v17  ;;  %2666 = vperm.xlu1 %3052, %v2627_v62   ;;  %v2538_v20 = vmul.f32 %v2522_v46, %v1656_v57 }
 0x33f   :  { %v1734_v27 = vand.u32 2147483647, %v1718_v29  ;;  %v1766_v9 = vmul.f32 0.5, %v1718_v29  ;;  %v2554_v14 = vand.u32 2147483647, %v2538_v20  ;;  %v2586_v40 = vmul.f32 0.5, %v2538_v20 }
 0x340   :  { %v2474_v55 = vpop.permute.xlu0 %2473  ;;  %2684 = vperm.xlu0 %3051, %v2633_v2  }
 0x341   :  { %v1782_v63 = vmul.f32 %v1766_v9, %v1718_v29  ;;  %1849 = vperm.xlu1 %3052, %v1808_v23   ;;  %vm1750_vm13 = vcmp.lt.f32.partialorder %v1734_v27, 1.0  ;;  %v2973_v41 = vadd.f32 -0.5, %v1734_v27  ;;  %v2602_v42 = vmul.f32 %v2586_v40, %v2538_v20 }
 0x342   :  { %v2989_v6 = vadd.f32 -0.5, %v2554_v14  ;;  %vm2570_vm14 = vcmp.lt.f32.partialorder %v2554_v14, 1.0  ;;  %v2524_v38 = vsub.f32 %v4344_v3, %v2474_v55 }
 0x343   :  { %v1814_v8 = vsel %vm1750_vm13, %v1782_v63, %v2973_v41 }
 0x344   :  { %v1531_v12 = vpop.permute.xlu0 %1530  ;;  %1867 = vperm.xlu0 %3051, %v1814_v8   ;;  %v2634_v61 = vsel %vm2570_vm14, %v2602_v42, %v2989_v6 }
 0x345   :  { %2669 = vperm.xlu1 %3052, %v2628_v21   ;;  %v1575_v32 = vsub.f32 %v4348_v22, %v1531_v12 }
 0x348   :  { %v1663_v24 = vpop.permute.xlu0 %1662  ;;  %2687 = vperm.xlu0 %3051, %v2634_v61  }
 0x349   :  { %v1719_v16 = vmul.f32 %v1663_v24, %v1573_v56  ;;  %v2539_v49 = vmul.f32 %v2523_v31, %v1663_v24 }
 0x34b   :  { %v1735_v15 = vand.u32 2147483647, %v1719_v16  ;;  %v1767_v34 = vmul.f32 0.5, %v1719_v16  ;;  %v2555_v39 = vand.u32 2147483647, %v2539_v49  ;;  %v2587_v13 = vmul.f32 0.5, %v2539_v49 }
 0x34c   :  { %v2481_v17 = vpop.permute.xlu0 %2480 }
 0x34d   :  { %v1783_v46 = vmul.f32 %v1767_v34, %v1719_v16  ;;  %vm1751_vm15 = vcmp.lt.f32.partialorder %v1735_v15, 1.0  ;;  %v2974_v51 = vadd.f32 -0.5, %v1735_v15  ;;  %v2603_v62 = vmul.f32 %v2587_v13, %v2539_v49 }
 0x34e   :  { %v2990_v28 = vadd.f32 -0.5, %v2555_v39  ;;  %vm2571_vm0 = vcmp.lt.f32.partialorder %v2555_v39, 1.0  ;;  %v2525_v3 = vsub.f32 %v4352_v7, %v2481_v17 }
 0x34f   :  { %v1815_v54 = vsel %vm1751_vm15, %v1783_v46, %v2974_v51 }
 0x350   :  { %v1538_v1 = vpop.permute.xlu0 %1537  ;;  %1870 = vperm.xlu0 %3051, %v1815_v54   ;;  %v2635_v50 = vsel %vm2571_vm0, %v2603_v62, %v2990_v28 }
 0x351   :  { %v1576_v31 = vsub.f32 %v4356_v18, %v1538_v1 }
 0x354   :  { %v1670_v10 = vpop.permute.xlu0 %1669  ;;  %2690 = vperm.xlu0 %3051, %v2635_v50  }
 0x355   :  { %v1720_v57 = vmul.f32 %v1670_v10, %v1574_v11  ;;  %v2540_v37 = vmul.f32 %v2524_v38, %v1670_v10 }
 0x357   :  { %v1736_v29 = vand.u32 2147483647, %v1720_v57  ;;  %v1768_v58 = vmul.f32 0.5, %v1720_v57  ;;  %v2556_v20 = vand.u32 2147483647, %v2540_v37  ;;  %v2588_v19 = vmul.f32 0.5, %v2540_v37 }
 0x358   :  { %v2488_v4 = vpop.permute.xlu0 %2487 }
 0x359   :  { %v1784_v27 = vmul.f32 %v1768_v58, %v1720_v57  ;;  %vm1752_vm1 = vcmp.lt.f32.partialorder %v1736_v29, 1.0  ;;  %v2975_v9 = vadd.f32 -0.5, %v1736_v29  ;;  %v2604_v36 = vmul.f32 %v2588_v19, %v2540_v37 }
 0x35a   :  { %v2991_v63 = vadd.f32 -0.5, %v2556_v20  ;;  %vm2572_vm2 = vcmp.lt.f32.partialorder %v2556_v20, 1.0  ;;  %v2526_v24 = vsub.f32 %v4363_v35, %v2488_v4 }
 0x35b   :  { %v1816_v44 = vsel %vm1752_vm1, %v1784_v27, %v2975_v9 }
 0x35c   :  { %v1545_v23 = vpop.permute.xlu0 %1544  ;;  %1873 = vperm.xlu0 %3051, %v1816_v44   ;;  %v2636_v55 = vsel %vm2572_vm2, %v2604_v36, %v2991_v63  ;;  %vm2824_vm2 = vcmask 1040384  }
 0x35d   :  { %v1577_v15 = vsub.f32 %v4366_v30, %v1545_v23 }
 0x360   :  { %v1677_v60 = vpop.permute.xlu0 %1676  ;;  %2693 = vperm.xlu0 %3051, %v2636_v55  }
 0x361   :  { %v1721_v14 = vmul.f32 %v1677_v60, %v1575_v32  ;;  %v2541_v40 = vmul.f32 %v2525_v3, %v1677_v60  ;;  %v4783_v3 = vld [vmem:[#allocation30_spill] sm:$0xff] }
 0x362   :  { %v524_v60 = vrot.slane %v4783_v3, 4 }
 0x363   :  { %v1737_v2 = vand.u32 2147483647, %v1721_v14  ;;  %v1769_v41 = vmul.f32 0.5, %v1721_v14  ;;  %v2557_v8 = vand.u32 2147483647, %v2541_v40  ;;  %v2589_v21 = vmul.f32 0.5, %v2541_v40 }
 0x364   :  { %v2495_v42 = vpop.permute.xlu0 %2494  ;;  %v525_v55 = vadd.f32 %v524_v60, %v4783_v3  ;;  %v698_v3 = vrot.slane %v4215_v53, 4  ;;  %v726_v60 = vrot.slane %v4261_v26, 4 }
 0x365   :  { %v1785_v6 = vmul.f32 %v1769_v41, %v1721_v14  ;;  %vm1753_vm4 = vcmp.lt.f32.partialorder %v1737_v2, 1.0  ;;  %v2976_v56 = vadd.f32 -0.5, %v1737_v2  ;;  %v2605_v22 = vmul.f32 %v2589_v21, %v2541_v40 }
 0x366   :  { %v2992_v16 = vadd.f32 -0.5, %v2557_v8  ;;  %vm2573_vm5 = vcmp.lt.f32.partialorder %v2557_v8, 1.0  ;;  %v2527_v18 = vsub.f32 %v4372_v0, %v2495_v42  ;;  %v526_v40 = vrot.slane %v525_v55, 2 }
 0x367   :  { %v1817_v7 = vsel %vm1753_vm4, %v1785_v6, %v2976_v56  ;;  %vm1949_vm4 = vcmask 1042434  }
 0x368   :  { %v1684_v12 = vpop.permute.xlu0 %1683  ;;  %1876 = vperm.xlu0 %3051, %v1817_v7   ;;  %v2637_v51 = vsel %vm2573_vm5, %v2605_v22, %v2992_v16  ;;  %v527_v21 = vadd.f32 %v526_v40, %v525_v55  ;;  %v1567_v22 = vsub.f32 %v4280_v52, %v4393_v5  ;;  %v1568_v52 = vsub.f32 %v4287_v33, %v4417_v48 }
 0x369   :  { %v1722_v49 = vmul.f32 %v1684_v12, %v1576_v31  ;;  %v2542_v61 = vmul.f32 %v2526_v24, %v1684_v12  ;;  %v2517_v12 = vsub.f32 %v4285_v43, %v4407_v59  ;;  %v699_v55 = vadd.f32 %v698_v3, %v4215_v53 }
 0x36a   :  { %v528_v31 = vrot.slane %v527_v21, 1  ;;  %vm1951_vm5 = vcmask 1043459  }
 0x36b   :  { %v1738_v34 = vand.u32 2147483647, %v1722_v49  ;;  %v1770_v39 = vmul.f32 0.5, %v1722_v49  ;;  %v2590_v13 = vmul.f32 0.5, %v2542_v61  ;;  %v2558_v17 = vand.u32 2147483647, %v2542_v61 }
 0x36c   :  { %v1691_v46 = vpop.permute.xlu0 %1690  ;;  %2696 = vperm.xlu0 %3051, %v2637_v51   ;;  %v700_v40 = vrot.slane %v699_v55, 2 }
 0x36d   :  { %v1786_v62 = vmul.f32 %v1770_v39, %v1722_v49  ;;  %v1723_v35 = vmul.f32 %v1691_v46, %v1577_v15  ;;  %v405_v1 = vpop.xlane.xlu1 %404  ;;  %vm1754_vm6 = vcmp.lt.f32.partialorder %v1738_v34, 1.0  ;;  %v2977_v28 = vadd.f32 -0.5, %v1738_v34 }
 0x36e   :  { %v406_v54 = vrot.slane %v405_v1, 4  ;;  %v2606_v11 = vmul.f32 %v2590_v13, %v2542_v61  ;;  %v2543_v10 = vmul.f32 %v2527_v18, %v1691_v46  ;;  %v2993_v37 = vadd.f32 -0.5, %v2558_v17 }
 0x36f   :  { %v1739_v38 = vand.u32 2147483647, %v1723_v35  ;;  %v1771_v50 = vmul.f32 0.5, %v1723_v35  ;;  %v1818_v57 = vsel %vm1754_vm6, %v1786_v62, %v2977_v28  ;;  %vm2574_vm7 = vcmp.lt.f32.partialorder %v2558_v17, 1.0 }
 0x370   :  { %v407_v30 = vadd.f32 %v406_v54, %v405_v1  ;;  %1879 = vperm.xlu0 %3051, %v1818_v57   ;;  %v2559_v58 = vand.u32 2147483647, %v2543_v10  ;;  %v2591_v20 = vmul.f32 0.5, %v2543_v10  ;;  %v2638_v19 = vsel %vm2574_vm7, %v2606_v11, %v2993_v37 }
 0x371   :  { %v1787_v0 = vmul.f32 %v1771_v50, %v1723_v35  ;;  %v2978_v4 = vadd.f32 -0.5, %v1739_v38  ;;  %vm1755_vm9 = vcmp.lt.f32.partialorder %v1739_v38, 1.0  ;;  %v529_v49 = vadd.f32 %v528_v31, %v527_v21 }
 0x372   :  { %v408_v29 = vrot.slane %v407_v30, 2  ;;  %v2607_v36 = vmul.f32 %v2591_v20, %v2543_v10  ;;  %v2994_v63 = vadd.f32 -0.5, %v2559_v58  ;;  %vm2575_vm10 = vcmp.lt.f32.partialorder %v2559_v58, 1.0 }
 0x373   :  { %v1819_v23 = vsel %vm1755_vm9, %v1787_v0, %v2978_v4  ;;  %vm1953_vm6 = vcmask 1044484   ;;  %vm1955_vm7 = vcmask 1045509   ;;  %vm1957_vm9 = vcmask 1046534  }
 0x374   :  { %v409_v27 = vadd.f32 %v408_v29, %v407_v30  ;;  %2699 = vperm.xlu0 %3051, %v2638_v19   ;;  %v2639_v32 = vsel %vm2575_vm10, %v2607_v36, %v2994_v63  ;;  %vm1959_vm10 = vcmask 1047559  }
 0x376   :  { %v410_v9 = vrot.slane %v409_v27, 1 }
 0x378   :  { %v411_v44 = vadd.f32 %v410_v9, %v409_v27  ;;  %1882 = vperm.xlu0 %3051, %v1819_v23  }
 0x37a   :  { %3006 = vpush %v411_v44 }
 0x37c   :  { %2702 = vperm.xlu0 %3051, %v2639_v32  }
 0x385   :  { %v512_v14 = vpop.xlane.xlu1 %511 }
 0x386   :  { %v513_v2 = vrot.slane %v512_v14, 4 }
 0x388   :  { %v514_v41 = vadd.f32 %v513_v2, %v512_v14  ;;  %v727_v14 = vadd.f32 %v726_v60, %v4261_v26 }
 0x389   :  { %v2432_v8 = vpop.permute.xlu1 %2431 }
 0x38a   :  { %v515_v42 = vrot.slane %v514_v41, 2  ;;  %v2518_v43 = vsub.f32 %v4297_v47, %v2432_v8  ;;  %v701_v8 = vadd.f32 %v700_v40, %v699_v55 }
 0x38c   :  { %v516_v6 = vadd.f32 %v515_v42, %v514_v41  ;;  %v728_v41 = vrot.slane %v727_v14, 2  ;;  %v702_v42 = vrot.slane %v701_v8, 1 }
 0x38d   :  { %v1489_v56 = vpop.permute.xlu1 %1488 }
 0x38e   :  { %v517_v24 = vrot.slane %v516_v6, 1  ;;  %v1569_v28 = vsub.f32 %v4302_v25, %v1489_v56  ;;  %v729_v21 = vadd.f32 %v728_v41, %v727_v14  ;;  %v4784_v56 = vld [vmem:[#allocation39_spill] sm:$0xff]  ;;  %v2839_v41 = vld [vmem:[%s4689_s15 + $0x8] sm:$0x3] }
 0x390   :  { %v518_v7 = vadd.f32 %v517_v24, %v516_v6  ;;  %v730_v6 = vrot.slane %v729_v21, 1 }
 0x391   :  { %v1621_v16 = vpop.permute.xlu1 %1620 }
 0x392   :  { %v1713_v61 = vmul.f32 %v1621_v16, %v1567_v22  ;;  %v2533_v15 = vmul.f32 %v2517_v12, %v1621_v16  ;;  %3008 = vpush %v518_v7  ;;  %v703_v22 = vadd.f32 %v702_v42, %v701_v8  ;;  %v731_v53 = vadd.f32 %v730_v6, %v729_v21  ;;  %v2841_v8 = vld [vmem:[%s4690_s16 + $0x8] sm:$0x3] }
 0x393   :  { %3010 = vpush %v529_v49 }
 0x394   :  { %v1729_v34 = vand.u32 2147483647, %v1713_v61  ;;  %v1761_v39 = vmul.f32 0.5, %v1713_v61  ;;  %v2549_v13 = vand.u32 2147483647, %v2533_v15  ;;  %v2581_v17 = vmul.f32 0.5, %v2533_v15 }
 0x395   :  { %v2439_v46 = vpop.permute.xlu1 %2438 }
 0x396   :  { %v1777_v51 = vmul.f32 %v1761_v39, %v1713_v61  ;;  %vm1745_vm12 = vcmp.lt.f32.partialorder %v1729_v34, 1.0  ;;  %v2968_v18 = vadd.f32 -0.5, %v1729_v34  ;;  %v2597_v5 = vmul.f32 %v2581_v17, %v2533_v15  ;;  %v2815_v34 = vld [vmem:[#allocation11] sm:$0x1]  ;;  %v2816_v39 = vld [vmem:[%s4688_s14] sm:$0x1] }
 0x397   :  { %v2984_v35 = vadd.f32 -0.5, %v2549_v13  ;;  %vm2565_vm13 = vcmp.lt.f32.partialorder %v2549_v13, 1.0  ;;  %v2519_v33 = vsub.f32 %v4304_v45, %v2439_v46  ;;  %v2817_v13 = vsub.f32 %v2815_v34, %v2816_v39 }
 0x398   :  { %v1809_v59 = vsel %vm1745_vm12, %v1777_v51, %v2968_v18 }
 0x399   :  { %v1628_v62 = vpop.permute.xlu1 %1627  ;;  %1852 = vperm.xlu1 %3052, %v1809_v59   ;;  %v2629_v30 = vsel %vm2565_vm13, %v2597_v5, %v2984_v35  ;;  %v2818_v17 = vand.u32 2147483647, %v2817_v13  ;;  %v2820_v46 = vmul.f32 0.5, %v2817_v13  ;;  %vm2856_vm13 = vcmask 1041408  }
 0x39a   :  { %v1714_v1 = vmul.f32 %v1628_v62, %v1568_v52  ;;  %v2534_v54 = vmul.f32 %v2518_v43, %v1628_v62 }
 0x39b   :  { %vm2819_vm1 = vcmp.lt.f32.partialorder %v2818_v17, 1.0  ;;  %v2821_v52 = vmul.f32 %v2820_v46, %v2817_v13  ;;  %v2995_v43 = vadd.f32 -0.5, %v2818_v17  ;;  %v2838_v13 = vld [vmem:[%s4689_s15] sm:$0xff] }
 0x39c   :  { %v1730_v11 = vand.u32 2147483647, %v1714_v1  ;;  %v1762_v38 = vmul.f32 0.5, %v1714_v1  ;;  %v2582_v10 = vmul.f32 0.5, %v2534_v54  ;;  %v2550_v50 = vand.u32 2147483647, %v2534_v54 }
 0x39d   :  { %v1635_v57 = vpop.permute.xlu1 %1634  ;;  %2672 = vperm.xlu1 %3052, %v2629_v30   ;;  %v2823_v5 = vsel %vm2819_vm1, %v2821_v52, %v2995_v43  ;;  %v2840_v17 = vld [vmem:[%s4690_s16] sm:$0xff] }
 0x39e   :  { %v1778_v48 = vmul.f32 %v1762_v38, %v1714_v1  ;;  %v1715_v47 = vmul.f32 %v1635_v57, %v1569_v28  ;;  %vm1746_vm8 = vcmp.lt.f32.partialorder %v1730_v11, 1.0  ;;  %v2969_v37 = vadd.f32 -0.5, %v1730_v11 }
 0x39f   :  { %v2598_v29 = vmul.f32 %v2582_v10, %v2534_v54  ;;  %v2535_v58 = vmul.f32 %v2519_v33, %v1635_v57  ;;  %v2985_v4 = vadd.f32 -0.5, %v2550_v50  ;;  %vm2566_vm14 = vcmp.lt.f32.partialorder %v2550_v50, 1.0 }
 0x3a0   :  { %v1731_v20 = vand.u32 2147483647, %v1715_v47  ;;  %v1763_v0 = vmul.f32 0.5, %v1715_v47  ;;  %v1810_v19 = vsel %vm1746_vm8, %v1778_v48, %v2969_v37  ;;  %v2825_v59 = vsel %vm2824_vm2, %v2823_v5, 0.0 }
 0x3a1   :  { %1855 = vperm.xlu1 %3052, %v1810_v19   ;;  %v2551_v25 = vand.u32 2147483647, %v2535_v58  ;;  %v2583_v9 = vmul.f32 0.5, %v2535_v58  ;;  %v2630_v36 = vsel %vm2566_vm14, %v2598_v29, %v2985_v4  ;;  %v1838_v12 = vpop.permute.xlu1 %1837 }
 0x3a2   :  { %v1779_v27 = vmul.f32 %v1763_v0, %v1715_v47  ;;  %v2970_v23 = vadd.f32 -0.5, %v1731_v20  ;;  %vm1747_vm15 = vcmp.lt.f32.partialorder %v1731_v20, 1.0  ;;  %v4785_v47 = vld [vmem:[#allocation20_spill] sm:$0xff] }
 0x3a3   :  { %v2599_v45 = vmul.f32 %v2583_v9, %v2535_v58  ;;  %v2986_v63 = vadd.f32 -0.5, %v2551_v25  ;;  %vm2567_vm0 = vcmp.lt.f32.partialorder %v2551_v25, 1.0  ;;  %v1887_v19 = vrot.slane %v1838_v12, %v4785_v47 }
 0x3a4   :  { %v1811_v44 = vsel %vm1747_vm15, %v1779_v27, %v2970_v23 }
 0x3a5   :  { %2675 = vperm.xlu1 %3052, %v2630_v36   ;;  %v2631_v32 = vsel %vm2567_vm0, %v2599_v45, %v2986_v63  ;;  %v4512_v16 = vpop.permute.xlu1 %1861 }
 0x3a6   :  { %v1919_v3 = vrot.slane %v4512_v16, %v4785_v47  ;;  %v2843_v16 = vsub.f32 %v2839_v41, %v2841_v8 }
 0x3a9   :  { %1858 = vperm.xlu1 %3052, %v1811_v44   ;;  %v2658_v61 = vpop.permute.xlu1 %2657 }
 0x3aa   :  { %v2707_v20 = vrot.slane %v2658_v61, %v4785_v47 }
 0x3ab   :  { %s4501_s11 = spop %3006 }
 0x3ad   :  { %2678 = vperm.xlu1 %3052, %v2631_v32   ;;  %v4521_v51 = vpop.permute.xlu1 %2681 }
 0x3ae   :  { %v2739_v21 = vrot.slane %v4521_v51, %v4785_v47 }
 0x3b1   :  { %v1844_v35 = vpop.permute.xlu1 %1843 }
 0x3b2   :  { %v1895_v23 = vrot.slane %v1844_v35, %v4785_v47 }
 0x3b3   :  { %v1841_v31 = vpop.permute.xlu0 %1840 }
 0x3b4   :  { %v1891_v58 = vrot.slane %v1841_v31, %v4785_v47 }
 0x3b5   :  { %v2664_v54 = vpop.permute.xlu1 %2663 }
 0x3b6   :  { %v1948_v27 = vsel %vm399_vm3, %v1891_v58, %v1887_v19  ;;  %v2715_v9 = vrot.slane %v2664_v54, %v4785_v47 }
 0x3b7   :  { %v4510_v26 = vpop.permute.xlu0 %1864  ;;  %v1950_v60 = vsel %vm1949_vm4, %v1895_v23, %v1948_v27 }
 0x3b8   :  { %v1923_v45 = vrot.slane %v4510_v26, %v4785_v47 }
 0x3b9   :  { %v1847_v11 = vpop.permute.xlu1 %1846 }
 0x3ba   :  { %v1899_v36 = vrot.slane %v1847_v11, %v4785_v47  ;;  %v1961_v31 = vsel %vm399_vm3, %v1923_v45, %v1919_v3  ;;  %v2849_v11 = vmul.f32 0.5, %v2843_v16 }
 0x3bb   :  { %v2661_v7 = vpop.permute.xlu0 %2660 }
 0x3bc   :  { %v2711_v37 = vrot.slane %v2661_v7, %v4785_v47  ;;  %v1952_v42 = vsel %vm1951_vm5, %v1899_v36, %v1950_v60  ;;  %v2851_v36 = vmul.f32 %v2849_v11, %v2843_v16 }
 0x3bd   :  { %v2667_v10 = vpop.permute.xlu1 %2666 }
 0x3be   :  { %v2768_v4 = vsel %vm399_vm3, %v2711_v37, %v2707_v20  ;;  %v2719_v44 = vrot.slane %v2667_v10, %v4785_v47 }
 0x3bf   :  { %v4514_v49 = vpop.permute.xlu0 %2684  ;;  %v2769_v63 = vsel %vm1949_vm4, %v2715_v9, %v2768_v4 }
 0x3c0   :  { %v2743_v6 = vrot.slane %v4514_v49, %v4785_v47 }
 0x3c1   :  { %v1850_v30 = vpop.permute.xlu1 %1849 }
 0x3c2   :  { %v1903_v55 = vrot.slane %v1850_v30, %v4785_v47  ;;  %v2775_v46 = vsel %vm399_vm3, %v2743_v6, %v2739_v21 }
 0x3c3   :  { %s4503_s13 = spop %3008  ;;  %v4516_v15 = vpop.permute.xlu0 %1867 }
 0x3c4   :  { %s520_s20 = sadd.f32 %s4503_s13, %s4501_s11  ;;  %s3011_s6 = spop %3010  ;;  %v1927_v32 = vrot.slane %v4516_v15, %v4785_v47  ;;  %v1954_v49 = vsel %vm1953_vm6, %v1903_v55, %v1952_v42 }
 0x3c5   :  { %s531_s4 = smul.f32 2.0, %s3011_s6  ;;  %v4539_v33 = vpop.permute.xlu1 %2669 }
 0x3c6   :  { %v1962_v26 = vsel %vm1949_vm4, %v1927_v32, %v1961_v31  ;;  %v2723_v51 = vrot.slane %v4539_v33, %v4785_v47  ;;  %v2845_v33 = vand.u32 2147483647, %v2843_v16  ;;  %v4786_v31 = vld [vmem:[#allocation38_spill] sm:$0xff] }
 0x3c7   :  { %s532_s21 = sadd.f32 0.0001, %s531_s4  ;;  %v4523_v18 = vpop.permute.xlu0 %2687 }
 0x3c8   :  { %vm2847_vm3 = vcmp.lt.f32.partialorder %v2845_v33, 1.0 }
 0x3c9   :  { %v533_v2 = vstv %s532_s21 }
 0x3ca   :  { %3091 = vrcp.f32 %v533_v2 }
 0x3cf   :  { %v1871_v62 = vpop.permute.xlu0 %1870 }
 0x3d0   :  { %v1931_v14 = vrot.slane %v1871_v62, %v4785_v47 }
 0x3d1   :  { %736 = vadd.xlane.f32.xlu1 %v4784_v56 }
 0x3d2   :  { %v1963_v61 = vsel %vm1951_vm5, %v1931_v14, %v1962_v26 }
 0x3d3   :  { %v4525_v1 = vpop.permute.xlu0 %2690 }
 0x3d4   :  { %v3092_v24 = vpop.eup %3091  ;;  %v2751_v12 = vrot.slane %v4525_v1, %v4785_v47 }
 0x3d5   :  { %3012 = vpush %v3092_v24  ;;  %2826 = vadd.xlane.f32.xlu1 %v2825_v59  ;;  %v2770_v24 = vsel %vm1951_vm5, %v2719_v44, %v2769_v63  ;;  %v2997_v63 = vadd.f32 -0.5, %v2845_v33 }
 0x3d6   :  { %3014 = vpush %v703_v22  ;;  %v2747_v22 = vrot.slane %v4523_v18, %v4785_v47  ;;  %v2771_v58 = vsel %vm1953_vm6, %v2723_v51, %v2770_v24 }
 0x3d7   :  { %3016 = vpush %v731_v53  ;;  %v2855_v6 = vsel %vm2847_vm3, %v2851_v36, %v2997_v63 }
 0x3d8   :  { %v2776_v43 = vsel %vm1949_vm4, %v2747_v22, %v2775_v46 }
 0x3d9   :  { %v2777_v1 = vsel %vm1951_vm5, %v2751_v12, %v2776_v43 }
 0x3db   :  { %v4527_v28 = vpop.permute.xlu0 %1873 }
 0x3dc   :  { %v1935_v56 = vrot.slane %v4527_v28, %v4785_v47  ;;  %v2842_v28 = vsub.f32 %v2838_v13, %v2840_v17 }
 0x3de   :  { %v1964_v18 = vsel %vm1953_vm6, %v1935_v56, %v1963_v61  ;;  %v2844_v27 = vand.u32 2147483647, %v2842_v28  ;;  %v2848_v9 = vmul.f32 0.5, %v2842_v28 }
 0x3df   :  { %v4529_v38 = vpop.permute.xlu0 %2693 }
 0x3e0   :  { %v2755_v15 = vrot.slane %v4529_v38, %v4785_v47  ;;  %v2850_v8 = vmul.f32 %v2848_v9, %v2842_v28  ;;  %v2996_v21 = vadd.f32 -0.5, %v2844_v27  ;;  %vm2846_vm12 = vcmp.lt.f32.partialorder %v2844_v27, 1.0 }
 0x3e2   :  { %v2778_v38 = vsel %vm1953_vm6, %v2755_v15, %v2777_v1  ;;  %v2854_v56 = vsel %vm2846_vm12, %v2850_v8, %v2996_v21 }
 0x3e7   :  { %v1877_v50 = vpop.permute.xlu0 %1876 }
 0x3e8   :  { %v1939_v53 = vrot.slane %v1877_v50, %v4785_v47 }
 0x3ea   :  { %v1965_v5 = vsel %vm1955_vm7, %v1939_v53, %v1964_v18 }
 0x3eb   :  { %v4537_v57 = vpop.permute.xlu0 %2696 }
 0x3ec   :  { %v2759_v59 = vrot.slane %v4537_v57, %v4785_v47 }
 0x3ee   :  { %v2779_v20 = vsel %vm1955_vm7, %v2759_v59, %v2778_v38 }
 0x3ef   :  { %v1880_v48 = vpop.permute.xlu0 %1879 }
 0x3f0   :  { %v1943_v7 = vrot.slane %v1880_v48, %v4785_v47 }
 0x3f2   :  { %v1966_v54 = vsel %vm1957_vm9, %v1943_v7, %v1965_v5 }
 0x3f3   :  { %v4546_v0 = vpop.permute.xlu0 %2699 }
 0x3f4   :  { %v2763_v10 = vrot.slane %v4546_v0, %v4785_v47 }
 0x3f6   :  { %v2780_v23 = vsel %vm1957_vm9, %v2763_v10, %v2779_v20 }
 0x3f7   :  { %v1883_v40 = vpop.permute.xlu0 %1882 }
 0x3f8   :  { %v1947_v34 = vrot.slane %v1883_v40, %v4785_v47 }
 0x3fa   :  { %v1967_v50 = vsel %vm1959_vm10, %v1947_v34, %v1966_v54 }
 0x3fb   :  { %v2703_v62 = vpop.permute.xlu0 %2702  ;;  %v1972_v44 = vsel %vm1970_vm11, %v1967_v50, 0.0 }
 0x3fc   :  { %v2767_v57 = vrot.slane %v2703_v62, %v4785_v47 }
 0x3fe   :  { %v2781_v32 = vsel %vm1959_vm10, %v2767_v57, %v2780_v23 }
 0x3ff   :  { %v2785_v41 = vsel %vm1970_vm11, %v2781_v32, 0.0 }
 0x406   :  { %s3013_s14 = spop %3012 }
 0x407   :  { %s4534_s17 = smul.f32 %s3013_s14, %s520_s20  ;;  %s4638_s15 = spop %3014 }
 0x408   :  { %s4640_s16 = spop %3016 }
 0x409   :  { %2881 = sst [smem:[#allocation13 + $0x1]] %s4534_s17  ;;  %s2871_s2 = smul.f32 0.1, %s4534_s17 }
 0x40a   :  { %s747_s0 = sadd.f32 %s4640_s16, %s4638_s15  ;;  %s4787_s15 = sld [smem:[#allocation42_spill]] }
 0x40b   :  { %s746_s8 = ssub.f32 0.0, %s4640_s16 }
 0x40c   :  { %s748_s25 = ssub.f32 0.0, %s747_s0 }
 0x40d   :  { %s4654_s9 = sadd.f32 %s2871_s2, %s4789_s18 }
 0x410   :  { %s3229_s16 = scalar_lea.hbm %s4787_s15, 16 }
 0x411   :  { %p3230_p8 = scmp.ne.s32.totalorder %s4787_s15, %s3229_s16  ;;  %p3233_p9 = scmp.lt.u32.totalorder %s3229_s16, %s4787_s15 }
 0x413   :  { %p3235_p10 = pnand %p3233_p9, %p3230_p8 }
 0x418   :  { %v4542_v29 = vpop.permute.xlu1 %1852 }
 0x419   :  { %v1907_v52 = vrot.slane %v4542_v29, %v4785_v47 }
 0x41b   :  { %v1956_v48 = vsel %vm1955_vm7, %v1907_v52, %v1954_v49 }
 0x41c   :  { %v4550_v25 = vpop.permute.xlu1 %2672 }
 0x41d   :  { %v2727_v37 = vrot.slane %v4550_v25, %v4785_v47 }
 0x41f   :  { %v2772_v3 = vsel %vm1955_vm7, %v2727_v37, %v2771_v58 }
 0x420   :  { %v1856_v2 = vpop.permute.xlu1 %1855 }
 0x421   :  { %v1911_v35 = vrot.slane %v1856_v2, %v4785_v47 }
 0x423   :  { %v1958_v19 = vsel %vm1957_vm9, %v1911_v35, %v1956_v48 }
 0x424   :  { %v2676_v39 = vpop.permute.xlu1 %2675 }
 0x425   :  { %v2731_v0 = vrot.slane %v2676_v39, %v4785_v47 }
 0x427   :  { %v2773_v14 = vsel %vm1957_vm9, %v2731_v0, %v2772_v3 }
 0x428   :  { %v1859_v30 = vpop.permute.xlu1 %1858 }
 0x429   :  { %v1915_v29 = vrot.slane %v1859_v30, %v4785_v47 }
 0x42b   :  { %v1960_v4 = vsel %vm1959_vm10, %v1915_v29, %v1958_v19 }
 0x42c   :  { %v2679_v45 = vpop.permute.xlu1 %2678  ;;  %v1971_v25 = vsel %vm1970_vm11, %v1960_v4, 0.0 }
 0x42d   :  { %v2735_v60 = vrot.slane %v2679_v45, %v4785_v47  ;;  %v1973_v55 = vadd.f32 %v1972_v44, %v1971_v25  ;;  %v2857_v47 = vsel %vm2856_vm13, %v2855_v6, 0.0 }
 0x42e   :  { %v2858_v24 = vadd.f32 %v2857_v47, %v2854_v56 }
 0x42f   :  { %v2774_v40 = vsel %vm1959_vm10, %v2735_v60, %v2773_v14  ;;  %1974 = vadd.xlane.f32.xlu0 %v1973_v55 }
 0x430   :  { %v2784_v2 = vsel %vm1970_vm11, %v2774_v40, 0.0 }
 0x431   :  { %v2786_v42 = vadd.f32 %v2785_v41, %v2784_v2 }
 0x433   :  { %2787 = vadd.xlane.f32.xlu0 %v2786_v42 }
 0x437   :  { %2800 = vadd.xlane.f32.xlu0 %v4786_v31 }
 0x43b   :  { %2859 = vadd.xlane.f32.xlu0 %v2858_v24 }
 0x45e   :  { %v737_v22 = vpop.xlane.xlu1 %736 }
 0x45f   :  { %v738_v53 = vrot.slane %v737_v22, 4 }
 0x461   :  { %v739_v26 = vadd.f32 %v738_v53, %v737_v22 }
 0x462   :  { %v2827_v57 = vpop.xlane.xlu1 %2826 }
 0x463   :  { %v740_v12 = vrot.slane %v739_v26, 2  ;;  %v2828_v37 = vrot.slane %v2827_v57, 4 }
 0x465   :  { %v741_v7 = vadd.f32 %v740_v12, %v739_v26  ;;  %v2829_v58 = vadd.f32 %v2828_v37, %v2827_v57 }
 0x467   :  { %v742_v16 = vrot.slane %v741_v7, 1  ;;  %v2830_v19 = vrot.slane %v2829_v58, 2 }
 0x469   :  { %v743_v49 = vadd.f32 %v742_v16, %v741_v7  ;;  %v2831_v27 = vadd.f32 %v2830_v19, %v2829_v58 }
 0x46b   :  { %3018 = vpush %v743_v49  ;;  %v2832_v36 = vrot.slane %v2831_v27, 1 }
 0x46d   :  { %v2833_v25 = vadd.f32 %v2832_v36, %v2831_v27 }
 0x49c   :  { %s4642_s19 = spop %3018 }
 0x49d   :  { %s749_s7 = smax.f32 %s3263_s30, %s4642_s19  ;;  %s3264_s30 = smov 0.0  }
 0x49e   :  { %v750_v61 = vstv %s749_s7  ;;  %2893 = sst [smem:[#allocation13 + $0x7]] %s3264_s30  ;;  %p745_p7 = scmp.eq.f32.partialorder %s4642_s19, 0.0 }
 0x49f   :  { %3093 = vrcp.f32 %v750_v61 }
 0x4a9   :  { %v3094_v15 = vpop.eup %3093 }
 0x4aa   :  { %3020 = vpush %v3094_v15 }
 0x4bc   :  { %v1975_v34 = vpop.xlane.xlu0 %1974 }
 0x4bd   :  { %v1976_v39 = vrot.slane %v1975_v34, 4 }
 0x4bf   :  { %v1977_v13 = vadd.f32 %v1976_v39, %v1975_v34 }
 0x4c0   :  { %v2788_v17 = vpop.xlane.xlu0 %2787 }
 0x4c1   :  { %v1978_v46 = vrot.slane %v1977_v13, 2  ;;  %v2789_v51 = vrot.slane %v2788_v17, 4 }
 0x4c3   :  { %v2790_v18 = vadd.f32 %v2789_v51, %v2788_v17  ;;  %v1979_v52 = vadd.f32 %v1978_v46, %v1977_v13 }
 0x4c4   :  { %v2801_v43 = vpop.xlane.xlu0 %2800 }
 0x4c5   :  { %v2791_v5 = vrot.slane %v2790_v18, 2  ;;  %v2802_v59 = vrot.slane %v2801_v43, 4  ;;  %v1980_v62 = vrot.slane %v1979_v52, 1 }
 0x4c7   :  { %v2803_v35 = vadd.f32 %v2802_v59, %v2801_v43  ;;  %v1981_v1 = vadd.f32 %v1980_v62, %v1979_v52  ;;  %v2792_v54 = vadd.f32 %v2791_v5, %v2790_v18 }
 0x4c8   :  { %v2860_v33 = vpop.xlane.xlu0 %2859 }
 0x4c9   :  { %v2804_v28 = vrot.slane %v2803_v35, 2  ;;  %3022 = vpush %v1981_v1  ;;  %v2793_v11 = vrot.slane %v2792_v54, 1  ;;  %v2861_v48 = vrot.slane %v2860_v33, 4 }
 0x4cb   :  { %v2794_v38 = vadd.f32 %v2793_v11, %v2792_v54  ;;  %v2805_v10 = vadd.f32 %v2804_v28, %v2803_v35  ;;  %v2862_v29 = vadd.f32 %v2861_v48, %v2860_v33 }
 0x4cd   :  { %3024 = vpush %v2794_v38  ;;  %v2806_v50 = vrot.slane %v2805_v10, 1  ;;  %v2863_v20 = vrot.slane %v2862_v29, 2 }
 0x4cf   :  { %v2807_v30 = vadd.f32 %v2806_v50, %v2805_v10  ;;  %v2864_v4 = vadd.f32 %v2863_v20, %v2862_v29 }
 0x4d1   :  { %3026 = vpush %v2807_v30  ;;  %v2865_v9 = vrot.slane %v2864_v4, 1 }
 0x4d3   :  { %v2866_v23 = vadd.f32 %v2865_v9, %v2864_v4 }
 0x4db   :  { %s3021_s12 = spop %3020 }
 0x4dc   :  { %s753_s1 = smul.f32 %s3021_s12, %s748_s25 }
 0x4de   :  { %s4791_s8 = smov (!%p745_p7, %s746_s8), %s753_s1 }
 0x4df   :  { %2883 = sst [smem:[#allocation13 + $0x2]] %s4791_s8 }
 0x4e0   :  { %s2873_s11 = sadd.f32 %s4654_s9, %s4791_s8 }
 0x4fa   :  { %s3023_s13 = spop %3022 }
 0x4fe   :  { %s3025_s20 = spop %3024 }
 0x4ff   :  { %s2796_s6 = sadd.f32 %s3025_s20, %s3023_s13 }
 0x502   :  { %s3027_s4 = spop %3026 }
 0x503   :  { %s2809_s21 = smul.f32 2.0, %s3027_s4 }
 0x505   :  { %s2810_s3 = sadd.f32 0.0001, %s2809_s21 }
 0x507   :  { %v2811_v0 = vstv %s2810_s3 }
 0x508   :  { %3095 = vrcp.f32 %v2811_v0 }
 0x512   :  { %v3096_v45 = vpop.eup %3095 }
 0x513   :  { %3028 = vpush %v3096_v45 }
 0x514   :  { %3030 = vpush %v2833_v25 }
 0x515   :  { %3032 = vpush %v2866_v23 }
 0x544   :  { %s3029_s18 = spop %3028 }
 0x545   :  { %s2814_s23 = smul.f32 %s3029_s18, %s2796_s6  ;;  %s3031_s14 = spop %3030 }
 0x546   :  { %s2837_s17 = smul.f32 0.0078125, %s3031_s14  ;;  %s3033_s27 = spop %3032 }
 0x547   :  { %s2874_s10 = smul.f32 0.1, %s2814_s23  ;;  %2885 = sst [smem:[#allocation13 + $0x3]] %s2814_s23 }
 0x548   :  { %2887 = sst [smem:[#allocation13 + $0x4]] %s2837_s17  ;;  %s2870_s22 = smul.f32 0.00078125, %s3033_s27 }
 0x549   :  { %s2875_s26 = sadd.f32 %s2874_s10, %s2873_s11 }
 0x54a   :  { %2889 = sst [smem:[#allocation13 + $0x5]] %s2870_s22 }
 0x54b   :  { %s2876_s28 = sadd.f32 %s2875_s26, %s2837_s17 }
 0x54d   :  { %s2877_s29 = sadd.f32 %s2876_s28, %s2870_s22 }
 0x54f   :  { %2891 = sst [smem:[#allocation13 + $0x6]] %s2877_s29 }
 0x550   :  { %3238 = shalt.err (!%p3235_p10)
}
 0x551   :  { %s3265_s2 = smov [#allocation13]  }
 0x552   :  { %2901 = dma.smem_to_hbm %s3265_s2, 16, %s4787_s15, [#allocation4]  }
 0x553   :  { %3247 = dma.done.wait [#allocation4], 16  }
 0x554   :  { %3248 = vsyncadd [#allocation4], 4294967280 }
 0x555   :  { %2905 = sfence }
 0x556   :  { %2906 = vsyncpa [#allocation3], 1 }
 0x557   :  { %2907 = vsyncpa [#allocation6], 1 }
 0x558   :  { %2908 = vsyncpa [#allocation9], 1 }
 0x559   :  { %2909 = vsyncpa [#allocation12], 1 }
 0x55a   :  { %2910 = vsyncpa [#allocation4], 1 }

</bundles_post_ra>
